<compile_context>
chip_gen: v7x
topology: tpu7x:2x2x1
jax: 0.10.0
libtpu: 0.0.40
codegen_flags: <defaults>
</compile_context>

<pallas_src>
import math

import jax
import jax.numpy as jnp
from jax import lax
from jax.experimental import pallas as pl
from jax.experimental.pallas import tpu as pltpu

IN_EPS = 1e-5  # PyTorch InstanceNorm2d default eps

# tap k = (dy+1)*3 + (dx+1), matching a 3x3 cross-correlation with padding 1
_TAPS = [(dy, dx) for dy in (-1, 0, 1) for dx in (-1, 0, 1)]


# ------------------------------ fused kernel -------------------------------- #

def _make_refblock_kernel(H, W, base):
    HW = H * W
    # (cin, cout2) of the six conv->InstanceNorm->GLU layers, in execution order.
    layer_cfg = [(1, 2 * base), (base, 2 * base), (base, 4 * base),
                 (2 * base, 4 * base), (2 * base, 8 * base), (4 * base, 8 * base)]

    def kernel(x_ref, m_ref, te_ref, tmask_ref, wslab_ref, gbe_ref,
               mlpw_ref, mlpb_ref, wft_ref, bf_ref, o_ref):
        m = m_ref[0]                       # (1, HW)  model mask (f32)
        x = x_ref[0]                       # (1, HW)  first-layer input (Cin=1)

        # Mish(time_emb), shared by both MLP projections.
        t = te_ref[0]                      # (1, tdim)
        t = t * jnp.tanh(jax.nn.softplus(t))

        def time_proj(li, dout):
            mw = mlpw_ref[li][:dout]                              # (dout, tdim)
            mb = mlpb_ref[li][:dout]                              # (dout, 1)
            return jnp.sum(mw * t, axis=1, keepdims=True) + mb    # (dout, 1)

        def conv_in_glu(y, li):
            """(y*mask) -> conv3x3(pad=1) -> InstanceNorm(affine) -> GLU(channels)."""
            cin, cout2 = layer_cfg[li]
            ym = y * m                                            # (cin, HW) f32
            # Build the stacked (9*cin, HW) operand: rolled + boundary-masked taps.
            taps = []
            for k, (dy, dx) in enumerate(_TAPS):
                if dy == 0 and dx == 0:
                    taps.append(ym)                               # center: no shift
                else:
                    off = dy * W + dx                             # want xs[p] = ym[p+off]
                    taps.append(pltpu.roll(ym, (-off) % HW, axis=1)
                                * tmask_ref[pl.ds(k, 1), :])
            stacked = jnp.concatenate(taps, axis=0).astype(jnp.bfloat16)
            w2d = wslab_ref[li][:cout2, :9 * cin]                 # bf16 (cout2, 9*cin)
            acc = jnp.dot(w2d, stacked, preferred_element_type=jnp.float32)
            # Conv bias omitted: a per-channel constant is exactly cancelled by the
            # InstanceNorm mean subtraction (variance is also unaffected).
            s = jnp.sum(acc, axis=1, keepdims=True)
            ss = jnp.sum(acc * acc, axis=1, keepdims=True)
            mean = s * (1.0 / HW)
            var = jnp.maximum(ss * (1.0 / HW) - mean * mean, 0.0)
            gbe = gbe_ref[li]                                     # (2, 8*base, 1)
            yn = (acc - mean) * lax.rsqrt(var + IN_EPS) * gbe[0, :cout2] + gbe[1, :cout2]
            half = cout2 // 2
            return yn[:half] * jax.nn.sigmoid(yn[half:])          # (half, HW)

        y = conv_in_glu(x, 0)
        y = conv_in_glu(y, 1)
        y = y + time_proj(0, base)
        y = conv_in_glu(y, 2)
        y = conv_in_glu(y, 3)
        y = y + time_proj(1, 2 * base)
        y = conv_in_glu(y, 4)
        y = conv_in_glu(y, 5)

        # Final 1x1 conv + masked mean, produced as a lane-dense (1, out_dim) row.
        # out[d] = sum_c wf[d,c] * sum_p y[c,p]*m[p]^2 + bf[d]*sum(m), / (sum(m)*H)
        msum = jnp.sum(m)
        ym_t = jnp.transpose(y * m)                               # (HW, 4*base)
        m8 = jnp.broadcast_to(m, (8, HW))                         # M=8 for a clean MXU shape
        v8 = jnp.dot(m8, ym_t, preferred_element_type=jnp.float32)        # (8, 4*base)
        out8 = jnp.dot(v8, wft_ref[...], preferred_element_type=jnp.float32)  # (8, out_dim)
        o_ref[0] = (out8[0:1] + bf_ref[...] * msum) / (msum * H)

    return kernel


# ------------------------------ wrapper -------------------------------------- #

def _batched_spec(shape):
    rest = (0,) * (len(shape) - 1)
    return pl.BlockSpec((1,) + tuple(shape[1:]), lambda b: (b,) + rest)


def _shared_spec(shape):
    zeros = (0,) * len(shape)
    return pl.BlockSpec(tuple(shape), lambda b: zeros)


def _tap_masks(H, W):
    """(9, HW) zero-pad boundary masks for the 3x3 taps (grid-invariant)."""
    HW = H * W
    col = jnp.arange(HW, dtype=jnp.int32) % W
    row = jnp.arange(HW, dtype=jnp.int32) // W
    ms = []
    for dy, dx in _TAPS:
        ok = (col + dx >= 0) & (col + dx < W) & (row + dy >= 0) & (row + dy < H)
        ms.append(ok.astype(jnp.float32))
    return jnp.stack(ms)


def _pack_params(params, base):
    """Pack the many small parameters into a few padded slabs."""
    names = ("b11", "b12", "b21", "b22", "b31", "b32")
    cout2_max, cin_max = 8 * base, 4 * base
    w_list, gbe_list = [], []
    for n in names:
        p = params[n]
        _, cout2, cin = p["w"].shape
        # (9, cout2, cin) -> (cout2, 9*cin) with column index k*cin + c
        w2d = jnp.transpose(p["w"], (1, 0, 2)).reshape(cout2, 9 * cin)
        w_list.append(jnp.pad(w2d, ((0, cout2_max - cout2),
                                    (0, 9 * (cin_max - cin)))))
        g = jnp.pad(p["g"], ((0, cout2_max - cout2), (0, 0)))
        be = jnp.pad(p["be"], ((0, cout2_max - cout2), (0, 0)))
        gbe_list.append(jnp.stack([g, be]))
    wslab = jnp.stack(w_list).astype(jnp.bfloat16)                 # (6, 8b, 36b) bf16
    gbeslab = jnp.stack(gbe_list).astype(jnp.float32)              # (6, 2, 8b, 1) f32
    dmax = 2 * base
    mlpw = jnp.stack([jnp.pad(params["mlp1"]["w"], ((0, dmax - base), (0, 0))),
                      params["mlp2"]["w"]])                        # (2, 2b, tdim)
    mlpb = jnp.stack([jnp.pad(params["mlp1"]["b"], ((0, dmax - base), (0, 0))),
                      params["mlp2"]["b"]])                        # (2, 2b, 1)
    wft = jnp.transpose(params["final"]["w"])                      # (4b, out_dim)
    bfr = jnp.transpose(params["final"]["b"])                      # (1, out_dim)
    return wslab, gbeslab, mlpw, mlpb, wft, bfr


@jax.jit
def ref_block_forward(x_nchw, mask_nchw, time_emb, params):
    """Pallas implementation of RefBlock.forward (inputs in PyTorch NCHW layout)."""
    B, _, H, W = x_nchw.shape
    HW = H * W
    out_dim = params["final"]["w"].shape[0]
    base = out_dim // 4

    x = x_nchw.reshape(B, 1, HW).astype(jnp.float32)
    m = mask_nchw.reshape(B, 1, HW).astype(jnp.float32)
    te = time_emb.reshape(B, 1, time_emb.shape[-1]).astype(jnp.float32)

    tmask = _tap_masks(H, W)
    wslab, gbeslab, mlpw, mlpb, wft, bfr = _pack_params(params, base)

    args = (x, m, te, tmask, wslab, gbeslab, mlpw, mlpb, wft, bfr)
    in_specs = [_batched_spec(x.shape), _batched_spec(m.shape), _batched_spec(te.shape)]
    in_specs += [_shared_spec(a.shape) for a in args[3:]]

    out = pl.pallas_call(
        _make_refblock_kernel(H, W, base),
        grid=(B,),
        in_specs=in_specs,
        out_specs=pl.BlockSpec((1, 1, out_dim), lambda b: (b, 0, 0)),
        out_shape=jax.ShapeDtypeStruct((B, 1, out_dim), jnp.float32),
        compiler_params=pltpu.CompilerParams(dimension_semantics=("parallel",)),
    )(*args)
    return out[:, 0, :]


# ------------------------------ pure-JAX reference --------------------------- #

def ref_block_reference(x_nchw, mask_nchw, time_emb, params):
    """Mirrors the PyTorch module exactly (including the pre-InstanceNorm conv biases)."""
    x = jnp.transpose(x_nchw, (0, 2, 3, 1))        # NHWC
    m = jnp.transpose(mask_nchw, (0, 2, 3, 1))     # (B,H,W,1)
    H = x_nchw.shape[2]

    def mish(v):
        return v * jnp.tanh(jax.nn.softplus(v))

    def block(inp, prm):
        _, cout2, cin = prm["w"].shape
        w_hwio = prm["w"].reshape(3, 3, cout2, cin).transpose(0, 1, 3, 2)
        z = lax.conv_general_dilated(
            inp * m, w_hwio, (1, 1), "SAME",
            dimension_numbers=("NHWC", "HWIO", "NHWC"),
            precision=lax.Precision.HIGHEST) + prm["b"][:, 0]
        mean = z.mean(axis=(1, 2), keepdims=True)
        var = ((z - mean) ** 2).mean(axis=(1, 2), keepdims=True)
        zn = (z - mean) / jnp.sqrt(var + IN_EPS) * prm["g"][:, 0] + prm["be"][:, 0]
        half = cout2 // 2
        return zn[..., :half] * jax.nn.sigmoid(zn[..., half:])

    def lin(prm):
        return mish(time_emb) @ prm["w"].T + prm["b"][:, 0]

    y = block(x, params["b11"])
    y = block(y, params["b12"])
    y = y + lin(params["mlp1"])[:, None, None, :]
    y = block(y, params["b21"])
    y = block(y, params["b22"])
    y = y + lin(params["mlp2"])[:, None, None, :]
    y = block(y, params["b31"])
    y = block(y, params["b32"])

    ym = y * m
    z = jnp.einsum("bhwc,dc->bhwd", ym, params["final"]["w"],
                   precision=lax.Precision.HIGHEST) + params["final"]["b"][:, 0]
    num = (z * m).sum((1, 2))
    den = m.sum((1, 2)) * H
    return num / den


# ------------------------------ parameter init ------------------------------- #

def init_params(key, out_dim, time_emb_dim):
    base = out_dim // 4
    keys = iter(jax.random.split(key, 64))

    def conv_p(cin, cout2):
        return dict(
            w=jax.random.normal(next(keys), (9, cout2, cin), jnp.float32)
              * (0.5 / math.sqrt(9 * cin)),
            b=0.1 * jax.random.normal(next(keys), (cout2, 1), jnp.float32),
            g=1.0 + 0.1 * jax.random.normal(next(keys), (cout2, 1), jnp.float32),
            be=0.1 * jax.random.normal(next(keys), (cout2, 1), jnp.float32),
        )

    def lin_p(din, dout):
        return dict(
            w=jax.random.normal(next(keys), (dout, din), jnp.float32) / math.sqrt(din),
            b=0.1 * jax.random.normal(next(keys), (dout, 1), jnp.float32),
        )

    return dict(
        mlp1=lin_p(time_emb_dim, base),
        mlp2=lin_p(time_emb_dim, 2 * base),
        b11=conv_p(1, 2 * base),
        b12=conv_p(base, 2 * base),
        b21=conv_p(base, 4 * base),
        b22=conv_p(2 * base, 4 * base),
        b31=conv_p(2 * base, 8 * base),
        b32=conv_p(4 * base, 8 * base),
        final=dict(
            w=jax.random.normal(next(keys), (out_dim, 4 * base), jnp.float32)
              / math.sqrt(4 * base),
            b=0.1 * jax.random.normal(next(keys), (out_dim, 1), jnp.float32),
        ),
    )


# -------------------------------- main ---------------------------------------- #

if __name__ == "__main__":
    B, H, W = 2, 16, 16
    out_dim, time_emb_dim = 32, 8          # base=8 -> every GLU half is 8-aligned

    key = jax.random.PRNGKey(0)
    kx, kt, kp = jax.random.split(key, 3)

    x_nchw = jax.random.normal(kx, (B, 1, H, W), jnp.float32)

    # mask: valid frames along W (broadcast to full NCHW mask)
    valid = jnp.array([W, W - 4])
    col = jnp.arange(W)
    mask_1w = (col[None, :] < valid[:, None]).astype(jnp.float32)       # (B, W)
    mask_nchw = jnp.broadcast_to(mask_1w[:, None, None, :], (B, 1, H, W))

    time_emb = jax.random.normal(kt, (B, time_emb_dim), jnp.float32)
    params = init_params(kp, out_dim, time_emb_dim)

    out = jax.block_until_ready(ref_block_forward(x_nchw, mask_nchw, time_emb, params))
    ref = jax.block_until_ready(ref_block_reference(x_nchw, mask_nchw, time_emb, params))

    err = float(jnp.max(jnp.abs(out - ref)))
    scale = float(jnp.max(jnp.abs(ref))) + 1e-6
    if not (err <= 5e-2 * scale + 1e-3):
        raise AssertionError(f"mismatch: max_abs_err={err}, ref_scale={scale}")

    print("KERNEL_OK")
</pallas_src>

<mosaic_0001>
module attributes {stable_mosaic.version = 11 : i64} {
  func.func @kernel(%arg0: i32, %arg1: memref<1x1x256xf32, #tpu.memory_space<vmem>>, %arg2: memref<1x1x256xf32, #tpu.memory_space<vmem>>, %arg3: memref<1x1x8xf32, #tpu.memory_space<vmem>>, %arg4: memref<9x256xf32, #tpu.memory_space<vmem>>, %arg5: memref<6x64x288xbf16, #tpu.memory_space<vmem>>, %arg6: memref<6x2x64x1xf32, #tpu.memory_space<vmem>>, %arg7: memref<2x16x8xf32, #tpu.memory_space<vmem>>, %arg8: memref<2x16x1xf32, #tpu.memory_space<vmem>>, %arg9: memref<32x32xf32, #tpu.memory_space<vmem>>, %arg10: memref<1x32xf32, #tpu.memory_space<vmem>>, %arg11: memref<1x1x32xf32, #tpu.memory_space<vmem>>) attributes {dimension_semantics = [#tpu.dimension_semantics<parallel>], iteration_bounds = array<i64: 2>, scalar_prefetch = 0 : i64, scratch_operands = 0 : i64, tpu.core_type = #tpu.core_type<tc>, window_params = [{transform_indices = @transform_0, window_bounds = array<i64: 1, 1, 256>}, {transform_indices = @transform_1, window_bounds = array<i64: 1, 1, 256>}, {transform_indices = @transform_2, window_bounds = array<i64: 1, 1, 8>}, {pipeline_mode = #tpu.pipeline_mode<synchronous>, transform_indices = @transform_3, window_bounds = array<i64: 9, 256>}, {pipeline_mode = #tpu.pipeline_mode<synchronous>, transform_indices = @transform_4, window_bounds = array<i64: 6, 64, 288>}, {pipeline_mode = #tpu.pipeline_mode<synchronous>, transform_indices = @transform_5, window_bounds = array<i64: 6, 2, 64, 1>}, {pipeline_mode = #tpu.pipeline_mode<synchronous>, transform_indices = @transform_6, window_bounds = array<i64: 2, 16, 8>}, {pipeline_mode = #tpu.pipeline_mode<synchronous>, transform_indices = @transform_7, window_bounds = array<i64: 2, 16, 1>}, {pipeline_mode = #tpu.pipeline_mode<synchronous>, transform_indices = @transform_8, window_bounds = array<i64: 32, 32>}, {pipeline_mode = #tpu.pipeline_mode<synchronous>, transform_indices = @transform_9, window_bounds = array<i64: 1, 32>}, {transform_indices = @transform_10, window_bounds = array<i64: 1, 1, 32>}]} {
    %c0 = arith.constant 0 : index
    %c0_0 = arith.constant 0 : index
    %c0_1 = arith.constant 0 : index
    %0 = vector.load %arg2[%c0, %c0_0, %c0_1] : memref<1x1x256xf32, #tpu.memory_space<vmem>>, vector<1x1x256xf32>
    %1 = vector.shape_cast %0 : vector<1x1x256xf32> to vector<1x256xf32>
    %c0_2 = arith.constant 0 : index
    %c0_3 = arith.constant 0 : index
    %c0_4 = arith.constant 0 : index
    %2 = vector.load %arg1[%c0_2, %c0_3, %c0_4] : memref<1x1x256xf32, #tpu.memory_space<vmem>>, vector<1x1x256xf32>
    %3 = vector.shape_cast %2 : vector<1x1x256xf32> to vector<1x256xf32>
    %c0_5 = arith.constant 0 : index
    %c0_6 = arith.constant 0 : index
    %c0_7 = arith.constant 0 : index
    %4 = vector.load %arg3[%c0_5, %c0_6, %c0_7] : memref<1x1x8xf32, #tpu.memory_space<vmem>>, vector<1x1x8xf32>
    %5 = vector.shape_cast %4 : vector<1x1x8xf32> to vector<1x8xf32>
    %cst = arith.constant 0.000000e+00 : f32
    %6 = vector.broadcast %cst : f32 to vector<1x8xf32>
    %7 = arith.maximumf %5, %6 : vector<1x8xf32>
    %8 = vector.broadcast %cst : f32 to vector<1x8xf32>
    %9 = arith.subf %5, %8 : vector<1x8xf32>
    %10 = arith.cmpf one, %9, %9 : vector<1x8xf32>
    %11 = vector.broadcast %cst : f32 to vector<1x8xf32>
    %12 = arith.addf %5, %11 : vector<1x8xf32>
    %13 = math.absf %9 : vector<1x8xf32>
    %cst_8 = arith.constant 0.000000e+00 : f32
    %14 = vector.broadcast %cst_8 : f32 to vector<1x8xf32>
    %15 = arith.subf %14, %13 : vector<1x8xf32>
    %16 = math.exp %15 : vector<1x8xf32>
    %17 = math.log1p %16 : vector<1x8xf32>
    %18 = arith.addf %7, %17 : vector<1x8xf32>
    %19 = arith.select %10, %12, %18 : vector<1x8xi1>, vector<1x8xf32>
    %20 = math.tanh %19 : vector<1x8xf32>
    %21 = arith.mulf %5, %20 : vector<1x8xf32>
    %22 = arith.mulf %3, %1 : vector<1x256xf32>
    %c17_i32 = arith.constant 17 : i32
    %23 = tpu.dynamic_rotate %22 by %c17_i32 dim 1 : vector<1x256xf32>, i32 -> vector<1x256xf32>
    %c0_9 = arith.constant 0 : index
    %c0_10 = arith.constant 0 : index
    %24 = vector.load %arg4[%c0_9, %c0_10] : memref<9x256xf32, #tpu.memory_space<vmem>>, vector<1x256xf32>
    %25 = arith.mulf %23, %24 : vector<1x256xf32>
    %c16_i32 = arith.constant 16 : i32
    %26 = tpu.dynamic_rotate %22 by %c16_i32 dim 1 : vector<1x256xf32>, i32 -> vector<1x256xf32>
    %c1 = arith.constant 1 : index
    %c0_11 = arith.constant 0 : index
    %27 = vector.load %arg4[%c1, %c0_11] : memref<9x256xf32, #tpu.memory_space<vmem>>, vector<1x256xf32>
    %28 = arith.mulf %26, %27 : vector<1x256xf32>
    %c15_i32 = arith.constant 15 : i32
    %29 = tpu.dynamic_rotate %22 by %c15_i32 dim 1 : vector<1x256xf32>, i32 -> vector<1x256xf32>
    %c2 = arith.constant 2 : index
    %c0_12 = arith.constant 0 : index
    %30 = vector.load %arg4[%c2, %c0_12] : memref<9x256xf32, #tpu.memory_space<vmem>>, vector<1x256xf32>
    %31 = arith.mulf %29, %30 : vector<1x256xf32>
    %c1_i32 = arith.constant 1 : i32
    %32 = tpu.dynamic_rotate %22 by %c1_i32 dim 1 : vector<1x256xf32>, i32 -> vector<1x256xf32>
    %c3 = arith.constant 3 : index
    %c0_13 = arith.constant 0 : index
    %33 = vector.load %arg4[%c3, %c0_13] : memref<9x256xf32, #tpu.memory_space<vmem>>, vector<1x256xf32>
    %34 = arith.mulf %32, %33 : vector<1x256xf32>
    %c255_i32 = arith.constant 255 : i32
    %35 = tpu.dynamic_rotate %22 by %c255_i32 dim 1 : vector<1x256xf32>, i32 -> vector<1x256xf32>
    %c5 = arith.constant 5 : index
    %c0_14 = arith.constant 0 : index
    %36 = vector.load %arg4[%c5, %c0_14] : memref<9x256xf32, #tpu.memory_space<vmem>>, vector<1x256xf32>
    %37 = arith.mulf %35, %36 : vector<1x256xf32>
    %c241_i32 = arith.constant 241 : i32
    %38 = tpu.dynamic_rotate %22 by %c241_i32 dim 1 : vector<1x256xf32>, i32 -> vector<1x256xf32>
    %c6 = arith.constant 6 : index
    %c0_15 = arith.constant 0 : index
    %39 = vector.load %arg4[%c6, %c0_15] : memref<9x256xf32, #tpu.memory_space<vmem>>, vector<1x256xf32>
    %40 = arith.mulf %38, %39 : vector<1x256xf32>
    %c240_i32 = arith.constant 240 : i32
    %41 = tpu.dynamic_rotate %22 by %c240_i32 dim 1 : vector<1x256xf32>, i32 -> vector<1x256xf32>
    %c7 = arith.constant 7 : index
    %c0_16 = arith.constant 0 : index
    %42 = vector.load %arg4[%c7, %c0_16] : memref<9x256xf32, #tpu.memory_space<vmem>>, vector<1x256xf32>
    %43 = arith.mulf %41, %42 : vector<1x256xf32>
    %c239_i32 = arith.constant 239 : i32
    %44 = tpu.dynamic_rotate %22 by %c239_i32 dim 1 : vector<1x256xf32>, i32 -> vector<1x256xf32>
    %c8 = arith.constant 8 : index
    %c0_17 = arith.constant 0 : index
    %45 = vector.load %arg4[%c8, %c0_17] : memref<9x256xf32, #tpu.memory_space<vmem>>, vector<1x256xf32>
    %46 = arith.mulf %44, %45 : vector<1x256xf32>
    %47 = tpu.concatenate %25, %28, %31, %34, %22, %37, %40, %43, %46 in 0 : vector<1x256xf32>, vector<1x256xf32>, vector<1x256xf32>, vector<1x256xf32>, vector<1x256xf32>, vector<1x256xf32>, vector<1x256xf32>, vector<1x256xf32>, vector<1x256xf32> -> vector<9x256xf32>
    %48 = arith.truncf %47 : vector<9x256xf32> to vector<9x256xbf16>
    %c0_18 = arith.constant 0 : index
    %c0_19 = arith.constant 0 : index
    %c0_20 = arith.constant 0 : index
    %49 = vector.load %arg5[%c0_18, %c0_19, %c0_20] : memref<6x64x288xbf16, #tpu.memory_space<vmem>>, vector<1x64x288xbf16>
    %50 = vector.shape_cast %49 : vector<1x64x288xbf16> to vector<64x288xbf16>
    %51 = vector.extract_strided_slice %50 {offsets = [0, 0], sizes = [16, 9], strides = [1, 1]} : vector<64x288xbf16> to vector<16x9xbf16>
    %cst_21 = arith.constant dense<0.000000e+00> : vector<16x256xf32>
    %52 = tpu.matmul %51, %48, %cst_21 {dimension_numbers = #tpu.dot_dimension_numbers<[1], [0], [0], [1], [0, 0, 1, 1], [], []>} : vector<16x9xbf16>, vector<9x256xbf16>, vector<16x256xf32> -> vector<16x256xf32>
    %cst_22 = arith.constant dense<0.000000e+00> : vector<16xf32>
    %53 = vector.multi_reduction <add>, %52, %cst_22 [1] : vector<16x256xf32> to vector<16xf32>
    %54 = vector.shape_cast %53 : vector<16xf32> to vector<16x1xf32>
    %55 = arith.mulf %52, %52 : vector<16x256xf32>
    %cst_23 = arith.constant dense<0.000000e+00> : vector<16xf32>
    %56 = vector.multi_reduction <add>, %55, %cst_23 [1] : vector<16x256xf32> to vector<16xf32>
    %57 = vector.shape_cast %56 : vector<16xf32> to vector<16x1xf32>
    %cst_24 = arith.constant 3.906250e-03 : f32
    %58 = vector.broadcast %cst_24 : f32 to vector<16x1xf32>
    %59 = arith.mulf %54, %58 : vector<16x1xf32>
    %cst_25 = arith.constant 3.906250e-03 : f32
    %60 = vector.broadcast %cst_25 : f32 to vector<16x1xf32>
    %61 = arith.mulf %57, %60 : vector<16x1xf32>
    %62 = arith.mulf %59, %59 : vector<16x1xf32>
    %63 = arith.subf %61, %62 : vector<16x1xf32>
    %cst_26 = arith.constant 0.000000e+00 : f32
    %64 = vector.broadcast %cst_26 : f32 to vector<16x1xf32>
    %65 = arith.maximumf %63, %64 : vector<16x1xf32>
    %c0_27 = arith.constant 0 : index
    %c0_28 = arith.constant 0 : index
    %c0_29 = arith.constant 0 : index
    %c0_30 = arith.constant 0 : index
    %66 = vector.load %arg6[%c0_27, %c0_28, %c0_29, %c0_30] : memref<6x2x64x1xf32, #tpu.memory_space<vmem>>, vector<1x2x64x1xf32>
    %67 = vector.shape_cast %66 : vector<1x2x64x1xf32> to vector<2x64x1xf32>
    %68 = vector.broadcast %59 : vector<16x1xf32> to vector<16x256xf32>
    %69 = arith.subf %52, %68 : vector<16x256xf32>
    %cst_31 = arith.constant 9.99999974E-6 : f32
    %70 = vector.broadcast %cst_31 : f32 to vector<16x1xf32>
    %71 = arith.addf %65, %70 : vector<16x1xf32>
    %72 = math.rsqrt %71 : vector<16x1xf32>
    %73 = vector.broadcast %72 : vector<16x1xf32> to vector<16x256xf32>
    %74 = arith.mulf %69, %73 : vector<16x256xf32>
    %75 = vector.extract_strided_slice %67 {offsets = [0, 0, 0], sizes = [1, 16, 1], strides = [1, 1, 1]} : vector<2x64x1xf32> to vector<1x16x1xf32>
    %76 = vector.shape_cast %75 : vector<1x16x1xf32> to vector<16x1xf32>
    %77 = vector.broadcast %76 : vector<16x1xf32> to vector<16x256xf32>
    %78 = arith.mulf %74, %77 : vector<16x256xf32>
    %79 = vector.extract_strided_slice %67 {offsets = [1, 0, 0], sizes = [1, 16, 1], strides = [1, 1, 1]} : vector<2x64x1xf32> to vector<1x16x1xf32>
    %80 = vector.shape_cast %79 : vector<1x16x1xf32> to vector<16x1xf32>
    %81 = vector.broadcast %80 : vector<16x1xf32> to vector<16x256xf32>
    %82 = arith.addf %78, %81 : vector<16x256xf32>
    %83 = vector.extract_strided_slice %82 {offsets = [0, 0], sizes = [8, 256], strides = [1, 1]} : vector<16x256xf32> to vector<8x256xf32>
    %84 = vector.extract_strided_slice %82 {offsets = [8, 0], sizes = [8, 256], strides = [1, 1]} : vector<16x256xf32> to vector<8x256xf32>
    %85 = arith.negf %84 : vector<8x256xf32>
    %86 = math.exp %85 : vector<8x256xf32>
    %cst_32 = arith.constant 1.000000e+00 : f32
    %87 = vector.broadcast %cst_32 : f32 to vector<8x256xf32>
    %88 = arith.addf %87, %86 : vector<8x256xf32>
    %89 = arith.divf %87, %88 : vector<8x256xf32>
    %90 = arith.mulf %83, %89 : vector<8x256xf32>
    %91 = vector.broadcast %1 : vector<1x256xf32> to vector<8x256xf32>
    %92 = arith.mulf %90, %91 : vector<8x256xf32>
    %c17_i32_33 = arith.constant 17 : i32
    %93 = tpu.dynamic_rotate %92 by %c17_i32_33 dim 1 : vector<8x256xf32>, i32 -> vector<8x256xf32>
    %c0_34 = arith.constant 0 : index
    %c0_35 = arith.constant 0 : index
    %94 = vector.load %arg4[%c0_34, %c0_35] : memref<9x256xf32, #tpu.memory_space<vmem>>, vector<1x256xf32>
    %95 = vector.broadcast %94 : vector<1x256xf32> to vector<8x256xf32>
    %96 = arith.mulf %93, %95 : vector<8x256xf32>
    %c16_i32_36 = arith.constant 16 : i32
    %97 = tpu.dynamic_rotate %92 by %c16_i32_36 dim 1 : vector<8x256xf32>, i32 -> vector<8x256xf32>
    %c1_37 = arith.constant 1 : index
    %c0_38 = arith.constant 0 : index
    %98 = vector.load %arg4[%c1_37, %c0_38] : memref<9x256xf32, #tpu.memory_space<vmem>>, vector<1x256xf32>
    %99 = vector.broadcast %98 : vector<1x256xf32> to vector<8x256xf32>
    %100 = arith.mulf %97, %99 : vector<8x256xf32>
    %c15_i32_39 = arith.constant 15 : i32
    %101 = tpu.dynamic_rotate %92 by %c15_i32_39 dim 1 : vector<8x256xf32>, i32 -> vector<8x256xf32>
    %c2_40 = arith.constant 2 : index
    %c0_41 = arith.constant 0 : index
    %102 = vector.load %arg4[%c2_40, %c0_41] : memref<9x256xf32, #tpu.memory_space<vmem>>, vector<1x256xf32>
    %103 = vector.broadcast %102 : vector<1x256xf32> to vector<8x256xf32>
    %104 = arith.mulf %101, %103 : vector<8x256xf32>
    %c1_i32_42 = arith.constant 1 : i32
    %105 = tpu.dynamic_rotate %92 by %c1_i32_42 dim 1 : vector<8x256xf32>, i32 -> vector<8x256xf32>
    %c3_43 = arith.constant 3 : index
    %c0_44 = arith.constant 0 : index
    %106 = vector.load %arg4[%c3_43, %c0_44] : memref<9x256xf32, #tpu.memory_space<vmem>>, vector<1x256xf32>
    %107 = vector.broadcast %106 : vector<1x256xf32> to vector<8x256xf32>
    %108 = arith.mulf %105, %107 : vector<8x256xf32>
    %c255_i32_45 = arith.constant 255 : i32
    %109 = tpu.dynamic_rotate %92 by %c255_i32_45 dim 1 : vector<8x256xf32>, i32 -> vector<8x256xf32>
    %c5_46 = arith.constant 5 : index
    %c0_47 = arith.constant 0 : index
    %110 = vector.load %arg4[%c5_46, %c0_47] : memref<9x256xf32, #tpu.memory_space<vmem>>, vector<1x256xf32>
    %111 = vector.broadcast %110 : vector<1x256xf32> to vector<8x256xf32>
    %112 = arith.mulf %109, %111 : vector<8x256xf32>
    %c241_i32_48 = arith.constant 241 : i32
    %113 = tpu.dynamic_rotate %92 by %c241_i32_48 dim 1 : vector<8x256xf32>, i32 -> vector<8x256xf32>
    %c6_49 = arith.constant 6 : index
    %c0_50 = arith.constant 0 : index
    %114 = vector.load %arg4[%c6_49, %c0_50] : memref<9x256xf32, #tpu.memory_space<vmem>>, vector<1x256xf32>
    %115 = vector.broadcast %114 : vector<1x256xf32> to vector<8x256xf32>
    %116 = arith.mulf %113, %115 : vector<8x256xf32>
    %c240_i32_51 = arith.constant 240 : i32
    %117 = tpu.dynamic_rotate %92 by %c240_i32_51 dim 1 : vector<8x256xf32>, i32 -> vector<8x256xf32>
    %c7_52 = arith.constant 7 : index
    %c0_53 = arith.constant 0 : index
    %118 = vector.load %arg4[%c7_52, %c0_53] : memref<9x256xf32, #tpu.memory_space<vmem>>, vector<1x256xf32>
    %119 = vector.broadcast %118 : vector<1x256xf32> to vector<8x256xf32>
    %120 = arith.mulf %117, %119 : vector<8x256xf32>
    %c239_i32_54 = arith.constant 239 : i32
    %121 = tpu.dynamic_rotate %92 by %c239_i32_54 dim 1 : vector<8x256xf32>, i32 -> vector<8x256xf32>
    %c8_55 = arith.constant 8 : index
    %c0_56 = arith.constant 0 : index
    %122 = vector.load %arg4[%c8_55, %c0_56] : memref<9x256xf32, #tpu.memory_space<vmem>>, vector<1x256xf32>
    %123 = vector.broadcast %122 : vector<1x256xf32> to vector<8x256xf32>
    %124 = arith.mulf %121, %123 : vector<8x256xf32>
    %125 = tpu.concatenate %96, %100, %104, %108, %92, %112, %116, %120, %124 in 0 : vector<8x256xf32>, vector<8x256xf32>, vector<8x256xf32>, vector<8x256xf32>, vector<8x256xf32>, vector<8x256xf32>, vector<8x256xf32>, vector<8x256xf32>, vector<8x256xf32> -> vector<72x256xf32>
    %126 = arith.truncf %125 : vector<72x256xf32> to vector<72x256xbf16>
    %c1_57 = arith.constant 1 : index
    %c0_58 = arith.constant 0 : index
    %c0_59 = arith.constant 0 : index
    %127 = vector.load %arg5[%c1_57, %c0_58, %c0_59] : memref<6x64x288xbf16, #tpu.memory_space<vmem>>, vector<1x64x288xbf16>
    %128 = vector.shape_cast %127 : vector<1x64x288xbf16> to vector<64x288xbf16>
    %129 = vector.extract_strided_slice %128 {offsets = [0, 0], sizes = [16, 72], strides = [1, 1]} : vector<64x288xbf16> to vector<16x72xbf16>
    %cst_60 = arith.constant dense<0.000000e+00> : vector<16x256xf32>
    %130 = tpu.matmul %129, %126, %cst_60 {dimension_numbers = #tpu.dot_dimension_numbers<[1], [0], [0], [1], [0, 0, 1, 1], [], []>} : vector<16x72xbf16>, vector<72x256xbf16>, vector<16x256xf32> -> vector<16x256xf32>
    %cst_61 = arith.constant dense<0.000000e+00> : vector<16xf32>
    %131 = vector.multi_reduction <add>, %130, %cst_61 [1] : vector<16x256xf32> to vector<16xf32>
    %132 = vector.shape_cast %131 : vector<16xf32> to vector<16x1xf32>
    %133 = arith.mulf %130, %130 : vector<16x256xf32>
    %cst_62 = arith.constant dense<0.000000e+00> : vector<16xf32>
    %134 = vector.multi_reduction <add>, %133, %cst_62 [1] : vector<16x256xf32> to vector<16xf32>
    %135 = vector.shape_cast %134 : vector<16xf32> to vector<16x1xf32>
    %cst_63 = arith.constant 3.906250e-03 : f32
    %136 = vector.broadcast %cst_63 : f32 to vector<16x1xf32>
    %137 = arith.mulf %132, %136 : vector<16x1xf32>
    %cst_64 = arith.constant 3.906250e-03 : f32
    %138 = vector.broadcast %cst_64 : f32 to vector<16x1xf32>
    %139 = arith.mulf %135, %138 : vector<16x1xf32>
    %140 = arith.mulf %137, %137 : vector<16x1xf32>
    %141 = arith.subf %139, %140 : vector<16x1xf32>
    %cst_65 = arith.constant 0.000000e+00 : f32
    %142 = vector.broadcast %cst_65 : f32 to vector<16x1xf32>
    %143 = arith.maximumf %141, %142 : vector<16x1xf32>
    %c1_66 = arith.constant 1 : index
    %c0_67 = arith.constant 0 : index
    %c0_68 = arith.constant 0 : index
    %c0_69 = arith.constant 0 : index
    %144 = vector.load %arg6[%c1_66, %c0_67, %c0_68, %c0_69] : memref<6x2x64x1xf32, #tpu.memory_space<vmem>>, vector<1x2x64x1xf32>
    %145 = vector.shape_cast %144 : vector<1x2x64x1xf32> to vector<2x64x1xf32>
    %146 = vector.broadcast %137 : vector<16x1xf32> to vector<16x256xf32>
    %147 = arith.subf %130, %146 : vector<16x256xf32>
    %cst_70 = arith.constant 9.99999974E-6 : f32
    %148 = vector.broadcast %cst_70 : f32 to vector<16x1xf32>
    %149 = arith.addf %143, %148 : vector<16x1xf32>
    %150 = math.rsqrt %149 : vector<16x1xf32>
    %151 = vector.broadcast %150 : vector<16x1xf32> to vector<16x256xf32>
    %152 = arith.mulf %147, %151 : vector<16x256xf32>
    %153 = vector.extract_strided_slice %145 {offsets = [0, 0, 0], sizes = [1, 16, 1], strides = [1, 1, 1]} : vector<2x64x1xf32> to vector<1x16x1xf32>
    %154 = vector.shape_cast %153 : vector<1x16x1xf32> to vector<16x1xf32>
    %155 = vector.broadcast %154 : vector<16x1xf32> to vector<16x256xf32>
    %156 = arith.mulf %152, %155 : vector<16x256xf32>
    %157 = vector.extract_strided_slice %145 {offsets = [1, 0, 0], sizes = [1, 16, 1], strides = [1, 1, 1]} : vector<2x64x1xf32> to vector<1x16x1xf32>
    %158 = vector.shape_cast %157 : vector<1x16x1xf32> to vector<16x1xf32>
    %159 = vector.broadcast %158 : vector<16x1xf32> to vector<16x256xf32>
    %160 = arith.addf %156, %159 : vector<16x256xf32>
    %161 = vector.extract_strided_slice %160 {offsets = [0, 0], sizes = [8, 256], strides = [1, 1]} : vector<16x256xf32> to vector<8x256xf32>
    %162 = vector.extract_strided_slice %160 {offsets = [8, 0], sizes = [8, 256], strides = [1, 1]} : vector<16x256xf32> to vector<8x256xf32>
    %163 = arith.negf %162 : vector<8x256xf32>
    %164 = math.exp %163 : vector<8x256xf32>
    %cst_71 = arith.constant 1.000000e+00 : f32
    %165 = vector.broadcast %cst_71 : f32 to vector<8x256xf32>
    %166 = arith.addf %165, %164 : vector<8x256xf32>
    %167 = arith.divf %165, %166 : vector<8x256xf32>
    %168 = arith.mulf %161, %167 : vector<8x256xf32>
    %c0_72 = arith.constant 0 : index
    %c0_73 = arith.constant 0 : index
    %c0_74 = arith.constant 0 : index
    %169 = vector.load %arg7[%c0_72, %c0_73, %c0_74] : memref<2x16x8xf32, #tpu.memory_space<vmem>>, vector<1x16x8xf32>
    %170 = vector.shape_cast %169 : vector<1x16x8xf32> to vector<16x8xf32>
    %171 = vector.extract_strided_slice %170 {offsets = [0, 0], sizes = [8, 8], strides = [1, 1]} : vector<16x8xf32> to vector<8x8xf32>
    %c0_75 = arith.constant 0 : index
    %c0_76 = arith.constant 0 : index
    %c0_77 = arith.constant 0 : index
    %172 = vector.load %arg8[%c0_75, %c0_76, %c0_77] : memref<2x16x1xf32, #tpu.memory_space<vmem>>, vector<1x16x1xf32>
    %173 = vector.shape_cast %172 : vector<1x16x1xf32> to vector<16x1xf32>
    %174 = vector.extract_strided_slice %173 {offsets = [0, 0], sizes = [8, 1], strides = [1, 1]} : vector<16x1xf32> to vector<8x1xf32>
    %175 = vector.broadcast %21 : vector<1x8xf32> to vector<8x8xf32>
    %176 = arith.mulf %171, %175 : vector<8x8xf32>
    %cst_78 = arith.constant dense<0.000000e+00> : vector<8xf32>
    %177 = vector.multi_reduction <add>, %176, %cst_78 [1] : vector<8x8xf32> to vector<8xf32>
    %178 = vector.shape_cast %177 : vector<8xf32> to vector<8x1xf32>
    %179 = arith.addf %178, %174 : vector<8x1xf32>
    %180 = vector.broadcast %179 : vector<8x1xf32> to vector<8x256xf32>
    %181 = arith.addf %168, %180 : vector<8x256xf32>
    %182 = vector.broadcast %1 : vector<1x256xf32> to vector<8x256xf32>
    %183 = arith.mulf %181, %182 : vector<8x256xf32>
    %c17_i32_79 = arith.constant 17 : i32
    %184 = tpu.dynamic_rotate %183 by %c17_i32_79 dim 1 : vector<8x256xf32>, i32 -> vector<8x256xf32>
    %c0_80 = arith.constant 0 : index
    %c0_81 = arith.constant 0 : index
    %185 = vector.load %arg4[%c0_80, %c0_81] : memref<9x256xf32, #tpu.memory_space<vmem>>, vector<1x256xf32>
    %186 = vector.broadcast %185 : vector<1x256xf32> to vector<8x256xf32>
    %187 = arith.mulf %184, %186 : vector<8x256xf32>
    %c16_i32_82 = arith.constant 16 : i32
    %188 = tpu.dynamic_rotate %183 by %c16_i32_82 dim 1 : vector<8x256xf32>, i32 -> vector<8x256xf32>
    %c1_83 = arith.constant 1 : index
    %c0_84 = arith.constant 0 : index
    %189 = vector.load %arg4[%c1_83, %c0_84] : memref<9x256xf32, #tpu.memory_space<vmem>>, vector<1x256xf32>
    %190 = vector.broadcast %189 : vector<1x256xf32> to vector<8x256xf32>
    %191 = arith.mulf %188, %190 : vector<8x256xf32>
    %c15_i32_85 = arith.constant 15 : i32
    %192 = tpu.dynamic_rotate %183 by %c15_i32_85 dim 1 : vector<8x256xf32>, i32 -> vector<8x256xf32>
    %c2_86 = arith.constant 2 : index
    %c0_87 = arith.constant 0 : index
    %193 = vector.load %arg4[%c2_86, %c0_87] : memref<9x256xf32, #tpu.memory_space<vmem>>, vector<1x256xf32>
    %194 = vector.broadcast %193 : vector<1x256xf32> to vector<8x256xf32>
    %195 = arith.mulf %192, %194 : vector<8x256xf32>
    %c1_i32_88 = arith.constant 1 : i32
    %196 = tpu.dynamic_rotate %183 by %c1_i32_88 dim 1 : vector<8x256xf32>, i32 -> vector<8x256xf32>
    %c3_89 = arith.constant 3 : index
    %c0_90 = arith.constant 0 : index
    %197 = vector.load %arg4[%c3_89, %c0_90] : memref<9x256xf32, #tpu.memory_space<vmem>>, vector<1x256xf32>
    %198 = vector.broadcast %197 : vector<1x256xf32> to vector<8x256xf32>
    %199 = arith.mulf %196, %198 : vector<8x256xf32>
    %c255_i32_91 = arith.constant 255 : i32
    %200 = tpu.dynamic_rotate %183 by %c255_i32_91 dim 1 : vector<8x256xf32>, i32 -> vector<8x256xf32>
    %c5_92 = arith.constant 5 : index
    %c0_93 = arith.constant 0 : index
    %201 = vector.load %arg4[%c5_92, %c0_93] : memref<9x256xf32, #tpu.memory_space<vmem>>, vector<1x256xf32>
    %202 = vector.broadcast %201 : vector<1x256xf32> to vector<8x256xf32>
    %203 = arith.mulf %200, %202 : vector<8x256xf32>
    %c241_i32_94 = arith.constant 241 : i32
    %204 = tpu.dynamic_rotate %183 by %c241_i32_94 dim 1 : vector<8x256xf32>, i32 -> vector<8x256xf32>
    %c6_95 = arith.constant 6 : index
    %c0_96 = arith.constant 0 : index
    %205 = vector.load %arg4[%c6_95, %c0_96] : memref<9x256xf32, #tpu.memory_space<vmem>>, vector<1x256xf32>
    %206 = vector.broadcast %205 : vector<1x256xf32> to vector<8x256xf32>
    %207 = arith.mulf %204, %206 : vector<8x256xf32>
    %c240_i32_97 = arith.constant 240 : i32
    %208 = tpu.dynamic_rotate %183 by %c240_i32_97 dim 1 : vector<8x256xf32>, i32 -> vector<8x256xf32>
    %c7_98 = arith.constant 7 : index
    %c0_99 = arith.constant 0 : index
    %209 = vector.load %arg4[%c7_98, %c0_99] : memref<9x256xf32, #tpu.memory_space<vmem>>, vector<1x256xf32>
    %210 = vector.broadcast %209 : vector<1x256xf32> to vector<8x256xf32>
    %211 = arith.mulf %208, %210 : vector<8x256xf32>
    %c239_i32_100 = arith.constant 239 : i32
    %212 = tpu.dynamic_rotate %183 by %c239_i32_100 dim 1 : vector<8x256xf32>, i32 -> vector<8x256xf32>
    %c8_101 = arith.constant 8 : index
    %c0_102 = arith.constant 0 : index
    %213 = vector.load %arg4[%c8_101, %c0_102] : memref<9x256xf32, #tpu.memory_space<vmem>>, vector<1x256xf32>
    %214 = vector.broadcast %213 : vector<1x256xf32> to vector<8x256xf32>
    %215 = arith.mulf %212, %214 : vector<8x256xf32>
    %216 = tpu.concatenate %187, %191, %195, %199, %183, %203, %207, %211, %215 in 0 : vector<8x256xf32>, vector<8x256xf32>, vector<8x256xf32>, vector<8x256xf32>, vector<8x256xf32>, vector<8x256xf32>, vector<8x256xf32>, vector<8x256xf32>, vector<8x256xf32> -> vector<72x256xf32>
    %217 = arith.truncf %216 : vector<72x256xf32> to vector<72x256xbf16>
    %c2_103 = arith.constant 2 : index
    %c0_104 = arith.constant 0 : index
    %c0_105 = arith.constant 0 : index
    %218 = vector.load %arg5[%c2_103, %c0_104, %c0_105] : memref<6x64x288xbf16, #tpu.memory_space<vmem>>, vector<1x64x288xbf16>
    %219 = vector.shape_cast %218 : vector<1x64x288xbf16> to vector<64x288xbf16>
    %220 = vector.extract_strided_slice %219 {offsets = [0, 0], sizes = [32, 72], strides = [1, 1]} : vector<64x288xbf16> to vector<32x72xbf16>
    %cst_106 = arith.constant dense<0.000000e+00> : vector<32x256xf32>
    %221 = tpu.matmul %220, %217, %cst_106 {dimension_numbers = #tpu.dot_dimension_numbers<[1], [0], [0], [1], [0, 0, 1, 1], [], []>} : vector<32x72xbf16>, vector<72x256xbf16>, vector<32x256xf32> -> vector<32x256xf32>
    %cst_107 = arith.constant dense<0.000000e+00> : vector<32xf32>
    %222 = vector.multi_reduction <add>, %221, %cst_107 [1] : vector<32x256xf32> to vector<32xf32>
    %223 = vector.shape_cast %222 : vector<32xf32> to vector<32x1xf32>
    %224 = arith.mulf %221, %221 : vector<32x256xf32>
    %cst_108 = arith.constant dense<0.000000e+00> : vector<32xf32>
    %225 = vector.multi_reduction <add>, %224, %cst_108 [1] : vector<32x256xf32> to vector<32xf32>
    %226 = vector.shape_cast %225 : vector<32xf32> to vector<32x1xf32>
    %cst_109 = arith.constant 3.906250e-03 : f32
    %227 = vector.broadcast %cst_109 : f32 to vector<32x1xf32>
    %228 = arith.mulf %223, %227 : vector<32x1xf32>
    %cst_110 = arith.constant 3.906250e-03 : f32
    %229 = vector.broadcast %cst_110 : f32 to vector<32x1xf32>
    %230 = arith.mulf %226, %229 : vector<32x1xf32>
    %231 = arith.mulf %228, %228 : vector<32x1xf32>
    %232 = arith.subf %230, %231 : vector<32x1xf32>
    %cst_111 = arith.constant 0.000000e+00 : f32
    %233 = vector.broadcast %cst_111 : f32 to vector<32x1xf32>
    %234 = arith.maximumf %232, %233 : vector<32x1xf32>
    %c2_112 = arith.constant 2 : index
    %c0_113 = arith.constant 0 : index
    %c0_114 = arith.constant 0 : index
    %c0_115 = arith.constant 0 : index
    %235 = vector.load %arg6[%c2_112, %c0_113, %c0_114, %c0_115] : memref<6x2x64x1xf32, #tpu.memory_space<vmem>>, vector<1x2x64x1xf32>
    %236 = vector.shape_cast %235 : vector<1x2x64x1xf32> to vector<2x64x1xf32>
    %237 = vector.broadcast %228 : vector<32x1xf32> to vector<32x256xf32>
    %238 = arith.subf %221, %237 : vector<32x256xf32>
    %cst_116 = arith.constant 9.99999974E-6 : f32
    %239 = vector.broadcast %cst_116 : f32 to vector<32x1xf32>
    %240 = arith.addf %234, %239 : vector<32x1xf32>
    %241 = math.rsqrt %240 : vector<32x1xf32>
    %242 = vector.broadcast %241 : vector<32x1xf32> to vector<32x256xf32>
    %243 = arith.mulf %238, %242 : vector<32x256xf32>
    %244 = vector.extract_strided_slice %236 {offsets = [0, 0, 0], sizes = [1, 32, 1], strides = [1, 1, 1]} : vector<2x64x1xf32> to vector<1x32x1xf32>
    %245 = vector.shape_cast %244 : vector<1x32x1xf32> to vector<32x1xf32>
    %246 = vector.broadcast %245 : vector<32x1xf32> to vector<32x256xf32>
    %247 = arith.mulf %243, %246 : vector<32x256xf32>
    %248 = vector.extract_strided_slice %236 {offsets = [1, 0, 0], sizes = [1, 32, 1], strides = [1, 1, 1]} : vector<2x64x1xf32> to vector<1x32x1xf32>
    %249 = vector.shape_cast %248 : vector<1x32x1xf32> to vector<32x1xf32>
    %250 = vector.broadcast %249 : vector<32x1xf32> to vector<32x256xf32>
    %251 = arith.addf %247, %250 : vector<32x256xf32>
    %252 = vector.extract_strided_slice %251 {offsets = [0, 0], sizes = [16, 256], strides = [1, 1]} : vector<32x256xf32> to vector<16x256xf32>
    %253 = vector.extract_strided_slice %251 {offsets = [16, 0], sizes = [16, 256], strides = [1, 1]} : vector<32x256xf32> to vector<16x256xf32>
    %254 = arith.negf %253 : vector<16x256xf32>
    %255 = math.exp %254 : vector<16x256xf32>
    %cst_117 = arith.constant 1.000000e+00 : f32
    %256 = vector.broadcast %cst_117 : f32 to vector<16x256xf32>
    %257 = arith.addf %256, %255 : vector<16x256xf32>
    %258 = arith.divf %256, %257 : vector<16x256xf32>
    %259 = arith.mulf %252, %258 : vector<16x256xf32>
    %260 = vector.broadcast %1 : vector<1x256xf32> to vector<16x256xf32>
    %261 = arith.mulf %259, %260 : vector<16x256xf32>
    %c17_i32_118 = arith.constant 17 : i32
    %262 = tpu.dynamic_rotate %261 by %c17_i32_118 dim 1 : vector<16x256xf32>, i32 -> vector<16x256xf32>
    %c0_119 = arith.constant 0 : index
    %c0_120 = arith.constant 0 : index
    %263 = vector.load %arg4[%c0_119, %c0_120] : memref<9x256xf32, #tpu.memory_space<vmem>>, vector<1x256xf32>
    %264 = vector.broadcast %263 : vector<1x256xf32> to vector<16x256xf32>
    %265 = arith.mulf %262, %264 : vector<16x256xf32>
    %c16_i32_121 = arith.constant 16 : i32
    %266 = tpu.dynamic_rotate %261 by %c16_i32_121 dim 1 : vector<16x256xf32>, i32 -> vector<16x256xf32>
    %c1_122 = arith.constant 1 : index
    %c0_123 = arith.constant 0 : index
    %267 = vector.load %arg4[%c1_122, %c0_123] : memref<9x256xf32, #tpu.memory_space<vmem>>, vector<1x256xf32>
    %268 = vector.broadcast %267 : vector<1x256xf32> to vector<16x256xf32>
    %269 = arith.mulf %266, %268 : vector<16x256xf32>
    %c15_i32_124 = arith.constant 15 : i32
    %270 = tpu.dynamic_rotate %261 by %c15_i32_124 dim 1 : vector<16x256xf32>, i32 -> vector<16x256xf32>
    %c2_125 = arith.constant 2 : index
    %c0_126 = arith.constant 0 : index
    %271 = vector.load %arg4[%c2_125, %c0_126] : memref<9x256xf32, #tpu.memory_space<vmem>>, vector<1x256xf32>
    %272 = vector.broadcast %271 : vector<1x256xf32> to vector<16x256xf32>
    %273 = arith.mulf %270, %272 : vector<16x256xf32>
    %c1_i32_127 = arith.constant 1 : i32
    %274 = tpu.dynamic_rotate %261 by %c1_i32_127 dim 1 : vector<16x256xf32>, i32 -> vector<16x256xf32>
    %c3_128 = arith.constant 3 : index
    %c0_129 = arith.constant 0 : index
    %275 = vector.load %arg4[%c3_128, %c0_129] : memref<9x256xf32, #tpu.memory_space<vmem>>, vector<1x256xf32>
    %276 = vector.broadcast %275 : vector<1x256xf32> to vector<16x256xf32>
    %277 = arith.mulf %274, %276 : vector<16x256xf32>
    %c255_i32_130 = arith.constant 255 : i32
    %278 = tpu.dynamic_rotate %261 by %c255_i32_130 dim 1 : vector<16x256xf32>, i32 -> vector<16x256xf32>
    %c5_131 = arith.constant 5 : index
    %c0_132 = arith.constant 0 : index
    %279 = vector.load %arg4[%c5_131, %c0_132] : memref<9x256xf32, #tpu.memory_space<vmem>>, vector<1x256xf32>
    %280 = vector.broadcast %279 : vector<1x256xf32> to vector<16x256xf32>
    %281 = arith.mulf %278, %280 : vector<16x256xf32>
    %c241_i32_133 = arith.constant 241 : i32
    %282 = tpu.dynamic_rotate %261 by %c241_i32_133 dim 1 : vector<16x256xf32>, i32 -> vector<16x256xf32>
    %c6_134 = arith.constant 6 : index
    %c0_135 = arith.constant 0 : index
    %283 = vector.load %arg4[%c6_134, %c0_135] : memref<9x256xf32, #tpu.memory_space<vmem>>, vector<1x256xf32>
    %284 = vector.broadcast %283 : vector<1x256xf32> to vector<16x256xf32>
    %285 = arith.mulf %282, %284 : vector<16x256xf32>
    %c240_i32_136 = arith.constant 240 : i32
    %286 = tpu.dynamic_rotate %261 by %c240_i32_136 dim 1 : vector<16x256xf32>, i32 -> vector<16x256xf32>
    %c7_137 = arith.constant 7 : index
    %c0_138 = arith.constant 0 : index
    %287 = vector.load %arg4[%c7_137, %c0_138] : memref<9x256xf32, #tpu.memory_space<vmem>>, vector<1x256xf32>
    %288 = vector.broadcast %287 : vector<1x256xf32> to vector<16x256xf32>
    %289 = arith.mulf %286, %288 : vector<16x256xf32>
    %c239_i32_139 = arith.constant 239 : i32
    %290 = tpu.dynamic_rotate %261 by %c239_i32_139 dim 1 : vector<16x256xf32>, i32 -> vector<16x256xf32>
    %c8_140 = arith.constant 8 : index
    %c0_141 = arith.constant 0 : index
    %291 = vector.load %arg4[%c8_140, %c0_141] : memref<9x256xf32, #tpu.memory_space<vmem>>, vector<1x256xf32>
    %292 = vector.broadcast %291 : vector<1x256xf32> to vector<16x256xf32>
    %293 = arith.mulf %290, %292 : vector<16x256xf32>
    %294 = tpu.concatenate %265, %269, %273, %277, %261, %281, %285, %289, %293 in 0 : vector<16x256xf32>, vector<16x256xf32>, vector<16x256xf32>, vector<16x256xf32>, vector<16x256xf32>, vector<16x256xf32>, vector<16x256xf32>, vector<16x256xf32>, vector<16x256xf32> -> vector<144x256xf32>
    %295 = arith.truncf %294 : vector<144x256xf32> to vector<144x256xbf16>
    %c3_142 = arith.constant 3 : index
    %c0_143 = arith.constant 0 : index
    %c0_144 = arith.constant 0 : index
    %296 = vector.load %arg5[%c3_142, %c0_143, %c0_144] : memref<6x64x288xbf16, #tpu.memory_space<vmem>>, vector<1x64x288xbf16>
    %297 = vector.shape_cast %296 : vector<1x64x288xbf16> to vector<64x288xbf16>
    %298 = vector.extract_strided_slice %297 {offsets = [0, 0], sizes = [32, 144], strides = [1, 1]} : vector<64x288xbf16> to vector<32x144xbf16>
    %cst_145 = arith.constant dense<0.000000e+00> : vector<32x256xf32>
    %299 = tpu.matmul %298, %295, %cst_145 {dimension_numbers = #tpu.dot_dimension_numbers<[1], [0], [0], [1], [0, 0, 1, 1], [], []>} : vector<32x144xbf16>, vector<144x256xbf16>, vector<32x256xf32> -> vector<32x256xf32>
    %cst_146 = arith.constant dense<0.000000e+00> : vector<32xf32>
    %300 = vector.multi_reduction <add>, %299, %cst_146 [1] : vector<32x256xf32> to vector<32xf32>
    %301 = vector.shape_cast %300 : vector<32xf32> to vector<32x1xf32>
    %302 = arith.mulf %299, %299 : vector<32x256xf32>
    %cst_147 = arith.constant dense<0.000000e+00> : vector<32xf32>
    %303 = vector.multi_reduction <add>, %302, %cst_147 [1] : vector<32x256xf32> to vector<32xf32>
    %304 = vector.shape_cast %303 : vector<32xf32> to vector<32x1xf32>
    %cst_148 = arith.constant 3.906250e-03 : f32
    %305 = vector.broadcast %cst_148 : f32 to vector<32x1xf32>
    %306 = arith.mulf %301, %305 : vector<32x1xf32>
    %cst_149 = arith.constant 3.906250e-03 : f32
    %307 = vector.broadcast %cst_149 : f32 to vector<32x1xf32>
    %308 = arith.mulf %304, %307 : vector<32x1xf32>
    %309 = arith.mulf %306, %306 : vector<32x1xf32>
    %310 = arith.subf %308, %309 : vector<32x1xf32>
    %cst_150 = arith.constant 0.000000e+00 : f32
    %311 = vector.broadcast %cst_150 : f32 to vector<32x1xf32>
    %312 = arith.maximumf %310, %311 : vector<32x1xf32>
    %c3_151 = arith.constant 3 : index
    %c0_152 = arith.constant 0 : index
    %c0_153 = arith.constant 0 : index
    %c0_154 = arith.constant 0 : index
    %313 = vector.load %arg6[%c3_151, %c0_152, %c0_153, %c0_154] : memref<6x2x64x1xf32, #tpu.memory_space<vmem>>, vector<1x2x64x1xf32>
    %314 = vector.shape_cast %313 : vector<1x2x64x1xf32> to vector<2x64x1xf32>
    %315 = vector.broadcast %306 : vector<32x1xf32> to vector<32x256xf32>
    %316 = arith.subf %299, %315 : vector<32x256xf32>
    %cst_155 = arith.constant 9.99999974E-6 : f32
    %317 = vector.broadcast %cst_155 : f32 to vector<32x1xf32>
    %318 = arith.addf %312, %317 : vector<32x1xf32>
    %319 = math.rsqrt %318 : vector<32x1xf32>
    %320 = vector.broadcast %319 : vector<32x1xf32> to vector<32x256xf32>
    %321 = arith.mulf %316, %320 : vector<32x256xf32>
    %322 = vector.extract_strided_slice %314 {offsets = [0, 0, 0], sizes = [1, 32, 1], strides = [1, 1, 1]} : vector<2x64x1xf32> to vector<1x32x1xf32>
    %323 = vector.shape_cast %322 : vector<1x32x1xf32> to vector<32x1xf32>
    %324 = vector.broadcast %323 : vector<32x1xf32> to vector<32x256xf32>
    %325 = arith.mulf %321, %324 : vector<32x256xf32>
    %326 = vector.extract_strided_slice %314 {offsets = [1, 0, 0], sizes = [1, 32, 1], strides = [1, 1, 1]} : vector<2x64x1xf32> to vector<1x32x1xf32>
    %327 = vector.shape_cast %326 : vector<1x32x1xf32> to vector<32x1xf32>
    %328 = vector.broadcast %327 : vector<32x1xf32> to vector<32x256xf32>
    %329 = arith.addf %325, %328 : vector<32x256xf32>
    %330 = vector.extract_strided_slice %329 {offsets = [0, 0], sizes = [16, 256], strides = [1, 1]} : vector<32x256xf32> to vector<16x256xf32>
    %331 = vector.extract_strided_slice %329 {offsets = [16, 0], sizes = [16, 256], strides = [1, 1]} : vector<32x256xf32> to vector<16x256xf32>
    %332 = arith.negf %331 : vector<16x256xf32>
    %333 = math.exp %332 : vector<16x256xf32>
    %cst_156 = arith.constant 1.000000e+00 : f32
    %334 = vector.broadcast %cst_156 : f32 to vector<16x256xf32>
    %335 = arith.addf %334, %333 : vector<16x256xf32>
    %336 = arith.divf %334, %335 : vector<16x256xf32>
    %337 = arith.mulf %330, %336 : vector<16x256xf32>
    %c1_157 = arith.constant 1 : index
    %c0_158 = arith.constant 0 : index
    %c0_159 = arith.constant 0 : index
    %338 = vector.load %arg7[%c1_157, %c0_158, %c0_159] : memref<2x16x8xf32, #tpu.memory_space<vmem>>, vector<1x16x8xf32>
    %339 = vector.shape_cast %338 : vector<1x16x8xf32> to vector<16x8xf32>
    %c1_160 = arith.constant 1 : index
    %c0_161 = arith.constant 0 : index
    %c0_162 = arith.constant 0 : index
    %340 = vector.load %arg8[%c1_160, %c0_161, %c0_162] : memref<2x16x1xf32, #tpu.memory_space<vmem>>, vector<1x16x1xf32>
    %341 = vector.shape_cast %340 : vector<1x16x1xf32> to vector<16x1xf32>
    %342 = vector.broadcast %21 : vector<1x8xf32> to vector<16x8xf32>
    %343 = arith.mulf %339, %342 : vector<16x8xf32>
    %cst_163 = arith.constant dense<0.000000e+00> : vector<16xf32>
    %344 = vector.multi_reduction <add>, %343, %cst_163 [1] : vector<16x8xf32> to vector<16xf32>
    %345 = vector.shape_cast %344 : vector<16xf32> to vector<16x1xf32>
    %346 = arith.addf %345, %341 : vector<16x1xf32>
    %347 = vector.broadcast %346 : vector<16x1xf32> to vector<16x256xf32>
    %348 = arith.addf %337, %347 : vector<16x256xf32>
    %349 = vector.broadcast %1 : vector<1x256xf32> to vector<16x256xf32>
    %350 = arith.mulf %348, %349 : vector<16x256xf32>
    %c17_i32_164 = arith.constant 17 : i32
    %351 = tpu.dynamic_rotate %350 by %c17_i32_164 dim 1 : vector<16x256xf32>, i32 -> vector<16x256xf32>
    %c0_165 = arith.constant 0 : index
    %c0_166 = arith.constant 0 : index
    %352 = vector.load %arg4[%c0_165, %c0_166] : memref<9x256xf32, #tpu.memory_space<vmem>>, vector<1x256xf32>
    %353 = vector.broadcast %352 : vector<1x256xf32> to vector<16x256xf32>
    %354 = arith.mulf %351, %353 : vector<16x256xf32>
    %c16_i32_167 = arith.constant 16 : i32
    %355 = tpu.dynamic_rotate %350 by %c16_i32_167 dim 1 : vector<16x256xf32>, i32 -> vector<16x256xf32>
    %c1_168 = arith.constant 1 : index
    %c0_169 = arith.constant 0 : index
    %356 = vector.load %arg4[%c1_168, %c0_169] : memref<9x256xf32, #tpu.memory_space<vmem>>, vector<1x256xf32>
    %357 = vector.broadcast %356 : vector<1x256xf32> to vector<16x256xf32>
    %358 = arith.mulf %355, %357 : vector<16x256xf32>
    %c15_i32_170 = arith.constant 15 : i32
    %359 = tpu.dynamic_rotate %350 by %c15_i32_170 dim 1 : vector<16x256xf32>, i32 -> vector<16x256xf32>
    %c2_171 = arith.constant 2 : index
    %c0_172 = arith.constant 0 : index
    %360 = vector.load %arg4[%c2_171, %c0_172] : memref<9x256xf32, #tpu.memory_space<vmem>>, vector<1x256xf32>
    %361 = vector.broadcast %360 : vector<1x256xf32> to vector<16x256xf32>
    %362 = arith.mulf %359, %361 : vector<16x256xf32>
    %c1_i32_173 = arith.constant 1 : i32
    %363 = tpu.dynamic_rotate %350 by %c1_i32_173 dim 1 : vector<16x256xf32>, i32 -> vector<16x256xf32>
    %c3_174 = arith.constant 3 : index
    %c0_175 = arith.constant 0 : index
    %364 = vector.load %arg4[%c3_174, %c0_175] : memref<9x256xf32, #tpu.memory_space<vmem>>, vector<1x256xf32>
    %365 = vector.broadcast %364 : vector<1x256xf32> to vector<16x256xf32>
    %366 = arith.mulf %363, %365 : vector<16x256xf32>
    %c255_i32_176 = arith.constant 255 : i32
    %367 = tpu.dynamic_rotate %350 by %c255_i32_176 dim 1 : vector<16x256xf32>, i32 -> vector<16x256xf32>
    %c5_177 = arith.constant 5 : index
    %c0_178 = arith.constant 0 : index
    %368 = vector.load %arg4[%c5_177, %c0_178] : memref<9x256xf32, #tpu.memory_space<vmem>>, vector<1x256xf32>
    %369 = vector.broadcast %368 : vector<1x256xf32> to vector<16x256xf32>
    %370 = arith.mulf %367, %369 : vector<16x256xf32>
    %c241_i32_179 = arith.constant 241 : i32
    %371 = tpu.dynamic_rotate %350 by %c241_i32_179 dim 1 : vector<16x256xf32>, i32 -> vector<16x256xf32>
    %c6_180 = arith.constant 6 : index
    %c0_181 = arith.constant 0 : index
    %372 = vector.load %arg4[%c6_180, %c0_181] : memref<9x256xf32, #tpu.memory_space<vmem>>, vector<1x256xf32>
    %373 = vector.broadcast %372 : vector<1x256xf32> to vector<16x256xf32>
    %374 = arith.mulf %371, %373 : vector<16x256xf32>
    %c240_i32_182 = arith.constant 240 : i32
    %375 = tpu.dynamic_rotate %350 by %c240_i32_182 dim 1 : vector<16x256xf32>, i32 -> vector<16x256xf32>
    %c7_183 = arith.constant 7 : index
    %c0_184 = arith.constant 0 : index
    %376 = vector.load %arg4[%c7_183, %c0_184] : memref<9x256xf32, #tpu.memory_space<vmem>>, vector<1x256xf32>
    %377 = vector.broadcast %376 : vector<1x256xf32> to vector<16x256xf32>
    %378 = arith.mulf %375, %377 : vector<16x256xf32>
    %c239_i32_185 = arith.constant 239 : i32
    %379 = tpu.dynamic_rotate %350 by %c239_i32_185 dim 1 : vector<16x256xf32>, i32 -> vector<16x256xf32>
    %c8_186 = arith.constant 8 : index
    %c0_187 = arith.constant 0 : index
    %380 = vector.load %arg4[%c8_186, %c0_187] : memref<9x256xf32, #tpu.memory_space<vmem>>, vector<1x256xf32>
    %381 = vector.broadcast %380 : vector<1x256xf32> to vector<16x256xf32>
    %382 = arith.mulf %379, %381 : vector<16x256xf32>
    %383 = tpu.concatenate %354, %358, %362, %366, %350, %370, %374, %378, %382 in 0 : vector<16x256xf32>, vector<16x256xf32>, vector<16x256xf32>, vector<16x256xf32>, vector<16x256xf32>, vector<16x256xf32>, vector<16x256xf32>, vector<16x256xf32>, vector<16x256xf32> -> vector<144x256xf32>
    %384 = arith.truncf %383 : vector<144x256xf32> to vector<144x256xbf16>
    %c4 = arith.constant 4 : index
    %c0_188 = arith.constant 0 : index
    %c0_189 = arith.constant 0 : index
    %385 = vector.load %arg5[%c4, %c0_188, %c0_189] : memref<6x64x288xbf16, #tpu.memory_space<vmem>>, vector<1x64x288xbf16>
    %386 = vector.shape_cast %385 : vector<1x64x288xbf16> to vector<64x288xbf16>
    %387 = vector.extract_strided_slice %386 {offsets = [0, 0], sizes = [64, 144], strides = [1, 1]} : vector<64x288xbf16> to vector<64x144xbf16>
    %cst_190 = arith.constant dense<0.000000e+00> : vector<64x256xf32>
    %388 = tpu.matmul %387, %384, %cst_190 {dimension_numbers = #tpu.dot_dimension_numbers<[1], [0], [0], [1], [0, 0, 1, 1], [], []>} : vector<64x144xbf16>, vector<144x256xbf16>, vector<64x256xf32> -> vector<64x256xf32>
    %cst_191 = arith.constant dense<0.000000e+00> : vector<64xf32>
    %389 = vector.multi_reduction <add>, %388, %cst_191 [1] : vector<64x256xf32> to vector<64xf32>
    %390 = vector.shape_cast %389 : vector<64xf32> to vector<64x1xf32>
    %391 = arith.mulf %388, %388 : vector<64x256xf32>
    %cst_192 = arith.constant dense<0.000000e+00> : vector<64xf32>
    %392 = vector.multi_reduction <add>, %391, %cst_192 [1] : vector<64x256xf32> to vector<64xf32>
    %393 = vector.shape_cast %392 : vector<64xf32> to vector<64x1xf32>
    %cst_193 = arith.constant 3.906250e-03 : f32
    %394 = vector.broadcast %cst_193 : f32 to vector<64x1xf32>
    %395 = arith.mulf %390, %394 : vector<64x1xf32>
    %cst_194 = arith.constant 3.906250e-03 : f32
    %396 = vector.broadcast %cst_194 : f32 to vector<64x1xf32>
    %397 = arith.mulf %393, %396 : vector<64x1xf32>
    %398 = arith.mulf %395, %395 : vector<64x1xf32>
    %399 = arith.subf %397, %398 : vector<64x1xf32>
    %cst_195 = arith.constant 0.000000e+00 : f32
    %400 = vector.broadcast %cst_195 : f32 to vector<64x1xf32>
    %401 = arith.maximumf %399, %400 : vector<64x1xf32>
    %c4_196 = arith.constant 4 : index
    %c0_197 = arith.constant 0 : index
    %c0_198 = arith.constant 0 : index
    %c0_199 = arith.constant 0 : index
    %402 = vector.load %arg6[%c4_196, %c0_197, %c0_198, %c0_199] : memref<6x2x64x1xf32, #tpu.memory_space<vmem>>, vector<1x2x64x1xf32>
    %403 = vector.shape_cast %402 : vector<1x2x64x1xf32> to vector<2x64x1xf32>
    %404 = vector.broadcast %395 : vector<64x1xf32> to vector<64x256xf32>
    %405 = arith.subf %388, %404 : vector<64x256xf32>
    %cst_200 = arith.constant 9.99999974E-6 : f32
    %406 = vector.broadcast %cst_200 : f32 to vector<64x1xf32>
    %407 = arith.addf %401, %406 : vector<64x1xf32>
    %408 = math.rsqrt %407 : vector<64x1xf32>
    %409 = vector.broadcast %408 : vector<64x1xf32> to vector<64x256xf32>
    %410 = arith.mulf %405, %409 : vector<64x256xf32>
    %411 = vector.extract_strided_slice %403 {offsets = [0, 0, 0], sizes = [1, 64, 1], strides = [1, 1, 1]} : vector<2x64x1xf32> to vector<1x64x1xf32>
    %412 = vector.shape_cast %411 : vector<1x64x1xf32> to vector<64x1xf32>
    %413 = vector.broadcast %412 : vector<64x1xf32> to vector<64x256xf32>
    %414 = arith.mulf %410, %413 : vector<64x256xf32>
    %415 = vector.extract_strided_slice %403 {offsets = [1, 0, 0], sizes = [1, 64, 1], strides = [1, 1, 1]} : vector<2x64x1xf32> to vector<1x64x1xf32>
    %416 = vector.shape_cast %415 : vector<1x64x1xf32> to vector<64x1xf32>
    %417 = vector.broadcast %416 : vector<64x1xf32> to vector<64x256xf32>
    %418 = arith.addf %414, %417 : vector<64x256xf32>
    %419 = vector.extract_strided_slice %418 {offsets = [0, 0], sizes = [32, 256], strides = [1, 1]} : vector<64x256xf32> to vector<32x256xf32>
    %420 = vector.extract_strided_slice %418 {offsets = [32, 0], sizes = [32, 256], strides = [1, 1]} : vector<64x256xf32> to vector<32x256xf32>
    %421 = arith.negf %420 : vector<32x256xf32>
    %422 = math.exp %421 : vector<32x256xf32>
    %cst_201 = arith.constant 1.000000e+00 : f32
    %423 = vector.broadcast %cst_201 : f32 to vector<32x256xf32>
    %424 = arith.addf %423, %422 : vector<32x256xf32>
    %425 = arith.divf %423, %424 : vector<32x256xf32>
    %426 = arith.mulf %419, %425 : vector<32x256xf32>
    %427 = vector.broadcast %1 : vector<1x256xf32> to vector<32x256xf32>
    %428 = arith.mulf %426, %427 : vector<32x256xf32>
    %c17_i32_202 = arith.constant 17 : i32
    %429 = tpu.dynamic_rotate %428 by %c17_i32_202 dim 1 : vector<32x256xf32>, i32 -> vector<32x256xf32>
    %c0_203 = arith.constant 0 : index
    %c0_204 = arith.constant 0 : index
    %430 = vector.load %arg4[%c0_203, %c0_204] : memref<9x256xf32, #tpu.memory_space<vmem>>, vector<1x256xf32>
    %431 = vector.broadcast %430 : vector<1x256xf32> to vector<32x256xf32>
    %432 = arith.mulf %429, %431 : vector<32x256xf32>
    %c16_i32_205 = arith.constant 16 : i32
    %433 = tpu.dynamic_rotate %428 by %c16_i32_205 dim 1 : vector<32x256xf32>, i32 -> vector<32x256xf32>
    %c1_206 = arith.constant 1 : index
    %c0_207 = arith.constant 0 : index
    %434 = vector.load %arg4[%c1_206, %c0_207] : memref<9x256xf32, #tpu.memory_space<vmem>>, vector<1x256xf32>
    %435 = vector.broadcast %434 : vector<1x256xf32> to vector<32x256xf32>
    %436 = arith.mulf %433, %435 : vector<32x256xf32>
    %c15_i32_208 = arith.constant 15 : i32
    %437 = tpu.dynamic_rotate %428 by %c15_i32_208 dim 1 : vector<32x256xf32>, i32 -> vector<32x256xf32>
    %c2_209 = arith.constant 2 : index
    %c0_210 = arith.constant 0 : index
    %438 = vector.load %arg4[%c2_209, %c0_210] : memref<9x256xf32, #tpu.memory_space<vmem>>, vector<1x256xf32>
    %439 = vector.broadcast %438 : vector<1x256xf32> to vector<32x256xf32>
    %440 = arith.mulf %437, %439 : vector<32x256xf32>
    %c1_i32_211 = arith.constant 1 : i32
    %441 = tpu.dynamic_rotate %428 by %c1_i32_211 dim 1 : vector<32x256xf32>, i32 -> vector<32x256xf32>
    %c3_212 = arith.constant 3 : index
    %c0_213 = arith.constant 0 : index
    %442 = vector.load %arg4[%c3_212, %c0_213] : memref<9x256xf32, #tpu.memory_space<vmem>>, vector<1x256xf32>
    %443 = vector.broadcast %442 : vector<1x256xf32> to vector<32x256xf32>
    %444 = arith.mulf %441, %443 : vector<32x256xf32>
    %c255_i32_214 = arith.constant 255 : i32
    %445 = tpu.dynamic_rotate %428 by %c255_i32_214 dim 1 : vector<32x256xf32>, i32 -> vector<32x256xf32>
    %c5_215 = arith.constant 5 : index
    %c0_216 = arith.constant 0 : index
    %446 = vector.load %arg4[%c5_215, %c0_216] : memref<9x256xf32, #tpu.memory_space<vmem>>, vector<1x256xf32>
    %447 = vector.broadcast %446 : vector<1x256xf32> to vector<32x256xf32>
    %448 = arith.mulf %445, %447 : vector<32x256xf32>
    %c241_i32_217 = arith.constant 241 : i32
    %449 = tpu.dynamic_rotate %428 by %c241_i32_217 dim 1 : vector<32x256xf32>, i32 -> vector<32x256xf32>
    %c6_218 = arith.constant 6 : index
    %c0_219 = arith.constant 0 : index
    %450 = vector.load %arg4[%c6_218, %c0_219] : memref<9x256xf32, #tpu.memory_space<vmem>>, vector<1x256xf32>
    %451 = vector.broadcast %450 : vector<1x256xf32> to vector<32x256xf32>
    %452 = arith.mulf %449, %451 : vector<32x256xf32>
    %c240_i32_220 = arith.constant 240 : i32
    %453 = tpu.dynamic_rotate %428 by %c240_i32_220 dim 1 : vector<32x256xf32>, i32 -> vector<32x256xf32>
    %c7_221 = arith.constant 7 : index
    %c0_222 = arith.constant 0 : index
    %454 = vector.load %arg4[%c7_221, %c0_222] : memref<9x256xf32, #tpu.memory_space<vmem>>, vector<1x256xf32>
    %455 = vector.broadcast %454 : vector<1x256xf32> to vector<32x256xf32>
    %456 = arith.mulf %453, %455 : vector<32x256xf32>
    %c239_i32_223 = arith.constant 239 : i32
    %457 = tpu.dynamic_rotate %428 by %c239_i32_223 dim 1 : vector<32x256xf32>, i32 -> vector<32x256xf32>
    %c8_224 = arith.constant 8 : index
    %c0_225 = arith.constant 0 : index
    %458 = vector.load %arg4[%c8_224, %c0_225] : memref<9x256xf32, #tpu.memory_space<vmem>>, vector<1x256xf32>
    %459 = vector.broadcast %458 : vector<1x256xf32> to vector<32x256xf32>
    %460 = arith.mulf %457, %459 : vector<32x256xf32>
    %461 = tpu.concatenate %432, %436, %440, %444, %428, %448, %452, %456, %460 in 0 : vector<32x256xf32>, vector<32x256xf32>, vector<32x256xf32>, vector<32x256xf32>, vector<32x256xf32>, vector<32x256xf32>, vector<32x256xf32>, vector<32x256xf32>, vector<32x256xf32> -> vector<288x256xf32>
    %462 = arith.truncf %461 : vector<288x256xf32> to vector<288x256xbf16>
    %c5_226 = arith.constant 5 : index
    %c0_227 = arith.constant 0 : index
    %c0_228 = arith.constant 0 : index
    %463 = vector.load %arg5[%c5_226, %c0_227, %c0_228] : memref<6x64x288xbf16, #tpu.memory_space<vmem>>, vector<1x64x288xbf16>
    %464 = vector.shape_cast %463 : vector<1x64x288xbf16> to vector<64x288xbf16>
    %cst_229 = arith.constant dense<0.000000e+00> : vector<64x256xf32>
    %465 = tpu.matmul %464, %462, %cst_229 {dimension_numbers = #tpu.dot_dimension_numbers<[1], [0], [0], [1], [0, 0, 1, 1], [], []>} : vector<64x288xbf16>, vector<288x256xbf16>, vector<64x256xf32> -> vector<64x256xf32>
    %cst_230 = arith.constant dense<0.000000e+00> : vector<64xf32>
    %466 = vector.multi_reduction <add>, %465, %cst_230 [1] : vector<64x256xf32> to vector<64xf32>
    %467 = vector.shape_cast %466 : vector<64xf32> to vector<64x1xf32>
    %468 = arith.mulf %465, %465 : vector<64x256xf32>
    %cst_231 = arith.constant dense<0.000000e+00> : vector<64xf32>
    %469 = vector.multi_reduction <add>, %468, %cst_231 [1] : vector<64x256xf32> to vector<64xf32>
    %470 = vector.shape_cast %469 : vector<64xf32> to vector<64x1xf32>
    %cst_232 = arith.constant 3.906250e-03 : f32
    %471 = vector.broadcast %cst_232 : f32 to vector<64x1xf32>
    %472 = arith.mulf %467, %471 : vector<64x1xf32>
    %cst_233 = arith.constant 3.906250e-03 : f32
    %473 = vector.broadcast %cst_233 : f32 to vector<64x1xf32>
    %474 = arith.mulf %470, %473 : vector<64x1xf32>
    %475 = arith.mulf %472, %472 : vector<64x1xf32>
    %476 = arith.subf %474, %475 : vector<64x1xf32>
    %cst_234 = arith.constant 0.000000e+00 : f32
    %477 = vector.broadcast %cst_234 : f32 to vector<64x1xf32>
    %478 = arith.maximumf %476, %477 : vector<64x1xf32>
    %c5_235 = arith.constant 5 : index
    %c0_236 = arith.constant 0 : index
    %c0_237 = arith.constant 0 : index
    %c0_238 = arith.constant 0 : index
    %479 = vector.load %arg6[%c5_235, %c0_236, %c0_237, %c0_238] : memref<6x2x64x1xf32, #tpu.memory_space<vmem>>, vector<1x2x64x1xf32>
    %480 = vector.shape_cast %479 : vector<1x2x64x1xf32> to vector<2x64x1xf32>
    %481 = vector.broadcast %472 : vector<64x1xf32> to vector<64x256xf32>
    %482 = arith.subf %465, %481 : vector<64x256xf32>
    %cst_239 = arith.constant 9.99999974E-6 : f32
    %483 = vector.broadcast %cst_239 : f32 to vector<64x1xf32>
    %484 = arith.addf %478, %483 : vector<64x1xf32>
    %485 = math.rsqrt %484 : vector<64x1xf32>
    %486 = vector.broadcast %485 : vector<64x1xf32> to vector<64x256xf32>
    %487 = arith.mulf %482, %486 : vector<64x256xf32>
    %488 = vector.extract_strided_slice %480 {offsets = [0, 0, 0], sizes = [1, 64, 1], strides = [1, 1, 1]} : vector<2x64x1xf32> to vector<1x64x1xf32>
    %489 = vector.shape_cast %488 : vector<1x64x1xf32> to vector<64x1xf32>
    %490 = vector.broadcast %489 : vector<64x1xf32> to vector<64x256xf32>
    %491 = arith.mulf %487, %490 : vector<64x256xf32>
    %492 = vector.extract_strided_slice %480 {offsets = [1, 0, 0], sizes = [1, 64, 1], strides = [1, 1, 1]} : vector<2x64x1xf32> to vector<1x64x1xf32>
    %493 = vector.shape_cast %492 : vector<1x64x1xf32> to vector<64x1xf32>
    %494 = vector.broadcast %493 : vector<64x1xf32> to vector<64x256xf32>
    %495 = arith.addf %491, %494 : vector<64x256xf32>
    %496 = vector.extract_strided_slice %495 {offsets = [0, 0], sizes = [32, 256], strides = [1, 1]} : vector<64x256xf32> to vector<32x256xf32>
    %497 = vector.extract_strided_slice %495 {offsets = [32, 0], sizes = [32, 256], strides = [1, 1]} : vector<64x256xf32> to vector<32x256xf32>
    %498 = arith.negf %497 : vector<32x256xf32>
    %499 = math.exp %498 : vector<32x256xf32>
    %cst_240 = arith.constant 1.000000e+00 : f32
    %500 = vector.broadcast %cst_240 : f32 to vector<32x256xf32>
    %501 = arith.addf %500, %499 : vector<32x256xf32>
    %502 = arith.divf %500, %501 : vector<32x256xf32>
    %503 = arith.mulf %496, %502 : vector<32x256xf32>
    %504 = vector.shape_cast %1 : vector<1x256xf32> to vector<1x1x256xf32>
    %cst_241 = arith.constant dense<0.000000e+00> : vector<1xf32>
    %505 = vector.multi_reduction <add>, %504, %cst_241 [1, 2] : vector<1x1x256xf32> to vector<1xf32>
    %506 = vector.shape_cast %505 : vector<1xf32> to vector<1x1x1xf32>
    %507 = vector.extract %506[0, 0, 0] : f32 from vector<1x1x1xf32>
    %508 = vector.broadcast %1 : vector<1x256xf32> to vector<32x256xf32>
    %509 = arith.mulf %503, %508 : vector<32x256xf32>
    %510 = tpu.transpose %509, [1, 0] : vector<32x256xf32> -> vector<256x32xf32>
    %511 = vector.shape_cast %1 : vector<1x256xf32> to vector<1x256xf32>
    %512 = vector.broadcast %511 : vector<1x256xf32> to vector<8x256xf32>
    %cst_242 = arith.constant dense<0.000000e+00> : vector<8x32xf32>
    %513 = tpu.matmul %512, %510, %cst_242 {dimension_numbers = #tpu.dot_dimension_numbers<[1], [0], [0], [1], [0, 0, 1, 1], [], []>} : vector<8x256xf32>, vector<256x32xf32>, vector<8x32xf32> -> vector<8x32xf32>
    %c0_243 = arith.constant 0 : index
    %c0_244 = arith.constant 0 : index
    %514 = vector.load %arg9[%c0_243, %c0_244] : memref<32x32xf32, #tpu.memory_space<vmem>>, vector<32x32xf32>
    %cst_245 = arith.constant dense<0.000000e+00> : vector<8x32xf32>
    %515 = tpu.matmul %513, %514, %cst_245 {dimension_numbers = #tpu.dot_dimension_numbers<[1], [0], [0], [1], [0, 0, 1, 1], [], []>} : vector<8x32xf32>, vector<32x32xf32>, vector<8x32xf32> -> vector<8x32xf32>
    %516 = vector.extract_strided_slice %515 {offsets = [0, 0], sizes = [1, 32], strides = [1, 1]} : vector<8x32xf32> to vector<1x32xf32>
    %c0_246 = arith.constant 0 : index
    %c0_247 = arith.constant 0 : index
    %517 = vector.load %arg10[%c0_246, %c0_247] : memref<1x32xf32, #tpu.memory_space<vmem>>, vector<1x32xf32>
    %518 = vector.broadcast %507 : f32 to vector<1x32xf32>
    %519 = arith.mulf %517, %518 : vector<1x32xf32>
    %520 = arith.addf %516, %519 : vector<1x32xf32>
    %cst_248 = arith.constant 1.600000e+01 : f32
    %521 = arith.mulf %507, %cst_248 : f32
    %522 = vector.broadcast %521 : f32 to vector<1x32xf32>
    %523 = arith.divf %520, %522 : vector<1x32xf32>
    %c0_249 = arith.constant 0 : index
    %c0_250 = arith.constant 0 : index
    %c0_251 = arith.constant 0 : index
    %524 = vector.load %arg11[%c0_249, %c0_250, %c0_251] : memref<1x1x32xf32, #tpu.memory_space<vmem>>, vector<1x1x32xf32>
    %525 = vector.shape_cast %524 : vector<1x1x32xf32> to vector<1x32xf32>
    %526 = vector.shape_cast %523 : vector<1x32xf32> to vector<1x1x32xf32>
    tpu.vector_store %arg11[%c0_249, %c0_250, %c0_251], %526 {strides = array<i32>} : memref<1x1x32xf32, #tpu.memory_space<vmem>>, vector<1x1x32xf32>,
    return
  }
  func.func @transform_0(%arg0: i32) -> (i32, i32, i32) {
    %c0_i32 = arith.constant 0 : i32
    %c0_i32_0 = arith.constant 0 : i32
    %c0_i32_1 = arith.constant 0 : i32
    return %arg0, %c0_i32, %c0_i32_0 : i32, i32, i32
  }
  func.func @transform_1(%arg0: i32) -> (i32, i32, i32) {
    %c0_i32 = arith.constant 0 : i32
    %c0_i32_0 = arith.constant 0 : i32
    %c0_i32_1 = arith.constant 0 : i32
    return %arg0, %c0_i32, %c0_i32_0 : i32, i32, i32
  }
  func.func @transform_2(%arg0: i32) -> (i32, i32, i32) {
    %c0_i32 = arith.constant 0 : i32
    %c0_i32_0 = arith.constant 0 : i32
    %c0_i32_1 = arith.constant 0 : i32
    return %arg0, %c0_i32, %c0_i32_0 : i32, i32, i32
  }
  func.func @transform_3(%arg0: i32) -> (i32, i32) {
    %c0_i32 = arith.constant 0 : i32
    %c0_i32_0 = arith.constant 0 : i32
    %c0_i32_1 = arith.constant 0 : i32
    return %c0_i32, %c0_i32_0 : i32, i32
  }
  func.func @transform_4(%arg0: i32) -> (i32, i32, i32) {
    %c0_i32 = arith.constant 0 : i32
    %c0_i32_0 = arith.constant 0 : i32
    %c0_i32_1 = arith.constant 0 : i32
    %c0_i32_2 = arith.constant 0 : i32
    return %c0_i32, %c0_i32_0, %c0_i32_1 : i32, i32, i32
  }
  func.func @transform_5(%arg0: i32) -> (i32, i32, i32, i32) {
    %c0_i32 = arith.constant 0 : i32
    %c0_i32_0 = arith.constant 0 : i32
    %c0_i32_1 = arith.constant 0 : i32
    %c0_i32_2 = arith.constant 0 : i32
    %c0_i32_3 = arith.constant 0 : i32
    return %c0_i32, %c0_i32_0, %c0_i32_1, %c0_i32_2 : i32, i32, i32, i32
  }
  func.func @transform_6(%arg0: i32) -> (i32, i32, i32) {
    %c0_i32 = arith.constant 0 : i32
    %c0_i32_0 = arith.constant 0 : i32
    %c0_i32_1 = arith.constant 0 : i32
    %c0_i32_2 = arith.constant 0 : i32
    return %c0_i32, %c0_i32_0, %c0_i32_1 : i32, i32, i32
  }
  func.func @transform_7(%arg0: i32) -> (i32, i32, i32) {
    %c0_i32 = arith.constant 0 : i32
    %c0_i32_0 = arith.constant 0 : i32
    %c0_i32_1 = arith.constant 0 : i32
    %c0_i32_2 = arith.constant 0 : i32
    return %c0_i32, %c0_i32_0, %c0_i32_1 : i32, i32, i32
  }
  func.func @transform_8(%arg0: i32) -> (i32, i32) {
    %c0_i32 = arith.constant 0 : i32
    %c0_i32_0 = arith.constant 0 : i32
    %c0_i32_1 = arith.constant 0 : i32
    return %c0_i32, %c0_i32_0 : i32, i32
  }
  func.func @transform_9(%arg0: i32) -> (i32, i32) {
    %c0_i32 = arith.constant 0 : i32
    %c0_i32_0 = arith.constant 0 : i32
    %c0_i32_1 = arith.constant 0 : i32
    return %c0_i32, %c0_i32_0 : i32, i32
  }
  func.func @transform_10(%arg0: i32) -> (i32, i32, i32) {
    %c0_i32 = arith.constant 0 : i32
    %c0_i32_0 = arith.constant 0 : i32
    %c0_i32_1 = arith.constant 0 : i32
    return %arg0, %c0_i32, %c0_i32_0 : i32, i32, i32
  }
}

</mosaic_0001>

<bundles_post_ra>
// kernel: ref_block_forward.1
= control target key start
LH: loop header
LB: loop body
LE: loop exit
PB: predicated region body
PF: predicated region fallthrough
CT: control target
= control target key end

     0   :  { %s6257_s0 = inlined_call_operand.vmem [shape: f32[2,1,256], index: 0, kind: input, shape index: {}]   ;;  %s6258_s1 = inlined_call_operand.vmem [shape: f32[2,1,256], index: 1, kind: input, shape index: {}]   ;;  %s6259_s2 = inlined_call_operand.vmem [shape: f32[2,1,8], index: 2, kind: input, shape index: {}]   ;;  %s6260_s3 = inlined_call_operand.vmem [shape: f32[9,256], index: 3, kind: input, shape index: {}]   ;;  %s6261_s4 = inlined_call_operand.vmem [shape: bf16[6,64,288], index: 4, kind: input, shape index: {}]   ;;  %s6262_s5 = inlined_call_operand.vmem [shape: f32[6,2,64,1], index: 5, kind: input, shape index: {}]   ;;  %s6263_s6 = inlined_call_operand.vmem [shape: f32[2,16,8], index: 6, kind: input, shape index: {}]   ;;  %s6264_s7 = inlined_call_operand.vmem [shape: f32[2,16,1], index: 7, kind: input, shape index: {}]   ;;  %s6265_s8 = inlined_call_operand.vmem [shape: f32[32,32], index: 8, kind: input, shape index: {}]   ;;  %s6266_s9 = inlined_call_operand.vmem [shape: f32[1,32], index: 9, kind: input, shape index: {}]   ;;  %s6267_s10 = inlined_call_operand.hbm [shape: f32[2,1,32], index: 10, kind: output, shape index: {}]  }
   0x1   :  { %6303 = sst [smem:[#allocation15_spill]] %s6257_s0 }
   0x2   :  { %6304 = sst [smem:[#allocation16_spill]] %s6258_s1 }
   0x3   :  { %6305 = sst [smem:[#allocation17_spill]] %s6259_s2 }
   0x4   :  { %6306 = sst [smem:[#allocation18_spill]] %s6260_s3 }
   0x5   :  { %15 = vsyncpa [#allocation3], 0 }
   0x6   :  { %17 = vsyncpa [#allocation3 + $0x1], 0  ;;  %s4198_s13 = smov 0   ;;  %s4200_s14 = smov 0  }
   0x7   :  { %s4202_s15 = smov 0   ;;  %s4204_s16 = smov 0  }
   0x8 LB: > { %6307 = sst [smem:[#allocation5_spill]] %s4123_s15  ;;  %s4219_s17 = sadd.s32 4294967295, %s4127_s16   ;;  %s4127_s16 = sphi %s4204_s16, %s6339_s16   ;;  %s4123_s15 = sphi %s4202_s15, %s6341_s15   ;;  %s4119_s14 = sphi %s4200_s14, %s6343_s14   ;;  %s4115_s13 = sphi %s4198_s13, %s6342_s13  }
   0x9   : > { %s3570_s18 = sadd.s32 4294967294, %s4127_s16   ;;  %s4223_s19 = sadd.s32 1, %s4127_s16  }
   0xa   : > { %6308 = sst [smem:[#allocation6_spill]] %s4223_s19  ;;  %s255_s20 = sadd.s32 1, %s4123_s15 }
   0xb   : > { %s252_s21 = ssub.s32 %s4127_s16, %s4223_s19  ;;  %p265_p0 = scmp.ne.s32.totalorder %s4123_s15, %s4119_s14 }
   0xc   : > { %p253_p1 = scmp.eq.s32.totalorder %s252_s21, 0  ;;  %p266_p2 = scmp.eq.s32.totalorder %s4219_s17, 1 }
   0xd   : > { %p271_p3 = scmp.ne.s32.totalorder %s4119_s14, %s4115_s13  ;;  %p272_p4 = scmp.eq.s32.totalorder %s3570_s18, 1 }
   0xe   : > { %s4234_s22 = scalar_select %p253_p1, %s4123_s15, %s255_s20  }
   0xf   : > { %p4236_p5 = por %p266_p2, %p265_p0  ;;  %p4240_p6 = por %p272_p4, %p271_p3 }
  0x10   : > { %6309 = sst [smem:[#allocation7_spill]] %s4234_s22  ;;  %p3573_p7 = scmp.ge.s32.totalorder %s4127_s16, 1 }
  0x11   : > { %p331_p8 = scmp.lt.s32.totalorder %s4127_s16, 3 }
  0x13   : > { %p332_p9 = pnand %p3573_p7, %p331_p8 }
  0x15   : > { %335 = sbr.rel (%p332_p9) target bundleno = 4184 (0x1058), region = 60 }
  0x1c   : > { %p374_p10 = scmp.lt.s32.totalorder %s4219_s17, 1  ;;  %v411_v0 = vlaneseq  ;;  %s6312_s0 = sld [smem:[#allocation15_spill]]  ;;  %v6287_v10 = vmov 0   ;;  %vm634_vm4 = vcmask 1040384   ;;  %vm637_vm5 = vcmask 1041408  }
  0x1d   : > { %s6313_s1 = sld [smem:[#allocation16_spill]]  ;;  %s6268_s18 = smov 15   ;;  %708 = vmatprep.mubr.bf16.mxu0 %v6287_v10  ;;  %3849 = vset.pattern.permute.xlu1 %v6287_v10  ;;  %vm640_vm6 = vcmask 1042432   ;;  %vm643_vm8 = vcmask 1043456   ;;  %vm646_vm10 = vcmask 1044480   ;;  %vm649_vm12 = vcmask 1045504  }
  0x1e   : > { %s4248_s25 = scalar_select %p374_p10, %s4219_s17, 1  ;;  %v412_v1 = vshrl.u32 %v411_v0, 7  ;;  %3850 = vset.pattern.permute.xlu0 %v6287_v10  ;;  %940 = vmatprep.mubr.bf16.mxu1 %v6287_v10  ;;  %v4310_v13 = vand.u32 127, %v411_v0  ;;  %vm652_vm14 = vcmask 1046528   ;;  %vm664_vm15 = vcmask 72704  }
  0x1f   : > { %s6274_s20 = smov 16   ;;  %s6280_s21 = smov 17  }
  0x20   : > { %s3574_s26 = sshll.u32 %s4248_s25, 1  ;;  %v4257_v2 = vsub.s32 0, %v412_v1  ;;  %v4259_v3 = vsub.s32 1, %v412_v1  ;;  %s6278_s27 = smov 127   ;;  %vm470_vm0 = vcmp.lt.s32.totalorder %v4310_v13, 15  ;;  %vm448_vm1 = vcmp.lt.s32.totalorder %v4310_v13, 16 }
  0x21   : > { %s6276_s28 = smov 113   ;;  %s6272_s30 = smov 111   ;;  %vm427_vm2 = vcmp.lt.s32.totalorder %v4310_v13, 17  ;;  %vm492_vm3 = vcmp.lt.s32.totalorder %v4310_v13, 1  ;;  %vm514_vm7 = vcmp.lt.s32.totalorder %v4310_v13, 127  ;;  %vm536_vm9 = vcmp.lt.s32.totalorder %v4310_v13, 113 }
  0x22   : > { %s377_s29 = scalar_lea.vmem %s6312_s0, %s3574_s26  ;;  %s6314_s3 = sld [smem:[#allocation18_spill]]  ;;  %vm558_vm11 = vcmp.lt.s32.totalorder %v4310_v13, 112  ;;  %vm580_vm13 = vcmp.lt.s32.totalorder %v4310_v13, 111  ;;  %v3882_v13 = vld [vmem:[%s6261_s4 + $0x22c] ss:$12 sps:$4 sm:$0xff]  }
  0x23   : > { %s381_s12 = scalar_lea.vmem %s6313_s1, %s3574_s26  ;;  %v387_v5 = vld [vmem:[%s377_s29] sm:$0x3]  ;;  %s6282_s26 = smov 1  }
  0x24   : > { %v4261_v4 = vld [vmem:[%s381_s12] sm:$0x3]  ;;  %s6270_s29 = smov 112   ;;  %s6326_s11 = smov 111  }
  0x25   : > { %v409_v6 = vmul.f32 %v387_v5, %v4261_v4  ;;  %v4266_v7 = vrot.slane %v4261_v4, %v4259_v3  ;;  %s6327_s12 = smov 15   ;;  %s6328_s2 = sld [smem:[#allocation17_spill]] }
  0x26   : > { %s6329_s0 = smov 17   ;;  %s6330_s1 = smov 1  }
  0x27   : > { %v4269_v8 = vrot.slane %v409_v6, %v4257_v2  ;;  %v4276_v9 = vrot.slane %v409_v6, %v4259_v3 }
  0x28   : > { %v3577_v16 = vld [vmem:[%s6314_s3 + $0x2] ss:$8 sm:$0x3]  ;;  %v3576_v17 = vld [vmem:[%s6314_s3 + $0x1] ss:$8 sm:$0x3] }
  0x29   : > { %466 = vrot.lane.b32.xlu1 %v4269_v8, %s6268_s18  ;;  %444 = vrot.lane.b32.xlu0 %v4269_v8, %s6274_s20  ;;  %v430_v19 = vld [vmem:[%s6314_s3] ss:$8 sm:$0x3]  ;;  %v3578_v21 = vld [vmem:[%s6314_s3 + $0x3] ss:$8 sm:$0x3]  ;;  %v4327_v22 = vrot.slane %v3577_v16, %v4257_v2  ;;  %v4330_v23 = vrot.slane %v3576_v17, %v4257_v2  ;;  %v4333_v24 = vrot.slane %v3576_v17, %v4259_v3 }
  0x2a   : > { %v4337_v25 = vrot.slane %v3577_v16, %v4259_v3  ;;  %v4345_v28 = vrot.slane %v430_v19, %v4257_v2  ;;  %v4348_v29 = vrot.slane %v430_v19, %v4259_v3  ;;  %v4351_v30 = vrot.slane %v3578_v21, %v4257_v2  ;;  %v3579_v38 = vld [vmem:[%s6314_s3 + $0x5] ss:$8 sm:$0x3]  ;;  %v3580_v47 = vld [vmem:[%s6314_s3 + $0x6] ss:$8 sm:$0x3] }
  0x2b   : > { %v4354_v31 = vrot.slane %v3578_v21, %v4259_v3  ;;  %v4377_v45 = vrot.slane %v3579_v38, %v4257_v2  ;;  %v4380_v46 = vrot.slane %v3579_v38, %v4259_v3  ;;  %v3581_v54 = vld [vmem:[%s6314_s3 + $0x7] ss:$8 sm:$0x3]  ;;  %v4398_v59 = vrot.slane %v3580_v47, %v4257_v2 }
  0x2c   : > { %v4401_v60 = vrot.slane %v3580_v47, %v4259_v3  ;;  %v4407_v63 = vrot.slane %v3581_v54, %v4257_v2 }
  0x2d   : > { %468 = vrot.lane.b32.xlu1 %v4276_v9, %s6268_s18  ;;  %446 = vrot.lane.b32.xlu0 %v4276_v9, %s6274_s20  ;;  %6315 = vst [vmem:[#allocation8_spill] sm:$0xff] %v4377_v45  ;;  %6316 = vst [vmem:[#allocation9_spill] sm:$0xff] %v4398_v59  ;;  %s372_s18 = sand.u32 1, %s4119_s14  }
  0x2e   : > { %6317 = vst [vmem:[#allocation10_spill] sm:$0xff] %v4401_v60  ;;  %6318 = vst [vmem:[#allocation11_spill] sm:$0xff] %v4407_v63 }
  0x31   : > { %423 = vrot.lane.b32.xlu1 %v4276_v9, %s6280_s21  ;;  %421 = vrot.lane.b32.xlu0 %v4269_v8, %s6280_s21 }
  0x35   : > { %490 = vrot.lane.b32.xlu1 %v4276_v9, %s6282_s26  ;;  %488 = vrot.lane.b32.xlu0 %v4269_v8, %s6282_s26 }
  0x39   : > { %512 = vrot.lane.b32.xlu1 %v4276_v9, %s6278_s27  ;;  %510 = vrot.lane.b32.xlu0 %v4269_v8, %s6278_s27  ;;  %s6322_s27 = smov 127  }
  0x3d   : > { %534 = vrot.lane.b32.xlu1 %v4276_v9, %s6276_s28  ;;  %532 = vrot.lane.b32.xlu0 %v4269_v8, %s6276_s28  ;;  %s6323_s28 = smov 113  }
  0x41   : > { %556 = vrot.lane.b32.xlu1 %v4276_v9, %s6270_s29  ;;  %554 = vrot.lane.b32.xlu0 %v4269_v8, %s6270_s29  ;;  %s6324_s29 = smov 16  }
  0x45   : > { %578 = vrot.lane.b32.xlu1 %v4276_v9, %s6272_s30  ;;  %576 = vrot.lane.b32.xlu0 %v4269_v8, %s6272_s30  ;;  %s6325_s30 = smov 112  }
  0x9b   : > { %v467_v11 = vpop.permute.xlu1 %466  ;;  %v445_v12 = vpop.permute.xlu0 %444 }
  0x9f   : > { %v469_v14 = vpop.permute.xlu1 %468  ;;  %v447_v15 = vpop.permute.xlu0 %446 }
  0xa0   : > { %v449_v26 = vsel %vm448_vm1, %v445_v12, %v447_v15  ;;  %v450_v27 = vsel %vm448_vm1, %v447_v15, %v445_v12  ;;  %v471_v32 = vsel %vm470_vm0, %v467_v11, %v469_v14  ;;  %v472_v33 = vsel %vm470_vm0, %v469_v14, %v467_v11 }
  0xa1   : > { %v464_v39 = vmul.f32 %v4330_v23, %v450_v27  ;;  %v465_v40 = vmul.f32 %v4333_v24, %v449_v26  ;;  %v486_v48 = vmul.f32 %v4327_v22, %v472_v33  ;;  %v487_v49 = vmul.f32 %v4337_v25, %v471_v32  ;;  %v3582_v27 = vld [vmem:[%s6314_s3 + $0x10] ss:$8 sm:$0x3]  ;;  %s373_s3 = scalar_lea.vmem [#allocation2], %s372_s18 }
  0xa2   : > { %v4438_v47 = vrot.slane %v3582_v27, %v4259_v3 }
  0xa3   : > { %v424_v18 = vpop.permute.xlu1 %423  ;;  %v422_v20 = vpop.permute.xlu0 %421  ;;  %v600_v55 = vrot.slane %v464_v39, 7  ;;  %v601_v56 = vrot.slane %v465_v40, 7  ;;  %v606_v14 = vrot.slane %v486_v48, 6  ;;  %v607_v15 = vrot.slane %v487_v49, 6 }
  0xa4   : > { %v428_v34 = vsel %vm427_vm2, %v422_v20, %v424_v18  ;;  %v429_v35 = vsel %vm427_vm2, %v424_v18, %v422_v20  ;;  %v4418_v20 = vrot.slane %v3581_v54, %v4259_v3  ;;  %6321 = vst [vmem:[#allocation14_spill] sm:$0xff] %v4438_v47 }
  0xa5   : > { %v442_v43 = vmul.f32 %v4345_v28, %v429_v35  ;;  %v443_v44 = vmul.f32 %v4348_v29, %v428_v34 }
  0xa6   : > { %6319 = vst [vmem:[#allocation12_spill] sm:$0xff] %v4418_v20 }
  0xa7   : > { %v491_v36 = vpop.permute.xlu1 %490  ;;  %v489_v37 = vpop.permute.xlu0 %488  ;;  %v635_v61 = vsel %vm634_vm4, %v442_v43, %v600_v55  ;;  %v636_v62 = vsel %vm634_vm4, %v443_v44, %v601_v56  ;;  %v4435_v44 = vrot.slane %v3582_v27, %v4257_v2 }
  0xa8   : > { %v493_v41 = vsel %vm492_vm3, %v489_v37, %v491_v36  ;;  %v494_v42 = vsel %vm492_vm3, %v491_v36, %v489_v37  ;;  %v638_v21 = vsel %vm637_vm5, %v635_v61, %v606_v14  ;;  %v639_v26 = vsel %vm637_vm5, %v636_v62, %v607_v15  ;;  %v3851_v15 = vld [vmem:[%s6261_s4] ss:$12 sps:$4 sm:$0xff]  }
  0xa9   : > { %v508_v50 = vmul.f32 %v4351_v30, %v494_v42  ;;  %v509_v51 = vmul.f32 %v4354_v31, %v493_v41  ;;  %6320 = vst [vmem:[#allocation13_spill] sm:$0xff] %v4435_v44 }
  0xab   : > { %v513_v52 = vpop.permute.xlu1 %512  ;;  %v511_v53 = vpop.permute.xlu0 %510  ;;  %v612_v0 = vrot.slane %v508_v50, 5  ;;  %v613_v1 = vrot.slane %v509_v51, 5  ;;  %v4138_v50 = vmov 65535  }
  0xac   : > { %v515_v57 = vsel %vm514_vm7, %v511_v53, %v513_v52  ;;  %v516_v58 = vsel %vm514_vm7, %v513_v52, %v511_v53  ;;  %v668_v51 = vsel %vm643_vm8, 4294967295, %v4138_v50 }
  0xad   : > { %v530_v5 = vmul.f32 %v4377_v45, %v515_v57  ;;  %v531_v6 = vmul.f32 %v4380_v46, %v516_v58  ;;  %v641_v32 = vsel %vm640_vm6, %v638_v21, %v612_v0  ;;  %v642_v33 = vsel %vm640_vm6, %v639_v26, %v613_v1 }
  0xae   : > { %v644_v48 = vsel %vm643_vm8, %v641_v32, %v4269_v8  ;;  %v645_v49 = vsel %vm643_vm8, %v642_v33, %v4276_v9 }
  0xaf   : > { %v535_v11 = vpop.permute.xlu1 %534  ;;  %v533_v12 = vpop.permute.xlu0 %532  ;;  %v618_v34 = vrot.slane %v530_v5, 3  ;;  %v619_v35 = vrot.slane %v531_v6, 3  ;;  %v669_v5 = vsel %vm646_vm10, %v668_v51, 0 }
  0xb0   : > { %v537_v16 = vsel %vm536_vm9, %v533_v12, %v535_v11  ;;  %v538_v17 = vsel %vm536_vm9, %v535_v11, %v533_v12 }
  0xb1   : > { %v552_v18 = vmul.f32 %v4398_v59, %v537_v16  ;;  %v553_v19 = vmul.f32 %v4401_v60, %v538_v17  ;;  %v647_v56 = vsel %vm646_vm10, %v644_v48, %v618_v34  ;;  %v648_v57 = vsel %vm646_vm10, %v645_v49, %v619_v35 }
  0xb2   : > { %vm1045_vm10 = vcmask 64512  }
  0xb3   : > { %v557_v36 = vpop.permute.xlu1 %556  ;;  %v555_v37 = vpop.permute.xlu0 %554  ;;  %v624_v38 = vrot.slane %v552_v18, 2  ;;  %v625_v39 = vrot.slane %v553_v19, 2 }
  0xb4   : > { %v559_v40 = vsel %vm558_vm11, %v555_v37, %v557_v36  ;;  %v560_v41 = vsel %vm558_vm11, %v557_v36, %v555_v37  ;;  %v746_v37 = vld [vmem:[%s6262_s5 + $0x8] sm:$0xff] }
  0xb5   : > { %v574_v42 = vmul.f32 %v4407_v63, %v559_v40  ;;  %v575_v43 = vmul.f32 %v4418_v20, %v560_v41  ;;  %v651_v9 = vsel %vm649_vm12, %v648_v57, %v625_v39  ;;  %v650_v58 = vsel %vm649_vm12, %v647_v56, %v624_v38  ;;  %v745_v38 = vld [vmem:[%s6262_s5] sm:$0xff]  ;;  %v748_v40 = vld [vmem:[%s6262_s5 + $0x48] sm:$0xff] }
  0xb6   : > { %v747_v39 = vld [vmem:[%s6262_s5 + $0x40] sm:$0xff]  ;;  %vm898_vm12 = vcmask 588800  }
  0xb7   : > { %v630_v52 = vrot.slane %v574_v42, 1  ;;  %v631_v53 = vrot.slane %v575_v43, 1  ;;  %v579_v54 = vpop.permute.xlu1 %578  ;;  %v577_v55 = vpop.permute.xlu0 %576 }
  0xb8   : > { %v581_v3 = vsel %vm580_vm13, %v577_v55, %v579_v54  ;;  %v582_v8 = vsel %vm580_vm13, %v579_v54, %v577_v55 }
  0xb9   : > { %v596_v61 = vmul.f32 %v4435_v44, %v581_v3  ;;  %v597_v62 = vmul.f32 %v4438_v47, %v582_v8  ;;  %v654_v0 = vsel %vm652_vm14, %v651_v9, %v631_v53  ;;  %v653_v1 = vsel %vm652_vm14, %v650_v58, %v630_v52 }
  0xbb   : > { %v656_v6 = vpack.c.bf16 %v597_v62, %v654_v0  ;;  %v655_v11 = vpack.c.bf16 %v596_v61, %v653_v1 }
  0xbd   : > { %v674_v12 = vand.u32 %v669_v5, %v656_v6  ;;  %v671_v14 = vand.u32 %v669_v5, %v655_v11 }
  0xbf   : > { %676 = vmatprep.subr.bf16.mxu0 %v674_v12 }
  0xc0   : > { %677 = vmatpush1.bf16.msra.mxu0 %v671_v14 }
  0xc3   : > { %3584 = vmatmul.mubr.msk.bf16.vlgmr.msra.gmra.mrb[0].mxu0 %vm664_vm15, %v3851_v15 }
  0xc4   : > { %1192 = vmatprep.mubr.bf16.mxu0 %v6287_v10 }
 0x196   : > { %v4462_v16 = vpop.f32.mrb[0].mxu0 }
 0x197   : > { %v4464_v17 = vpop.f32.mrb[1].mxu0  ;;  %v725_v18 = vmul.f32 %v4462_v16, %v4462_v16 }
 0x198   : > { %v714_v19 = vpop.f32.mrb[2].mxu0  ;;  %v719_v21 = vadd.f32 %v4464_v17, %v4462_v16  ;;  %v726_v26 = vmul.f32 %v4464_v17, %v4464_v17 }
 0x199   : > { %v716_v27 = vpop.f32.mrb[3].mxu0  ;;  %v727_v32 = vmul.f32 %v714_v19, %v714_v19 }
 0x19a   : > { %720 = vadd.xlane.f32.xlu0 %v719_v21  ;;  %v728_v33 = vmul.f32 %v716_v27, %v716_v27  ;;  %v722_v34 = vadd.f32 %v716_v27, %v714_v19  ;;  %v729_v35 = vadd.f32 %v726_v26, %v725_v18 }
 0x19c   : > { %v732_v36 = vadd.f32 %v728_v33, %v727_v32 }
 0x19e   : > { %733 = vadd.xlane.f32.xlu1 %v732_v36  ;;  %723 = vadd.xlane.f32.xlu0 %v722_v34 }
 0x1a2   : > { %730 = vadd.xlane.f32.xlu0 %v729_v35 }
 0x1af   : > { %768 = vperm.xlu1 %3849, %v746_v37  }
 0x1b3   : > { %763 = vperm.xlu1 %3849, %v745_v38  }
 0x1b7   : > { %777 = vperm.xlu1 %3849, %v747_v39  }
 0x1b8   : > { %782 = vperm.xlu0 %3850, %v748_v40  }
 0x227   : > { %v721_v41 = vpop.xlane.xlu0 %720 }
 0x228   : > { %v735_v55 = vmul.f32 0.00390625, %v721_v41 }
 0x22a   : > { %v739_v57 = vmul.f32 %v735_v55, %v735_v55  ;;  %v749_v33 = vsub.f32 %v4462_v16, %v735_v55  ;;  %v750_v35 = vsub.f32 %v4464_v17, %v735_v55 }
 0x22b   : > { %v734_v42 = vpop.xlane.xlu1 %733  ;;  %v724_v43 = vpop.xlane.xlu0 %723 }
 0x22c   : > { %v736_v48 = vmul.f32 0.00390625, %v724_v43  ;;  %v738_v49 = vmul.f32 0.00390625, %v734_v42  ;;  %v4488_v42 = vrot.slane %v4261_v4, %v4257_v2 }
 0x22e   : > { %v740_v50 = vmul.f32 %v736_v48, %v736_v48  ;;  %v751_v8 = vsub.f32 %v714_v19, %v736_v48  ;;  %v752_v9 = vsub.f32 %v716_v27, %v736_v48 }
 0x22f   : > { %v731_v54 = vpop.xlane.xlu0 %730  ;;  %v769_v1 = vpop.permute.xlu1 %768 }
 0x230   : > { %v742_v51 = vsub.f32 %v738_v49, %v740_v50  ;;  %v737_v56 = vmul.f32 0.00390625, %v731_v54 }
 0x232   : > { %v744_v52 = vmax.f32 %v742_v51, 0.0  ;;  %v741_v3 = vsub.f32 %v737_v56, %v739_v57 }
 0x233   : > { %v764_v37 = vpop.permute.xlu1 %763 }
 0x234   : > { %v754_v53 = vadd.f32 1e-05, %v744_v52  ;;  %v743_v61 = vmax.f32 %v741_v3, 0.0 }
 0x236   : > { %3889 = vrsqrt.f32 %v754_v53  ;;  %v753_v12 = vadd.f32 1e-05, %v743_v61 }
 0x237   : > { %v783_v5 = vpop.permute.xlu0 %782  ;;  %v778_v41 = vpop.permute.xlu1 %777 }
 0x238   : > { %3891 = vrsqrt.f32 %v753_v12 }
 0x240   : > { %v3890_v58 = vpop.eup %3889 }
 0x241   : > { %v759_v62 = vmul.f32 %v3890_v58, %v751_v8  ;;  %v760_v0 = vmul.f32 %v3890_v58, %v752_v9 }
 0x242   : > { %v3892_v26 = vpop.eup %3891 }
 0x243   : > { %v773_v6 = vmul.f32 %v769_v1, %v759_v62  ;;  %v774_v11 = vmul.f32 %v769_v1, %v760_v0  ;;  %v757_v36 = vmul.f32 %v3892_v26, %v749_v33  ;;  %v758_v38 = vmul.f32 %v3892_v26, %v750_v35 }
 0x245   : > { %v787_v14 = vadd.f32 %v783_v5, %v773_v6  ;;  %v788_v15 = vadd.f32 %v783_v5, %v774_v11  ;;  %v771_v39 = vmul.f32 %v764_v37, %v757_v36  ;;  %v772_v40 = vmul.f32 %v764_v37, %v758_v38 }
 0x247   : > { %v3585_v18 = vmul.f32 -1.442695, %v787_v14  ;;  %v3586_v21 = vmul.f32 -1.442695, %v788_v15  ;;  %v785_v43 = vadd.f32 %v778_v41, %v771_v39  ;;  %v786_v49 = vadd.f32 %v778_v41, %v772_v40  ;;  %v1036_v14 = vld [vmem:[%s6263_s6] sm:$0xff] }
 0x249   : > { %3893 = vpow2.f32 %v3585_v18 }
 0x24a   : > { %3895 = vpow2.f32 %v3586_v21 }
 0x253   : > { %v3894_v32 = vpop.eup %3893 }
 0x254   : > { %v3896_v19 = vpop.eup %3895  ;;  %v795_v27 = vadd.f32 1.0, %v3894_v32 }
 0x255   : > { %v796_v34 = vadd.f32 1.0, %v3896_v19 }
 0x256   : > { %3897 = vrcp.f32 %v795_v27 }
 0x257   : > { %3899 = vrcp.f32 %v796_v34 }
 0x260   : > { %v3898_v48 = vpop.eup %3897 }
 0x261   : > { %v3900_v50 = vpop.eup %3899  ;;  %v801_v16 = vmul.f32 %v3898_v48, %v785_v43 }
 0x262   : > { %v802_v51 = vmul.f32 %v3900_v50, %v786_v49 }
 0x263   : > { %v4491_v17 = vmul.f32 %v4488_v42, %v801_v16 }
 0x264   : > { %v4498_v52 = vmul.f32 %v4266_v7, %v802_v51 }
 0x265   : > { %840 = vrot.lane.b32.xlu0 %v4491_v17, %s6282_s26  ;;  %816 = vrot.lane.b32.xlu1 %v4491_v17, %s6280_s21 }
 0x269   : > { %848 = vrot.lane.b32.xlu0 %v4491_v17, %s6322_s27  ;;  %818 = vrot.lane.b32.xlu1 %v4498_v52, %s6280_s21  ;;  %s384_s21 = scalar_lea.vmem %s6328_s2, %s4248_s25  ;;  %s3746_s2 = sshll.u32 %s4219_s17, 4 }
 0x26a   : > { %v388_v4 = vld [vmem:[%s384_s21] sm:$0x1] }
 0x26b   : > { %v392_v53 = vand.u32 2147483647, %v388_v4  ;;  %v389_v62 = vmax.f32 %v388_v4, 0.0  ;;  %vm390_vm6 = vcmp.ne.f32.partialorder %v388_v4, %v388_v4 }
 0x26d   : > { %856 = vrot.lane.b32.xlu0 %v4491_v17, %s6323_s28  ;;  %824 = vrot.lane.b32.xlu1 %v4491_v17, %s6324_s29  ;;  %v393_v54 = vsub.f32 0.0, %v392_v53 }
 0x26f   : > { %v394_v55 = vmul.f32 1.442695, %v393_v54 }
 0x271   : > { %864 = vrot.lane.b32.xlu0 %v4491_v17, %s6325_s30  ;;  %826 = vrot.lane.b32.xlu1 %v4498_v52, %s6324_s29  ;;  %3901 = vpow2.f32 %v394_v55 }
 0x275   : > { %872 = vrot.lane.b32.xlu0 %v4491_v17, %s6326_s11  ;;  %832 = vrot.lane.b32.xlu1 %v4491_v17, %s6327_s12 }
 0x279   : > { %834 = vrot.lane.b32.xlu1 %v4498_v52, %s6327_s12 }
 0x27b   : > { %v3902_v56 = vpop.eup %3901 }
 0x27c   : > { %v396_v57 = vadd.f32 1.0, %v3902_v56  ;;  %v399_v3 = vmul.f32 -0.5, %v3902_v56  ;;  %v402_v9 = vand.u32 2147483647, %v3902_v56 }
 0x27d   : > { %842 = vrot.lane.b32.xlu1 %v4498_v52, %s6282_s26  ;;  %s3494_s26 = sshll.u32 %s373_s3, 4  ;;  %s6217_s26 = int_to_ptr.vmem [resolvable:$true] %s3494_s26 }
 0x27e   : > { %3903 = vlog2.f32 %v396_v57  ;;  %v400_v8 = vadd.f32 1.0, %v399_v3  ;;  %vm403_vm5 = vcmp.lt.f32.partialorder %v402_v9, 0.0004427343  ;;  %s4065_s17 = scalar_lea.vmem %s6217_s26, 16 }
 0x27f   : > { %p4066_p11 = scmp.ne.s32.totalorder %s6217_s26, %s4065_s17 }
 0x280   : > { %v401_v58 = vmul.f32 %v3902_v56, %v400_v8 }
 0x281   : > { %850 = vrot.lane.b32.xlu1 %v4498_v52, %s6322_s27  ;;  %p4067_p12 = pnand %p4066_p11, %p4236_p5 }
 0x283   : > { %p4068_p13 = pneg %p4067_p12 }
 0x285   : > { %858 = vrot.lane.b32.xlu1 %v4498_v52, %s6323_s28 }
 0x288   : > { %v3904_v61 = vpop.eup %3903 }
 0x289   : > { %866 = vrot.lane.b32.xlu1 %v4498_v52, %s6325_s30  ;;  %v398_v0 = vmul.f32 0.6931472, %v3904_v61 }
 0x28b   : > { %v404_v1 = vsel %vm403_vm5, %v401_v58, %v398_v0 }
 0x28c   : > { %v405_v5 = vadd.f32 %v404_v1, %v389_v62 }
 0x28d   : > { %874 = vrot.lane.b32.xlu1 %v4498_v52, %s6326_s11 }
 0x28e   : > { %v406_v6 = vsel %vm390_vm6, %v388_v4, %v405_v5 }
 0x28f   : > { %3905 = vtanh.f32 %v406_v6 }
 0x299   : > { %v3906_v11 = vpop.eup %3905 }
 0x29a   : > { %v408_v12 = vmul.f32 %v3906_v11, %v388_v4 }
 0x29c   : > { %v4536_v15 = vrot.slane %v408_v12, %v4257_v2 }
 0x29e   : > { %v1044_v18 = vmul.f32 %v4536_v15, %v1036_v14 }
 0x2a0   : > { %v1046_v21 = vsel %vm1045_vm10, %v1044_v18, 0.0 }
 0x2a1   : > { %1047 = vadd.xlane.f32.xlu0 %v1046_v21 }
 0x2d7   : > { %v817_v26 = vpop.permute.xlu1 %816  ;;  %v841_v40 = vpop.permute.xlu0 %840 }
 0x2db   : > { %v819_v32 = vpop.permute.xlu1 %818  ;;  %v849_v50 = vpop.permute.xlu0 %848 }
 0x2dc   : > { %v821_v27 = vsel %vm427_vm2, %v819_v32, %v817_v26  ;;  %v820_v33 = vsel %vm427_vm2, %v817_v26, %v819_v32 }
 0x2dd   : > { %v823_v36 = vmul.f32 %v820_v33, %v4348_v29  ;;  %v822_v38 = vmul.f32 %v821_v27, %v4345_v28 }
 0x2df   : > { %v825_v19 = vpop.permute.xlu1 %824  ;;  %v857_v8 = vpop.permute.xlu0 %856 }
 0x2e3   : > { %v827_v34 = vpop.permute.xlu1 %826  ;;  %v865_v14 = vpop.permute.xlu0 %864 }
 0x2e4   : > { %v829_v2 = vsel %vm448_vm1, %v827_v34, %v825_v19  ;;  %v828_v35 = vsel %vm448_vm1, %v825_v19, %v827_v34 }
 0x2e5   : > { %v831_v37 = vmul.f32 %v828_v35, %v4333_v24  ;;  %v830_v39 = vmul.f32 %v829_v2, %v4330_v23 }
 0x2e7   : > { %v833_v41 = vpop.permute.xlu1 %832  ;;  %v881_v43 = vpack.c.bf16 %v831_v37, %v823_v36  ;;  %v880_v48 = vpack.c.bf16 %v830_v39, %v822_v38  ;;  %v873_v34 = vpop.permute.xlu0 %872 }
 0x2e9   : > { %908 = vmatprep.subr.bf16.mxu1 %v881_v43 }
 0x2ea   : > { %909 = vmatpush1.bf16.msra.mxu1 %v880_v48 }
 0x2eb   : > { %v835_v49 = vpop.permute.xlu1 %834 }
 0x2ec   : > { %v836_v16 = vsel %vm470_vm0, %v833_v41, %v835_v49  ;;  %v837_v51 = vsel %vm470_vm0, %v835_v49, %v833_v41  ;;  %v3852_v49 = vld [vmem:[%s6261_s4 + $0x60] ss:$12 sps:$4 sm:$0xff]  }
 0x2ed   : > { %v838_v55 = vmul.f32 %v837_v51, %v4327_v22  ;;  %v839_v56 = vmul.f32 %v836_v16, %v4337_v25 }
 0x2ef   : > { %v843_v4 = vpop.permute.xlu1 %842 }
 0x2f0   : > { %v844_v53 = vsel %vm492_vm3, %v841_v40, %v843_v4  ;;  %v845_v54 = vsel %vm492_vm3, %v843_v4, %v841_v40 }
 0x2f1   : > { %v846_v57 = vmul.f32 %v845_v54, %v4351_v30  ;;  %v847_v3 = vmul.f32 %v844_v53, %v4354_v31 }
 0x2f3   : > { %v851_v9 = vpop.permute.xlu1 %850  ;;  %v883_v58 = vpack.c.bf16 %v847_v3, %v839_v56  ;;  %v882_v61 = vpack.c.bf16 %v846_v57, %v838_v55 }
 0x2f4   : > { %v852_v62 = vsel %vm514_vm7, %v849_v50, %v851_v9  ;;  %v853_v0 = vsel %vm514_vm7, %v851_v9, %v849_v50 }
 0x2f5   : > { %v854_v1 = vmul.f32 %v852_v62, %v4377_v45  ;;  %v855_v5 = vmul.f32 %v853_v0, %v4380_v46  ;;  %910 = vmatprep.subr.bf16.mxu1 %v883_v58  ;;  %v3595_v58 = vld [vmem:[%s6262_s5 + $0xc8] sm:$0xff]  ;;  %v3592_v62 = vld [vmem:[%s6262_s5 + $0x80] sm:$0xff] }
 0x2f6   : > { %911 = vmatpush1.bf16.msra.mxu1 %v882_v61  ;;  %v3593_v61 = vld [vmem:[%s6262_s5 + $0x88] sm:$0xff]  ;;  %v1037_v0 = vld [vmem:[%s6264_s7] sm:$0xff] }
 0x2f7   : > { %v859_v6 = vpop.permute.xlu1 %858  ;;  %v885_v11 = vpack.c.bf16 %v855_v5, %v4498_v52  ;;  %v884_v12 = vpack.c.bf16 %v854_v1, %v4491_v17 }
 0x2f8   : > { %v860_v18 = vsel %vm536_vm9, %v857_v8, %v859_v6  ;;  %v861_v21 = vsel %vm536_vm9, %v859_v6, %v857_v8  ;;  %v3594_v6 = vld [vmem:[%s6262_s5 + $0xc0] sm:$0xff] }
 0x2f9   : > { %912 = vmatprep.subr.bf16.mxu1 %v885_v11  ;;  %v862_v52 = vmul.f32 %v860_v18, %v4398_v59  ;;  %v863_v17 = vmul.f32 %v861_v21, %v4401_v60 }
 0x2fa   : > { %913 = vmatpush1.bf16.msra.mxu1 %v884_v12 }
 0x2fb   : > { %v867_v26 = vpop.permute.xlu1 %866 }
 0x2fc   : > { %v868_v32 = vsel %vm558_vm11, %v865_v14, %v867_v26  ;;  %v869_v19 = vsel %vm558_vm11, %v867_v26, %v865_v14 }
 0x2fd   : > { %v870_v27 = vmul.f32 %v868_v32, %v4407_v63  ;;  %v871_v33 = vmul.f32 %v869_v19, %v4418_v20 }
 0x2ff   : > { %v875_v2 = vpop.permute.xlu1 %874  ;;  %v887_v35 = vpack.c.bf16 %v871_v33, %v863_v17  ;;  %v886_v36 = vpack.c.bf16 %v870_v27, %v862_v52 }
 0x300   : > { %v876_v37 = vsel %vm580_vm13, %v873_v34, %v875_v2  ;;  %v877_v38 = vsel %vm580_vm13, %v875_v2, %v873_v34 }
 0x301   : > { %v879_v39 = vmul.f32 %v877_v38, %v4438_v47  ;;  %914 = vmatprep.subr.bf16.mxu1 %v887_v35  ;;  %v878_v40 = vmul.f32 %v876_v37, %v4435_v44 }
 0x302   : > { %915 = vmatpush1.bf16.msra.mxu1 %v886_v36 }
 0x303   : > { %v889_v41 = vpack.c.bf16 %v879_v39, %v879_v39  ;;  %v888_v43 = vpack.c.bf16 %v878_v40, %v878_v40 }
 0x305   : > { %3590 = vmatprep.subr.msk.bf16.mxu1 %vm643_vm8, %v889_v41  ;;  %v903_v48 = vsel %vm643_vm8, %v888_v43, 0 }
 0x306   : > { %917 = vmatpush1.bf16.msra.mxu1 %v903_v48 }
 0x309   : > { %3591 = vmatmul.mubr.msk.bf16.vlgmr.msra.gmra.mrb[0].mxu1 %vm898_vm12, %v3852_v49 }
 0x32e   : > { %v1048_v1 = vpop.xlane.xlu0 %1047 }
 0x32f   : > { %v1049_v5 = vadd.f32 %v1048_v1, %v1037_v0 }
 0x3dc   : > { %v4596_v50 = vpop.f32.mrb[0].mxu1 }
 0x3dd   : > { %v4598_v16 = vpop.f32.mrb[1].mxu1  ;;  %v957_v51 = vmul.f32 %v4596_v50, %v4596_v50 }
 0x3de   : > { %v946_v4 = vpop.f32.mrb[2].mxu1  ;;  %v951_v53 = vadd.f32 %v4598_v16, %v4596_v50  ;;  %v958_v54 = vmul.f32 %v4598_v16, %v4598_v16 }
 0x3df   : > { %v948_v55 = vpop.f32.mrb[3].mxu1  ;;  %v959_v56 = vmul.f32 %v946_v4, %v946_v4 }
 0x3e0   : > { %952 = vadd.xlane.f32.xlu0 %v951_v53  ;;  %v954_v57 = vadd.f32 %v948_v55, %v946_v4  ;;  %v960_v3 = vmul.f32 %v948_v55, %v948_v55  ;;  %v961_v8 = vadd.f32 %v958_v54, %v957_v51 }
 0x3e2   : > { %955 = vadd.xlane.f32.xlu1 %v954_v57  ;;  %v964_v9 = vadd.f32 %v960_v3, %v959_v56 }
 0x3e4   : > { %965 = vadd.xlane.f32.xlu0 %v964_v9 }
 0x3e6   : > { %962 = vadd.xlane.f32.xlu1 %v961_v8 }
 0x3f7   : > { %1015 = vperm.xlu1 %3849, %v3595_v58  }
 0x3fa   : > { %1001 = vperm.xlu0 %3850, %v3593_v61  }
 0x3fb   : > { %996 = vperm.xlu1 %3849, %v3592_v62  }
 0x3fe   : > { %1010 = vperm.xlu0 %3850, %v3594_v6  }
 0x3ff   : > { %1052 = vperm.xlu1 %3849, %v1049_v5  }
 0x46d   : > { %v953_v11 = vpop.xlane.xlu0 %952 }
 0x46e   : > { %v967_v27 = vmul.f32 0.00390625, %v953_v11 }
 0x46f   : > { %v956_v12 = vpop.xlane.xlu1 %955 }
 0x470   : > { %v968_v14 = vmul.f32 0.00390625, %v956_v12  ;;  %v971_v34 = vmul.f32 %v967_v27, %v967_v27  ;;  %v982_v9 = vsub.f32 %v4596_v50, %v967_v27  ;;  %v983_v61 = vsub.f32 %v4598_v16, %v967_v27  ;;  %v3609_v27 = vld [vmem:[%s6262_s5 + $0x110] sm:$0xff] }
 0x471   : > { %v966_v18 = vpop.xlane.xlu0 %965 }
 0x472   : > { %v970_v21 = vmul.f32 0.00390625, %v966_v18  ;;  %v972_v26 = vmul.f32 %v968_v14, %v968_v14  ;;  %v984_v35 = vsub.f32 %v946_v4, %v968_v14  ;;  %v985_v36 = vsub.f32 %v948_v55, %v968_v14 }
 0x473   : > { %v963_v17 = vpop.xlane.xlu1 %962 }
 0x474   : > { %v974_v32 = vsub.f32 %v970_v21, %v972_v26  ;;  %v969_v33 = vmul.f32 0.00390625, %v963_v17 }
 0x476   : > { %v976_v19 = vmax.f32 %v974_v32, 0.0  ;;  %v973_v2 = vsub.f32 %v969_v33, %v971_v34 }
 0x477   : > { %v1016_v51 = vpop.permute.xlu1 %1015 }
 0x478   : > { %v987_v52 = vadd.f32 1e-05, %v976_v19  ;;  %v975_v38 = vmax.f32 %v973_v2, 0.0 }
 0x479   : > { %v1002_v41 = vpop.permute.xlu0 %1001 }
 0x47a   : > { %3907 = vrsqrt.f32 %v987_v52  ;;  %v986_v49 = vadd.f32 1e-05, %v975_v38 }
 0x47b   : > { %v997_v1 = vpop.permute.xlu1 %996 }
 0x47c   : > { %3909 = vrsqrt.f32 %v986_v49 }
 0x47d   : > { %v1011_v11 = vpop.permute.xlu0 %1010 }
 0x47f   : > { %v1053_v19 = vpop.permute.xlu1 %1052 }
 0x484   : > { %v3908_v37 = vpop.eup %3907 }
 0x485   : > { %v992_v39 = vmul.f32 %v3908_v37, %v984_v35  ;;  %v993_v40 = vmul.f32 %v3908_v37, %v985_v36 }
 0x486   : > { %v3910_v3 = vpop.eup %3909 }
 0x487   : > { %v1006_v43 = vmul.f32 %v1002_v41, %v992_v39  ;;  %v1007_v48 = vmul.f32 %v1002_v41, %v993_v40  ;;  %v990_v62 = vmul.f32 %v3910_v3, %v982_v9  ;;  %v991_v0 = vmul.f32 %v3910_v3, %v983_v61 }
 0x489   : > { %v1020_v53 = vadd.f32 %v1016_v51, %v1006_v43  ;;  %v1021_v54 = vadd.f32 %v1016_v51, %v1007_v48  ;;  %v1004_v5 = vmul.f32 %v997_v1, %v990_v62  ;;  %v1005_v6 = vmul.f32 %v997_v1, %v991_v0 }
 0x48b   : > { %v3596_v56 = vmul.f32 -1.442695, %v1020_v53  ;;  %v3597_v57 = vmul.f32 -1.442695, %v1021_v54  ;;  %v1018_v12 = vadd.f32 %v1011_v11, %v1004_v5  ;;  %v1019_v18 = vadd.f32 %v1011_v11, %v1005_v6 }
 0x48d   : > { %3911 = vpow2.f32 %v3596_v56 }
 0x48e   : > { %3913 = vpow2.f32 %v3597_v57 }
 0x497   : > { %v3912_v8 = vpop.eup %3911 }
 0x498   : > { %v3914_v4 = vpop.eup %3913  ;;  %v1028_v55 = vadd.f32 1.0, %v3912_v8 }
 0x499   : > { %v1029_v58 = vadd.f32 1.0, %v3914_v4 }
 0x49a   : > { %3915 = vrcp.f32 %v1028_v55 }
 0x49b   : > { %3917 = vrcp.f32 %v1029_v58 }
 0x4a4   : > { %v3916_v14 = vpop.eup %3915 }
 0x4a5   : > { %v3918_v21 = vpop.eup %3917  ;;  %v1034_v26 = vmul.f32 %v3916_v14, %v1018_v12 }
 0x4a6   : > { %v1035_v32 = vmul.f32 %v3918_v21, %v1019_v18 }
 0x4a7   : > { %v1055_v52 = vadd.f32 %v1053_v19, %v1034_v26 }
 0x4a8   : > { %v1056_v50 = vadd.f32 %v1053_v19, %v1035_v32 }
 0x4a9   : > { %v4624_v17 = vmul.f32 %v1055_v52, %v4488_v42 }
 0x4aa   : > { %v1058_v16 = vmul.f32 %v1056_v50, %v4266_v7 }
 0x4ab   : > { %1059 = vrot.lane.b32.xlu0 %v4624_v17, %s6329_s0 }
 0x4ac   : > { %1061 = vrot.lane.b32.xlu1 %v1058_v16, %s6329_s0 }
 0x4af   : > { %1067 = vrot.lane.b32.xlu0 %v4624_v17, %s6324_s29 }
 0x4b0   : > { %1069 = vrot.lane.b32.xlu1 %v1058_v16, %s6324_s29 }
 0x4b3   : > { %1075 = vrot.lane.b32.xlu0 %v4624_v17, %s6327_s12 }
 0x4b4   : > { %1077 = vrot.lane.b32.xlu1 %v1058_v16, %s6327_s12 }
 0x4b7   : > { %1083 = vrot.lane.b32.xlu0 %v4624_v17, %s6330_s1 }
 0x4b8   : > { %1085 = vrot.lane.b32.xlu1 %v1058_v16, %s6330_s1 }
 0x4bb   : > { %1091 = vrot.lane.b32.xlu0 %v4624_v17, %s6322_s27 }
 0x4bc   : > { %1093 = vrot.lane.b32.xlu1 %v1058_v16, %s6322_s27 }
 0x4bf   : > { %1099 = vrot.lane.b32.xlu0 %v4624_v17, %s6323_s28 }
 0x4c0   : > { %1101 = vrot.lane.b32.xlu1 %v1058_v16, %s6323_s28 }
 0x4c3   : > { %1107 = vrot.lane.b32.xlu0 %v4624_v17, %s6325_s30 }
 0x4c4   : > { %1109 = vrot.lane.b32.xlu1 %v1058_v16, %s6325_s30 }
 0x4c7   : > { %1115 = vrot.lane.b32.xlu0 %v4624_v17, %s6326_s11 }
 0x4c8   : > { %1117 = vrot.lane.b32.xlu1 %v1058_v16, %s6326_s11 }
 0x4cc   : > { %1310 = vperm.xlu1 %3849, %v3609_v27  }
 0x51d   : > { %v1060_v33 = vpop.permute.xlu0 %1059 }
 0x51e   : > { %v1062_v34 = vpop.permute.xlu1 %1061 }
 0x51f   : > { %v1063_v2 = vsel %vm427_vm2, %v1060_v33, %v1062_v34  ;;  %v1064_v35 = vsel %vm427_vm2, %v1062_v34, %v1060_v33 }
 0x520   : > { %v1065_v40 = vmul.f32 %v1064_v35, %v4345_v28  ;;  %v1066_v41 = vmul.f32 %v1063_v2, %v4348_v29 }
 0x521   : > { %v1068_v36 = vpop.permute.xlu0 %1067 }
 0x522   : > { %v1070_v37 = vpop.permute.xlu1 %1069 }
 0x523   : > { %v1071_v38 = vsel %vm448_vm1, %v1068_v36, %v1070_v37  ;;  %v1072_v39 = vsel %vm448_vm1, %v1070_v37, %v1068_v36 }
 0x524   : > { %v1073_v43 = vmul.f32 %v1072_v39, %v4330_v23  ;;  %v1074_v48 = vmul.f32 %v1071_v38, %v4333_v24 }
 0x525   : > { %v1076_v49 = vpop.permute.xlu0 %1075 }
 0x526   : > { %v1123_v51 = vpack.c.bf16 %v1073_v43, %v1065_v40  ;;  %v1078_v53 = vpop.permute.xlu1 %1077  ;;  %v1124_v54 = vpack.c.bf16 %v1074_v48, %v1066_v41 }
 0x527   : > { %v1079_v56 = vsel %vm470_vm0, %v1076_v49, %v1078_v53  ;;  %v1080_v57 = vsel %vm470_vm0, %v1078_v53, %v1076_v49 }
 0x528   : > { %1160 = vmatprep.subr.bf16.mxu0 %v1124_v54  ;;  %v1081_v9 = vmul.f32 %v1080_v57, %v4327_v22  ;;  %v1082_v58 = vmul.f32 %v1079_v56, %v4337_v25  ;;  %v3853_v56 = vld [vmem:[%s6261_s4 + $0xc0] ss:$12 sps:$4 sm:$0xff]   ;;  %v3854_v57 = vld [vmem:[%s6261_s4 + $0xd8] ss:$12 sps:$4 sm:$0xff]  }
 0x529   : > { %1161 = vmatpush1.bf16.msra.mxu0 %v1123_v51  ;;  %v1084_v3 = vpop.permute.xlu0 %1083 }
 0x52a   : > { %v1086_v8 = vpop.permute.xlu1 %1085 }
 0x52b   : > { %v1087_v4 = vsel %vm492_vm3, %v1084_v3, %v1086_v8  ;;  %v1088_v55 = vsel %vm492_vm3, %v1086_v8, %v1084_v3 }
 0x52c   : > { %v1089_v61 = vmul.f32 %v1088_v55, %v4351_v30  ;;  %v1090_v62 = vmul.f32 %v1087_v4, %v4354_v31 }
 0x52d   : > { %v1092_v0 = vpop.permute.xlu0 %1091 }
 0x52e   : > { %v1125_v1 = vpack.c.bf16 %v1089_v61, %v1081_v9  ;;  %v1094_v5 = vpop.permute.xlu1 %1093  ;;  %v1126_v6 = vpack.c.bf16 %v1090_v62, %v1082_v58 }
 0x52f   : > { %v1095_v11 = vsel %vm514_vm7, %v1092_v0, %v1094_v5  ;;  %v1096_v12 = vsel %vm514_vm7, %v1094_v5, %v1092_v0 }
 0x530   : > { %v1097_v14 = vmul.f32 %v1095_v11, %v4377_v45  ;;  %v1098_v18 = vmul.f32 %v1096_v12, %v4380_v46  ;;  %1162 = vmatprep.subr.bf16.mxu0 %v1126_v6 }
 0x531   : > { %1163 = vmatpush1.bf16.msra.mxu0 %v1125_v1  ;;  %v1100_v21 = vpop.permute.xlu0 %1099 }
 0x532   : > { %v1127_v26 = vpack.c.bf16 %v1097_v14, %v4624_v17  ;;  %v1102_v32 = vpop.permute.xlu1 %1101  ;;  %v1128_v19 = vpack.c.bf16 %v1098_v18, %v1058_v16 }
 0x533   : > { %v1103_v52 = vsel %vm536_vm9, %v1100_v21, %v1102_v32  ;;  %v1104_v50 = vsel %vm536_vm9, %v1102_v32, %v1100_v21 }
 0x534   : > { %1164 = vmatprep.subr.bf16.mxu0 %v1128_v19  ;;  %v1105_v17 = vmul.f32 %v1103_v52, %v4398_v59  ;;  %v1106_v16 = vmul.f32 %v1104_v50, %v4401_v60 }
 0x535   : > { %1165 = vmatpush1.bf16.msra.mxu0 %v1127_v26  ;;  %v1108_v27 = vpop.permute.xlu0 %1107 }
 0x536   : > { %v1110_v33 = vpop.permute.xlu1 %1109 }
 0x537   : > { %v1111_v34 = vsel %vm558_vm11, %v1108_v27, %v1110_v33  ;;  %v1112_v2 = vsel %vm558_vm11, %v1110_v33, %v1108_v27 }
 0x538   : > { %v1113_v35 = vmul.f32 %v1111_v34, %v4407_v63  ;;  %v1114_v36 = vmul.f32 %v1112_v2, %v4418_v20  ;;  %v3613_v34 = vld [vmem:[%s6262_s5 + $0x150] sm:$0xff]  ;;  %v3614_v2 = vld [vmem:[%s6262_s5 + $0x158] sm:$0xff] }
 0x539   : > { %v1116_v37 = vpop.permute.xlu0 %1115 }
 0x53a   : > { %v1129_v38 = vpack.c.bf16 %v1113_v35, %v1105_v17  ;;  %v1118_v39 = vpop.permute.xlu1 %1117  ;;  %v1130_v40 = vpack.c.bf16 %v1114_v36, %v1106_v16  ;;  %v3608_v17 = vld [vmem:[%s6262_s5 + $0x108] sm:$0xff]  ;;  %v3610_v35 = vld [vmem:[%s6262_s5 + $0x118] sm:$0xff]  ;;  %v3607_v36 = vld [vmem:[%s6262_s5 + $0x100] sm:$0xff] }
 0x53b   : > { %v1119_v41 = vsel %vm580_vm13, %v1116_v37, %v1118_v39  ;;  %v1120_v43 = vsel %vm580_vm13, %v1118_v39, %v1116_v37  ;;  %v3612_v16 = vld [vmem:[%s6262_s5 + $0x148] sm:$0xff]  ;;  %v3611_v37 = vld [vmem:[%s6262_s5 + $0x140] sm:$0xff] }
 0x53c   : > { %v1121_v48 = vmul.f32 %v1119_v41, %v4435_v44  ;;  %v1122_v49 = vmul.f32 %v1120_v43, %v4438_v47  ;;  %1166 = vmatprep.subr.bf16.mxu0 %v1130_v40 }
 0x53d   : > { %1167 = vmatpush1.bf16.msra.mxu0 %v1129_v38 }
 0x53e   : > { %v1131_v51 = vpack.c.bf16 %v1121_v48, %v1121_v48  ;;  %v1132_v53 = vpack.c.bf16 %v1122_v49, %v1122_v49 }
 0x540   : > { %3604 = vmatprep.subr.msk.bf16.mxu0 %vm643_vm8, %v1132_v53  ;;  %v1155_v54 = vsel %vm643_vm8, %v1131_v51, 0  ;;  %vm1555_vm8 = vcmask 130048  }
 0x541   : > { %1169 = vmatpush1.bf16.msra.mxu0 %v1155_v54 }
 0x544   : > { %3605 = vmatmul.mubr.msk.bf16.vlgmr.msra.gmra.mrb[4].mxu0 %vm898_vm12, %v3853_v56 }
 0x545   : > { %1202 = vmatprep.mubr.bf16.mxu0 %v6287_v10 }
 0x54b   : > { %v1311_v38 = vpop.permute.xlu1 %1310 }
 0x54c   : > { %3606 = vmatmul.mubr.msk.bf16.gmra.mrb[8].mxu0 %vm898_vm12, %v3854_v57 }
 0x617   : > { %v4714_v3 = vpop.f32.mrb[4].mxu0 }
 0x618   : > { %v4716_v8 = vpop.f32.mrb[5].mxu0  ;;  %v1225_v4 = vmul.f32 %v4714_v3, %v4714_v3 }
 0x619   : > { %v4720_v55 = vpop.f32.mrb[6].mxu0  ;;  %v1213_v9 = vadd.f32 %v4716_v8, %v4714_v3  ;;  %v1226_v58 = vmul.f32 %v4716_v8, %v4716_v8 }
 0x61a   : > { %v4726_v61 = vpop.f32.mrb[7].mxu0  ;;  %v1227_v62 = vmul.f32 %v4720_v55, %v4720_v55 }
 0x61b   : > { %1214 = vadd.xlane.f32.xlu1 %v1213_v9  ;;  %v1216_v0 = vadd.f32 %v4726_v61, %v4720_v55  ;;  %v1233_v1 = vadd.f32 %v1226_v58, %v1225_v4  ;;  %v1228_v5 = vmul.f32 %v4726_v61, %v4726_v61 }
 0x61d   : > { %1217 = vadd.xlane.f32.xlu0 %v1216_v0  ;;  %v1236_v6 = vadd.f32 %v1228_v5, %v1227_v62 }
 0x61f   : > { %1234 = vadd.xlane.f32.xlu1 %v1233_v1  ;;  %v4734_v11 = vpop.f32.mrb[8].mxu0 }
 0x620   : > { %v4736_v12 = vpop.f32.mrb[9].mxu0  ;;  %v1229_v14 = vmul.f32 %v4734_v11, %v4734_v11 }
 0x621   : > { %1237 = vadd.xlane.f32.xlu0 %v1236_v6  ;;  %v4740_v18 = vpop.f32.mrb[10].mxu0  ;;  %v1219_v21 = vadd.f32 %v4736_v12, %v4734_v11  ;;  %v1230_v26 = vmul.f32 %v4736_v12, %v4736_v12 }
 0x622   : > { %v4746_v32 = vpop.f32.mrb[11].mxu0  ;;  %v1231_v19 = vmul.f32 %v4740_v18, %v4740_v18 }
 0x623   : > { %v1222_v52 = vadd.f32 %v4746_v32, %v4740_v18  ;;  %v1239_v50 = vadd.f32 %v1230_v26, %v1229_v14  ;;  %v1232_v27 = vmul.f32 %v4746_v32, %v4746_v32 }
 0x625   : > { %1220 = vadd.xlane.f32.xlu0 %v1219_v21  ;;  %1223 = vadd.xlane.f32.xlu1 %v1222_v52  ;;  %v1242_v33 = vadd.f32 %v1232_v27, %v1231_v19 }
 0x629   : > { %1240 = vadd.xlane.f32.xlu0 %v1239_v50 }
 0x62d   : > { %1243 = vadd.xlane.f32.xlu0 %v1242_v33 }
 0x636   : > { %1338 = vperm.xlu1 %3849, %v3613_v34  }
 0x63a   : > { %1343 = vperm.xlu1 %3849, %v3614_v2  }
 0x63e   : > { %1305 = vperm.xlu1 %3849, %v3608_v17  }
 0x642   : > { %1333 = vperm.xlu1 %3849, %v3612_v16  }
 0x643   : > { %1315 = vperm.xlu0 %3850, %v3610_v35  }
 0x647   : > { %1300 = vperm.xlu0 %3850, %v3607_v36  }
 0x64b   : > { %1328 = vperm.xlu0 %3850, %v3611_v37  }
 0x6a8   : > { %v1215_v39 = vpop.xlane.xlu1 %1214 }
 0x6a9   : > { %v4775_v14 = vmul.f32 0.00390625, %v1215_v39 }
 0x6aa   : > { %v1218_v40 = vpop.xlane.xlu0 %1217 }
 0x6ab   : > { %v4777_v26 = vmul.f32 0.00390625, %v1218_v40  ;;  %v1253_v52 = vmul.f32 %v4775_v14, %v4775_v14 }
 0x6ac   : > { %v1235_v43 = vpop.xlane.xlu1 %1234 }
 0x6ad   : > { %v1249_v19 = vmul.f32 0.00390625, %v1235_v43  ;;  %v1254_v33 = vmul.f32 %v4777_v26, %v4777_v26 }
 0x6ae   : > { %v1238_v41 = vpop.xlane.xlu0 %1237 }
 0x6af   : > { %v1250_v50 = vmul.f32 0.00390625, %v1238_v41  ;;  %v1257_v27 = vsub.f32 %v1249_v19, %v1253_v52 }
 0x6b1   : > { %v1258_v16 = vsub.f32 %v1250_v50, %v1254_v33  ;;  %v1261_v37 = vmax.f32 %v1257_v27, 0.0 }
 0x6b2   : > { %v1221_v48 = vpop.xlane.xlu0 %1220  ;;  %v1224_v51 = vpop.xlane.xlu1 %1223 }
 0x6b3   : > { %v1247_v49 = vmul.f32 0.00390625, %v1221_v48  ;;  %v1248_v54 = vmul.f32 0.00390625, %v1224_v51 }
 0x6b5   : > { %v1255_v56 = vmul.f32 %v1247_v49, %v1247_v49  ;;  %v1256_v0 = vmul.f32 %v1248_v54, %v1248_v54  ;;  %v1278_v34 = vsub.f32 %v4734_v11, %v1247_v49  ;;  %v1279_v2 = vsub.f32 %v4736_v12, %v1247_v49 }
 0x6b6   : > { %v1241_v53 = vpop.xlane.xlu0 %1240  ;;  %v1339_v39 = vpop.permute.xlu1 %1338  ;;  %v1280_v40 = vsub.f32 %v4740_v18, %v1248_v54  ;;  %v1281_v43 = vsub.f32 %v4746_v32, %v1248_v54 }
 0x6b7   : > { %v1251_v57 = vmul.f32 0.00390625, %v1241_v53  ;;  %v1262_v53 = vmax.f32 %v1258_v16, 0.0  ;;  %v1274_v16 = vsub.f32 %v4714_v3, %v4775_v14 }
 0x6b9   : > { %v1259_v4 = vsub.f32 %v1251_v57, %v1255_v56 }
 0x6ba   : > { %v1244_v9 = vpop.xlane.xlu0 %1243 }
 0x6bb   : > { %v1263_v58 = vmax.f32 %v1259_v4, 0.0  ;;  %v1252_v62 = vmul.f32 0.00390625, %v1244_v9  ;;  %v1282_v9 = vadd.f32 1e-05, %v1261_v37  ;;  %v1275_v37 = vsub.f32 %v4716_v8, %v4775_v14 }
 0x6bd   : > { %v1284_v1 = vadd.f32 1e-05, %v1263_v58  ;;  %v1260_v5 = vsub.f32 %v1252_v62, %v1256_v0 }
 0x6bf   : > { %3919 = vrsqrt.f32 %v1284_v1  ;;  %v1264_v6 = vmax.f32 %v1260_v5, 0.0  ;;  %v1283_v1 = vadd.f32 1e-05, %v1262_v53  ;;  %v1344_v5 = vpop.permute.xlu1 %1343 }
 0x6c1   : > { %v1285_v21 = vadd.f32 1e-05, %v1264_v6 }
 0x6c2   : > { %v1316_v12 = vpop.permute.xlu0 %1315 }
 0x6c3   : > { %3921 = vrsqrt.f32 %v1285_v21 }
 0x6c6   : > { %v1301_v33 = vpop.permute.xlu0 %1300 }
 0x6c9   : > { %v3920_v17 = vpop.eup %3919 }
 0x6ca   : > { %v1294_v35 = vmul.f32 %v3920_v17, %v1278_v34  ;;  %v1295_v36 = vmul.f32 %v3920_v17, %v1279_v2  ;;  %v1329_v53 = vpop.permute.xlu0 %1328 }
 0x6cc   : > { %v1322_v48 = vmul.f32 %v1311_v38, %v1294_v35  ;;  %v1323_v41 = vmul.f32 %v1311_v38, %v1295_v36  ;;  %v1276_v35 = vsub.f32 %v4720_v55, %v4777_v26 }
 0x6cd   : > { %v3922_v51 = vpop.eup %3921 }
 0x6ce   : > { %v1350_v56 = vadd.f32 %v1339_v39, %v1322_v48  ;;  %v1351_v57 = vadd.f32 %v1339_v39, %v1323_v41  ;;  %v1296_v4 = vmul.f32 %v3922_v51, %v1280_v40  ;;  %v1297_v11 = vmul.f32 %v3922_v51, %v1281_v43  ;;  %v1306_v41 = vpop.permute.xlu1 %1305 }
 0x6cf   : > { %v1277_v39 = vsub.f32 %v4726_v61, %v4777_v26 }
 0x6d0   : > { %v3615_v49 = vmul.f32 -1.442695, %v1350_v56  ;;  %v3616_v58 = vmul.f32 -1.442695, %v1351_v57  ;;  %v1324_v62 = vmul.f32 %v1316_v12, %v1296_v4  ;;  %v1325_v0 = vmul.f32 %v1316_v12, %v1297_v11 }
 0x6d2   : > { %3923 = vpow2.f32 %v3615_v49  ;;  %v1352_v18 = vadd.f32 %v1344_v5, %v1324_v62  ;;  %v1353_v6 = vadd.f32 %v1344_v5, %v1325_v0  ;;  %v1334_v14 = vpop.permute.xlu1 %1333 }
 0x6d3   : > { %3925 = vpow2.f32 %v3616_v58 }
 0x6d4   : > { %3927 = vrsqrt.f32 %v1282_v9  ;;  %v3617_v32 = vmul.f32 -1.442695, %v1352_v18  ;;  %v3618_v38 = vmul.f32 -1.442695, %v1353_v6 }
 0x6d5   : > { %3929 = vrsqrt.f32 %v1283_v1 }
 0x6d6   : > { %3931 = vpow2.f32 %v3617_v32 }
 0x6d7   : > { %3933 = vpow2.f32 %v3618_v38 }
 0x6dc   : > { %v3924_v54 = vpop.eup %3923 }
 0x6dd   : > { %v3926_v21 = vpop.eup %3925  ;;  %v1366_v19 = vadd.f32 1.0, %v3924_v54 }
 0x6de   : > { %v3928_v52 = vpop.eup %3927  ;;  %v1367_v50 = vadd.f32 1.0, %v3926_v21  ;;  %v3857_v21 = vld [vmem:[%s6261_s4 + $0x124] ss:$12 sps:$4 sm:$0xff]  }
 0x6df   : > { %v3930_v27 = vpop.eup %3929  ;;  %3935 = vrcp.f32 %v1366_v19  ;;  %v1290_v43 = vmul.f32 %v3928_v52, %v1274_v16  ;;  %v1291_v51 = vmul.f32 %v3928_v52, %v1275_v37  ;;  %3627 = vmatprep.mubr.msk.bf16.mxu0 %vm1555_vm8, %v3857_v21  ;;  %v3642_v19 = vld [vmem:[%s6263_s6 + $0x18] sm:$0xff] }
 0x6e0   : > { %v3932_v34 = vpop.eup %3931  ;;  %3937 = vrcp.f32 %v1367_v50  ;;  %v1292_v40 = vmul.f32 %v3930_v27, %v1276_v35  ;;  %v1293_v48 = vmul.f32 %v3930_v27, %v1277_v39  ;;  %v1791_v52 = vmul.f32 %v3642_v19, %v4536_v15 }
 0x6e1   : > { %v3934_v2 = vpop.eup %3933  ;;  %v1368_v17 = vadd.f32 1.0, %v3932_v34  ;;  %v1318_v56 = vmul.f32 %v1301_v33, %v1290_v43  ;;  %v1319_v3 = vmul.f32 %v1301_v33, %v1291_v51  ;;  %v3631_v33 = vld [vmem:[%s6262_s5 + $0x190] sm:$0xff] }
 0x6e2   : > { %v1369_v36 = vadd.f32 1.0, %v3934_v2  ;;  %v1320_v57 = vmul.f32 %v1306_v41, %v1292_v40  ;;  %v1321_v11 = vmul.f32 %v1306_v41, %v1293_v48  ;;  %v1795_v50 = vsel %vm1045_vm10, %v1791_v52, 0.0  ;;  %v3641_v34 = vld [vmem:[%s6263_s6 + $0x10] sm:$0xff] }
 0x6e3   : > { %3939 = vrcp.f32 %v1368_v17  ;;  %v1346_v4 = vadd.f32 %v1329_v53, %v1318_v56  ;;  %v1347_v9 = vadd.f32 %v1329_v53, %v1319_v3  ;;  %v1790_v16 = vmul.f32 %v3641_v34, %v4536_v15 }
 0x6e4   : > { %3941 = vrcp.f32 %v1369_v36  ;;  %v1348_v61 = vadd.f32 %v1334_v14, %v1320_v57  ;;  %v1349_v62 = vadd.f32 %v1334_v14, %v1321_v11 }
 0x6e5   : > { %v1792_v35 = vsel %vm1045_vm10, %v1790_v16, 0.0 }
 0x6e9   : > { %v3936_v55 = vpop.eup %3935 }
 0x6ea   : > { %v3938_v12 = vpop.eup %3937  ;;  %v1378_v8 = vmul.f32 %v3936_v55, %v1346_v4 }
 0x6eb   : > { %v1379_v49 = vmul.f32 %v3938_v12, %v1347_v9 }
 0x6ec   : > { %v4796_v26 = vmul.f32 %v1378_v8, %v4488_v42 }
 0x6ed   : > { %v3940_v58 = vpop.eup %3939  ;;  %v4804_v6 = vmul.f32 %v1379_v49, %v4266_v7 }
 0x6ee   : > { %v3942_v0 = vpop.eup %3941  ;;  %v1380_v1 = vmul.f32 %v3940_v58, %v1348_v61  ;;  %1386 = vrot.lane.b32.xlu0 %v4796_v26, %s6329_s0 }
 0x6ef   : > { %v1381_v5 = vmul.f32 %v3942_v0, %v1349_v62 }
 0x6f0   : > { %v4801_v18 = vmul.f32 %v1380_v1, %v4488_v42 }
 0x6f1   : > { %v4807_v32 = vmul.f32 %v1381_v5, %v4266_v7 }
 0x6f2   : > { %1390 = vrot.lane.b32.xlu0 %v4804_v6, %s6329_s0  ;;  %1388 = vrot.lane.b32.xlu1 %v4801_v18, %s6329_s0  ;;  %v1522_v38 = vpack.c.bf16 %v4801_v18, %v4796_v26 }
 0x6f3   : > { %v1523_v54 = vpack.c.bf16 %v4807_v32, %v4804_v6 }
 0x6f6   : > { %1402 = vrot.lane.b32.xlu0 %v4796_v26, %s6324_s29  ;;  %1392 = vrot.lane.b32.xlu1 %v4807_v32, %s6329_s0 }
 0x6fa   : > { %1406 = vrot.lane.b32.xlu0 %v4804_v6, %s6324_s29  ;;  %1404 = vrot.lane.b32.xlu1 %v4801_v18, %s6324_s29 }
 0x6fe   : > { %1418 = vrot.lane.b32.xlu0 %v4796_v26, %s6327_s12  ;;  %1408 = vrot.lane.b32.xlu1 %v4807_v32, %s6324_s29 }
 0x702   : > { %1422 = vrot.lane.b32.xlu0 %v4804_v6, %s6327_s12  ;;  %1420 = vrot.lane.b32.xlu1 %v4801_v18, %s6327_s12 }
 0x706   : > { %1434 = vrot.lane.b32.xlu0 %v4796_v26, %s6330_s1  ;;  %1424 = vrot.lane.b32.xlu1 %v4807_v32, %s6327_s12 }
 0x70a   : > { %1438 = vrot.lane.b32.xlu0 %v4804_v6, %s6330_s1  ;;  %1436 = vrot.lane.b32.xlu1 %v4801_v18, %s6330_s1 }
 0x70e   : > { %1450 = vrot.lane.b32.xlu0 %v4796_v26, %s6322_s27  ;;  %1440 = vrot.lane.b32.xlu1 %v4807_v32, %s6330_s1 }
 0x712   : > { %1454 = vrot.lane.b32.xlu0 %v4804_v6, %s6322_s27  ;;  %1452 = vrot.lane.b32.xlu1 %v4801_v18, %s6322_s27 }
 0x716   : > { %1466 = vrot.lane.b32.xlu0 %v4796_v26, %s6323_s28  ;;  %1456 = vrot.lane.b32.xlu1 %v4807_v32, %s6322_s27 }
 0x71a   : > { %1470 = vrot.lane.b32.xlu0 %v4804_v6, %s6323_s28  ;;  %1468 = vrot.lane.b32.xlu1 %v4801_v18, %s6323_s28 }
 0x71e   : > { %1482 = vrot.lane.b32.xlu0 %v4796_v26, %s6325_s30  ;;  %1472 = vrot.lane.b32.xlu1 %v4807_v32, %s6323_s28 }
 0x722   : > { %1486 = vrot.lane.b32.xlu0 %v4804_v6, %s6325_s30  ;;  %1484 = vrot.lane.b32.xlu1 %v4801_v18, %s6325_s30 }
 0x726   : > { %1498 = vrot.lane.b32.xlu0 %v4796_v26, %s6326_s11  ;;  %1488 = vrot.lane.b32.xlu1 %v4807_v32, %s6325_s30 }
 0x72a   : > { %1502 = vrot.lane.b32.xlu0 %v4804_v6, %s6326_s11  ;;  %1500 = vrot.lane.b32.xlu1 %v4801_v18, %s6326_s11 }
 0x72e   : > { %1504 = vrot.lane.b32.xlu1 %v4807_v32, %s6326_s11 }
 0x749   : > { %1793 = vadd.xlane.f32.xlu0 %v1792_v35 }
 0x752   : > { %1796 = vadd.xlane.f32.xlu1 %v1795_v50 }
 0x760   : > { %v1387_v27 = vpop.permute.xlu0 %1386 }
 0x763   : > { %1712 = vperm.xlu1 %3849, %v3631_v33  }
 0x764   : > { %v1391_v2 = vpop.permute.xlu0 %1390  ;;  %v1389_v17 = vpop.permute.xlu1 %1388 }
 0x765   : > { %v1394_v36 = vsel %vm427_vm2, %v1387_v27, %v1391_v2  ;;  %v1396_v37 = vsel %vm427_vm2, %v1391_v2, %v1387_v27 }
 0x766   : > { %v1398_v41 = vmul.f32 %v1396_v37, %v4345_v28  ;;  %v1399_v15 = vmul.f32 %v1394_v36, %v4348_v29 }
 0x768   : > { %v1403_v39 = vpop.permute.xlu0 %1402  ;;  %v1393_v40 = vpop.permute.xlu1 %1392 }
 0x769   : > { %v1395_v43 = vsel %vm427_vm2, %v1389_v17, %v1393_v40  ;;  %v1397_v48 = vsel %vm427_vm2, %v1393_v40, %v1389_v17 }
 0x76a   : > { %v1400_v51 = vmul.f32 %v1397_v48, %v4345_v28  ;;  %v1401_v53 = vmul.f32 %v1395_v43, %v4348_v29 }
 0x76c   : > { %v1514_v56 = vpack.c.bf16 %v1400_v51, %v1398_v41  ;;  %v1407_v3 = vpop.permute.xlu0 %1406  ;;  %v1405_v57 = vpop.permute.xlu1 %1404  ;;  %v1515_v4 = vpack.c.bf16 %v1401_v53, %v1399_v15 }
 0x76d   : > { %v1410_v55 = vsel %vm448_vm1, %v1403_v39, %v1407_v3  ;;  %v1412_v11 = vsel %vm448_vm1, %v1407_v3, %v1403_v39 }
 0x76e   : > { %1562 = vmatprep.subr.bf16.mxu0 %v1515_v4  ;;  %v1414_v49 = vmul.f32 %v1412_v11, %v4330_v23  ;;  %v1415_v61 = vmul.f32 %v1410_v55, %v4333_v24 }
 0x76f   : > { %1563 = vmatpush1.bf16.msra.mxu0 %v1514_v56 }
 0x770   : > { %v1419_v9 = vpop.permute.xlu0 %1418  ;;  %v1409_v12 = vpop.permute.xlu1 %1408 }
 0x771   : > { %v1411_v8 = vsel %vm448_vm1, %v1405_v57, %v1409_v12  ;;  %v1413_v14 = vsel %vm448_vm1, %v1409_v12, %v1405_v57 }
 0x772   : > { %v1416_v58 = vmul.f32 %v1413_v14, %v4330_v23  ;;  %v1417_v62 = vmul.f32 %v1411_v8, %v4333_v24 }
 0x774   : > { %v1516_v0 = vpack.c.bf16 %v1416_v58, %v1414_v49  ;;  %v1423_v1 = vpop.permute.xlu0 %1422  ;;  %v1421_v5 = vpop.permute.xlu1 %1420  ;;  %v1517_v21 = vpack.c.bf16 %v1417_v62, %v1415_v61 }
 0x775   : > { %v1426_v19 = vsel %vm470_vm0, %v1419_v9, %v1423_v1  ;;  %v1428_v52 = vsel %vm470_vm0, %v1423_v1, %v1419_v9 }
 0x776   : > { %1564 = vmatprep.subr.bf16.mxu0 %v1517_v21  ;;  %v1430_v2 = vmul.f32 %v1428_v52, %v4327_v22  ;;  %v1431_v17 = vmul.f32 %v1426_v19, %v4337_v25 }
 0x777   : > { %1565 = vmatpush1.bf16.msra.mxu0 %v1516_v0 }
 0x778   : > { %v1435_v50 = vpop.permute.xlu0 %1434  ;;  %v1425_v27 = vpop.permute.xlu1 %1424 }
 0x779   : > { %v1427_v33 = vsel %vm470_vm0, %v1421_v5, %v1425_v27  ;;  %v1429_v34 = vsel %vm470_vm0, %v1425_v27, %v1421_v5 }
 0x77a   : > { %v1432_v16 = vmul.f32 %v1429_v34, %v4327_v22  ;;  %v1433_v35 = vmul.f32 %v1427_v33, %v4337_v25 }
 0x77c   : > { %v1518_v36 = vpack.c.bf16 %v1432_v16, %v1430_v2  ;;  %v1439_v37 = vpop.permute.xlu0 %1438  ;;  %v1437_v39 = vpop.permute.xlu1 %1436  ;;  %v1519_v40 = vpack.c.bf16 %v1433_v35, %v1431_v17 }
 0x77d   : > { %v1442_v43 = vsel %vm492_vm3, %v1435_v50, %v1439_v37  ;;  %v1444_v48 = vsel %vm492_vm3, %v1439_v37, %v1435_v50 }
 0x77e   : > { %1566 = vmatprep.subr.bf16.mxu0 %v1519_v40  ;;  %v1446_v56 = vmul.f32 %v1444_v48, %v4351_v30  ;;  %v1447_v3 = vmul.f32 %v1442_v43, %v4354_v31 }
 0x77f   : > { %1567 = vmatpush1.bf16.msra.mxu0 %v1518_v36 }
 0x780   : > { %v1451_v41 = vpop.permute.xlu0 %1450  ;;  %v1441_v15 = vpop.permute.xlu1 %1440 }
 0x781   : > { %v1443_v51 = vsel %vm492_vm3, %v1437_v39, %v1441_v15  ;;  %v1445_v53 = vsel %vm492_vm3, %v1441_v15, %v1437_v39 }
 0x782   : > { %v1448_v57 = vmul.f32 %v1445_v53, %v4351_v30  ;;  %v1449_v4 = vmul.f32 %v1443_v51, %v4354_v31 }
 0x784   : > { %v1520_v55 = vpack.c.bf16 %v1448_v57, %v1446_v56  ;;  %v1455_v11 = vpop.permute.xlu0 %1454  ;;  %v1453_v9 = vpop.permute.xlu1 %1452  ;;  %v1521_v12 = vpack.c.bf16 %v1449_v4, %v1447_v3 }
 0x785   : > { %v1458_v8 = vsel %vm514_vm7, %v1451_v41, %v1455_v11  ;;  %v1460_v14 = vsel %vm514_vm7, %v1455_v11, %v1451_v41 }
 0x786   : > { %1568 = vmatprep.subr.bf16.mxu0 %v1521_v12  ;;  %v1462_v0 = vmul.f32 %v1458_v8, %v4377_v45  ;;  %v1463_v1 = vmul.f32 %v1460_v14, %v4380_v46 }
 0x787   : > { %1569 = vmatpush1.bf16.msra.mxu0 %v1520_v55 }
 0x788   : > { %v1467_v49 = vpop.permute.xlu0 %1466  ;;  %1570 = vmatprep.subr.bf16.mxu0 %v1523_v54  ;;  %v1457_v61 = vpop.permute.xlu1 %1456 }
 0x789   : > { %v1459_v58 = vsel %vm514_vm7, %v1453_v9, %v1457_v61  ;;  %v1461_v62 = vsel %vm514_vm7, %v1457_v61, %v1453_v9 }
 0x78a   : > { %v1464_v5 = vmul.f32 %v1459_v58, %v4377_v45  ;;  %v1465_v21 = vmul.f32 %v1461_v62, %v4380_v46 }
 0x78b   : > { %1571 = vmatpush1.bf16.msra.mxu0 %v1522_v38 }
 0x78c   : > { %v1524_v6 = vpack.c.bf16 %v1464_v5, %v1462_v0  ;;  %v1471_v32 = vpop.permute.xlu0 %1470  ;;  %v1469_v54 = vpop.permute.xlu1 %1468  ;;  %v1525_v19 = vpack.c.bf16 %v1465_v21, %v1463_v1  ;;  %v3855_v21 = vld [vmem:[%s6261_s4 + $0x120] ss:$12 sps:$4 sm:$0xff]  }
 0x78d   : > { %v1474_v52 = vsel %vm536_vm9, %v1467_v49, %v1471_v32  ;;  %v1476_v50 = vsel %vm536_vm9, %v1471_v32, %v1467_v49  ;;  %v3860_v32 = vld [vmem:[%s6261_s4 + $0x138] ss:$12 sps:$4 sm:$0xff]  }
 0x78e   : > { %1572 = vmatprep.subr.bf16.mxu0 %v1525_v19  ;;  %v1478_v18 = vmul.f32 %v1474_v52, %v4398_v59  ;;  %v1479_v38 = vmul.f32 %v1476_v50, %v4401_v60 }
 0x78f   : > { %1573 = vmatpush1.bf16.msra.mxu0 %v1524_v6  ;;  %v3858_v6 = vld [vmem:[%s6261_s4 + $0x13c] ss:$12 sps:$4 sm:$0xff]  }
 0x790   : > { %v1483_v27 = vpop.permute.xlu0 %1482  ;;  %v1473_v33 = vpop.permute.xlu1 %1472 }
 0x791   : > { %v1475_v34 = vsel %vm536_vm9, %v1469_v54, %v1473_v33  ;;  %v1477_v26 = vsel %vm536_vm9, %v1473_v33, %v1469_v54 }
 0x792   : > { %v1480_v2 = vmul.f32 %v1475_v34, %v4398_v59  ;;  %v1481_v17 = vmul.f32 %v1477_v26, %v4401_v60 }
 0x794   : > { %v1526_v16 = vpack.c.bf16 %v1480_v2, %v1478_v18  ;;  %v1487_v35 = vpop.permute.xlu0 %1486  ;;  %v1485_v36 = vpop.permute.xlu1 %1484  ;;  %v1527_v37 = vpack.c.bf16 %v1481_v17, %v1479_v38 }
 0x795   : > { %v1490_v39 = vsel %vm558_vm11, %v1483_v27, %v1487_v35  ;;  %v1492_v40 = vsel %vm558_vm11, %v1487_v35, %v1483_v27 }
 0x796   : > { %1574 = vmatprep.subr.bf16.mxu0 %v1527_v37  ;;  %v1494_v51 = vmul.f32 %v1490_v39, %v4407_v63  ;;  %v1495_v53 = vmul.f32 %v1492_v40, %v4418_v20 }
 0x797   : > { %1575 = vmatpush1.bf16.msra.mxu0 %v1526_v16 }
 0x798   : > { %v1499_v43 = vpop.permute.xlu0 %1498  ;;  %v1489_v48 = vpop.permute.xlu1 %1488 }
 0x799   : > { %v1491_v41 = vsel %vm558_vm11, %v1485_v36, %v1489_v48  ;;  %v1493_v15 = vsel %vm558_vm11, %v1489_v48, %v1485_v36 }
 0x79a   : > { %v1496_v56 = vmul.f32 %v1491_v41, %v4407_v63  ;;  %v1497_v3 = vmul.f32 %v1493_v15, %v4418_v20 }
 0x79c   : > { %v1528_v57 = vpack.c.bf16 %v1496_v56, %v1494_v51  ;;  %v1503_v4 = vpop.permute.xlu0 %1502  ;;  %v1501_v55 = vpop.permute.xlu1 %1500  ;;  %v1529_v11 = vpack.c.bf16 %v1497_v3, %v1495_v53  ;;  %v3635_v56 = vld [vmem:[%s6262_s5 + $0x1d0] sm:$0xff]  ;;  %v3636_v3 = vld [vmem:[%s6262_s5 + $0x1d8] sm:$0xff] }
 0x79d   : > { %v1506_v9 = vsel %vm580_vm13, %v1499_v43, %v1503_v4  ;;  %v1508_v12 = vsel %vm580_vm13, %v1503_v4, %v1499_v43  ;;  %v3644_v4 = vld [vmem:[%s6264_s7 + $0x18] sm:$0xff] }
 0x79e   : > { %1576 = vmatprep.subr.bf16.mxu0 %v1529_v11  ;;  %v1510_v61 = vmul.f32 %v1506_v9, %v4435_v44  ;;  %v1511_v58 = vmul.f32 %v1508_v12, %v4438_v47  ;;  %v3632_v11 = vld [vmem:[%s6262_s5 + $0x198] sm:$0xff] }
 0x79f   : > { %1577 = vmatpush1.bf16.msra.mxu0 %v1528_v57  ;;  %v3630_v57 = vld [vmem:[%s6262_s5 + $0x188] sm:$0xff] }
 0x7a0   : > { %v1505_v8 = vpop.permute.xlu1 %1504 }
 0x7a1   : > { %v1507_v14 = vsel %vm580_vm13, %v1501_v55, %v1505_v8  ;;  %v1509_v49 = vsel %vm580_vm13, %v1505_v8, %v1501_v55  ;;  %v3634_v55 = vld [vmem:[%s6262_s5 + $0x1c8] sm:$0xff]  ;;  %v3629_v8 = vld [vmem:[%s6262_s5 + $0x180] sm:$0xff] }
 0x7a2   : > { %v1512_v62 = vmul.f32 %v1507_v14, %v4435_v44  ;;  %v1513_v0 = vmul.f32 %v1509_v49, %v4438_v47  ;;  %v3633_v14 = vld [vmem:[%s6262_s5 + $0x1c0] sm:$0xff]  ;;  %v3643_v49 = vld [vmem:[%s6264_s7 + $0x10] sm:$0xff] }
 0x7a4   : > { %v1530_v1 = vpack.c.bf16 %v1512_v62, %v1510_v61  ;;  %v1531_v5 = vpack.c.bf16 %v1513_v0, %v1511_v58 }
 0x7a6   : > { %1578 = vmatprep.subr.bf16.mxu0 %v1531_v5 }
 0x7a7   : > { %1579 = vmatpush1.bf16.msra.mxu0 %v1530_v1 }
 0x7aa   : > { %1595 = vmatmul.mubr.bf16.vlgmr.msra.gmra.mrb[12].mxu0 %v3855_v21 }
 0x7ab   : > { %3628 = vmatprep.mubr.msk.bf16.mxu0 %vm1555_vm8, %v3858_v6 }
 0x7b2   : > { %1605 = vmatmul.mubr.bf16.gmra.mrb[16].mxu0 %v3860_v32 }
 0x7d6   : > { %v1794_v61 = vpop.xlane.xlu0 %1793 }
 0x7d7   : > { %v1798_v58 = vadd.f32 %v3643_v49, %v1794_v61 }
 0x7df   : > { %v1797_v9 = vpop.xlane.xlu1 %1796 }
 0x7e0   : > { %v1799_v12 = vadd.f32 %v3644_v4, %v1797_v9 }
 0x7e3   : > { %v1713_v62 = vpop.permute.xlu1 %1712 }
 0x87d   : > { %v5004_v54 = vpop.f32.mrb[12].mxu0 }
 0x87e   : > { %v1627_v19 = vmul.f32 %v5004_v54, %v5004_v54  ;;  %v5008_v52 = vpop.f32.mrb[13].mxu0 }
 0x87f   : > { %v1615_v50 = vadd.f32 %v5008_v52, %v5004_v54  ;;  %v1628_v27 = vmul.f32 %v5008_v52, %v5008_v52  ;;  %v5014_v33 = vpop.f32.mrb[14].mxu0 }
 0x880   : > { %v1629_v34 = vmul.f32 %v5014_v33, %v5014_v33  ;;  %v5018_v26 = vpop.f32.mrb[15].mxu0 }
 0x881   : > { %v1618_v18 = vadd.f32 %v5018_v26, %v5014_v33  ;;  %v1630_v38 = vmul.f32 %v5018_v26, %v5018_v26  ;;  %1616 = vadd.xlane.f32.xlu1 %v1615_v50  ;;  %v1635_v2 = vadd.f32 %v1628_v27, %v1627_v19 }
 0x883   : > { %1619 = vadd.xlane.f32.xlu0 %v1618_v18  ;;  %v1638_v17 = vadd.f32 %v1630_v38, %v1629_v34 }
 0x885   : > { %1636 = vadd.xlane.f32.xlu1 %v1635_v2  ;;  %v5024_v16 = vpop.f32.mrb[16].mxu0 }
 0x886   : > { %v1631_v35 = vmul.f32 %v5024_v16, %v5024_v16  ;;  %v5028_v36 = vpop.f32.mrb[17].mxu0 }
 0x887   : > { %v1621_v37 = vadd.f32 %v5028_v36, %v5024_v16  ;;  %v1632_v39 = vmul.f32 %v5028_v36, %v5028_v36  ;;  %1639 = vadd.xlane.f32.xlu0 %v1638_v17  ;;  %v5034_v40 = vpop.f32.mrb[18].mxu0 }
 0x888   : > { %v1633_v43 = vmul.f32 %v5034_v40, %v5034_v40  ;;  %v5038_v48 = vpop.f32.mrb[19].mxu0 }
 0x889   : > { %v1624_v41 = vadd.f32 %v5038_v48, %v5034_v40  ;;  %v1634_v15 = vmul.f32 %v5038_v48, %v5038_v48  ;;  %v1641_v51 = vadd.f32 %v1632_v39, %v1631_v35 }
 0x88b   : > { %1642 = vadd.xlane.f32.xlu1 %v1641_v51  ;;  %1622 = vadd.xlane.f32.xlu0 %v1621_v37  ;;  %v1644_v53 = vadd.f32 %v1634_v15, %v1633_v43 }
 0x88f   : > { %1625 = vadd.xlane.f32.xlu0 %v1624_v41 }
 0x893   : > { %1645 = vadd.xlane.f32.xlu0 %v1644_v53 }
 0x89c   : > { %1740 = vperm.xlu1 %3849, %v3635_v56  }
 0x8a0   : > { %1745 = vperm.xlu1 %3849, %v3636_v3  }
 0x8a4   : > { %1707 = vperm.xlu1 %3849, %v3630_v57  }
 0x8a8   : > { %1735 = vperm.xlu1 %3849, %v3634_v55  }
 0x8a9   : > { %1717 = vperm.xlu0 %3850, %v3632_v11  }
 0x8ac   : > { %1807 = vperm.xlu1 %3849, %v1799_v12  }
 0x8ad   : > { %1702 = vperm.xlu0 %3850, %v3629_v8  }
 0x8b1   : > { %1730 = vperm.xlu0 %3850, %v3633_v14  }
 0x8b5   : > { %1802 = vperm.xlu0 %3850, %v1798_v58  }
 0x90e   : > { %v1617_v0 = vpop.xlane.xlu1 %1616 }
 0x90f   : > { %v5071_v15 = vmul.f32 0.00390625, %v1617_v0 }
 0x910   : > { %v1620_v1 = vpop.xlane.xlu0 %1619 }
 0x911   : > { %v5073_v53 = vmul.f32 0.00390625, %v1620_v1  ;;  %v1655_v3 = vmul.f32 %v5071_v15, %v5071_v15 }
 0x912   : > { %v1637_v5 = vpop.xlane.xlu1 %1636 }
 0x913   : > { %v1651_v56 = vmul.f32 0.00390625, %v1637_v5  ;;  %v1656_v12 = vmul.f32 %v5073_v53, %v5073_v53 }
 0x914   : > { %v1640_v21 = vpop.xlane.xlu0 %1639 }
 0x915   : > { %v1652_v57 = vmul.f32 0.00390625, %v1640_v21  ;;  %v1659_v9 = vsub.f32 %v1651_v56, %v1655_v3 }
 0x917   : > { %v1660_v49 = vsub.f32 %v1652_v57, %v1656_v12  ;;  %v1663_v0 = vmax.f32 %v1659_v9, 0.0  ;;  %v1677_v12 = vsub.f32 %v5008_v52, %v5071_v15 }
 0x918   : > { %v1643_v6 = vpop.xlane.xlu1 %1642  ;;  %v1623_v32 = vpop.xlane.xlu0 %1622 }
 0x919   : > { %v1653_v19 = vmul.f32 0.00390625, %v1643_v6  ;;  %v1649_v50 = vmul.f32 0.00390625, %v1623_v32 }
 0x91b   : > { %v1657_v27 = vmul.f32 %v1649_v50, %v1649_v50  ;;  %v1680_v4 = vsub.f32 %v5024_v16, %v1649_v50  ;;  %v1681_v55 = vsub.f32 %v5028_v36, %v1649_v50  ;;  %v1664_v36 = vmax.f32 %v1660_v49, 0.0 }
 0x91c   : > { %v1626_v34 = vpop.xlane.xlu0 %1625  ;;  %v1741_v1 = vpop.permute.xlu1 %1740 }
 0x91d   : > { %v1661_v18 = vsub.f32 %v1653_v19, %v1657_v27  ;;  %v1650_v38 = vmul.f32 0.00390625, %v1626_v34 }
 0x91f   : > { %v1665_v2 = vmax.f32 %v1661_v18, 0.0  ;;  %v1658_v37 = vmul.f32 %v1650_v38, %v1650_v38  ;;  %v1682_v21 = vsub.f32 %v5034_v40, %v1650_v38  ;;  %v1683_v16 = vsub.f32 %v5038_v48, %v1650_v38 }
 0x920   : > { %v1646_v17 = vpop.xlane.xlu0 %1645 }
 0x921   : > { %v1686_v35 = vadd.f32 1e-05, %v1665_v2  ;;  %v1654_v39 = vmul.f32 0.00390625, %v1646_v17  ;;  %v1684_v2 = vadd.f32 1e-05, %v1663_v0 }
 0x923   : > { %3943 = vrsqrt.f32 %v1686_v35  ;;  %v1662_v43 = vsub.f32 %v1654_v39, %v1658_v37  ;;  %v1746_v37 = vpop.permute.xlu1 %1745 }
 0x925   : > { %v1666_v41 = vmax.f32 %v1662_v43, 0.0 }
 0x927   : > { %v1687_v51 = vadd.f32 1e-05, %v1666_v41  ;;  %v1708_v0 = vpop.permute.xlu1 %1707 }
 0x928   : > { %v1718_v18 = vpop.permute.xlu0 %1717 }
 0x929   : > { %3945 = vrsqrt.f32 %v1687_v51 }
 0x92c   : > { %v1703_v3 = vpop.permute.xlu0 %1702 }
 0x92d   : > { %v3944_v11 = vpop.eup %3943 }
 0x92e   : > { %v1696_v8 = vmul.f32 %v3944_v11, %v1680_v4  ;;  %v1697_v14 = vmul.f32 %v3944_v11, %v1681_v55  ;;  %v1676_v11 = vsub.f32 %v5004_v54, %v5071_v15 }
 0x930   : > { %v1724_v61 = vmul.f32 %v1713_v62, %v1696_v8  ;;  %v1725_v58 = vmul.f32 %v1713_v62, %v1697_v14  ;;  %v1685_v62 = vadd.f32 1e-05, %v1664_v36  ;;  %v1678_v14 = vsub.f32 %v5014_v33, %v5073_v53 }
 0x932   : > { %v1752_v5 = vadd.f32 %v1741_v1, %v1724_v61  ;;  %v1753_v6 = vadd.f32 %v1741_v1, %v1725_v58  ;;  %v1679_v58 = vsub.f32 %v5018_v26, %v5073_v53 }
 0x933   : > { %v3946_v32 = vpop.eup %3945 }
 0x934   : > { %v3637_v19 = vmul.f32 -1.442695, %v1752_v5  ;;  %v3638_v50 = vmul.f32 -1.442695, %v1753_v6  ;;  %v1698_v27 = vmul.f32 %v3946_v32, %v1682_v21  ;;  %v1699_v34 = vmul.f32 %v3946_v32, %v1683_v16  ;;  %v1731_v5 = vpop.permute.xlu0 %1730 }
 0x936   : > { %3947 = vpow2.f32 %v3637_v19  ;;  %v1726_v17 = vmul.f32 %v1718_v18, %v1698_v27  ;;  %v1727_v35 = vmul.f32 %v1718_v18, %v1699_v34  ;;  %v1736_v27 = vpop.permute.xlu1 %1735 }
 0x937   : > { %3949 = vpow2.f32 %v3638_v50 }
 0x938   : > { %v1754_v39 = vadd.f32 %v1746_v37, %v1726_v17  ;;  %v1755_v43 = vadd.f32 %v1746_v37, %v1727_v35  ;;  %3951 = vrsqrt.f32 %v1684_v2  ;;  %v1803_v18 = vpop.permute.xlu0 %1802 }
 0x939   : > { %3953 = vrsqrt.f32 %v1685_v62 }
 0x93a   : > { %v3639_v40 = vmul.f32 -1.442695, %v1754_v39  ;;  %v3640_v41 = vmul.f32 -1.442695, %v1755_v43  ;;  %v1808_v43 = vpop.permute.xlu1 %1807 }
 0x93c   : > { %3955 = vpow2.f32 %v3639_v40 }
 0x93d   : > { %3957 = vpow2.f32 %v3640_v41 }
 0x940   : > { %v3948_v48 = vpop.eup %3947 }
 0x941   : > { %v3950_v38 = vpop.eup %3949  ;;  %v1768_v51 = vadd.f32 1.0, %v3948_v48 }
 0x942   : > { %v1769_v56 = vadd.f32 1.0, %v3950_v38  ;;  %v3952_v57 = vpop.eup %3951 }
 0x943   : > { %3959 = vrcp.f32 %v1768_v51  ;;  %v3954_v4 = vpop.eup %3953  ;;  %v1692_v61 = vmul.f32 %v3952_v57, %v1676_v11  ;;  %v1693_v1 = vmul.f32 %v3952_v57, %v1677_v12  ;;  %v3678_v11 = vld [vmem:[%s6262_s5 + $0x268] sm:$0xff]  ;;  %v3677_v12 = vld [vmem:[%s6262_s5 + $0x260] sm:$0xff] }
 0x944   : > { %3961 = vrcp.f32 %v1769_v56  ;;  %v1694_v6 = vmul.f32 %v3954_v4, %v1678_v14  ;;  %v1695_v21 = vmul.f32 %v3954_v4, %v1679_v58  ;;  %v3863_v4 = vld [vmem:[%s6261_s4 + $0x184] ss:$12 sps:$4 sm:$0xff]   ;;  %v3672_v14 = vld [vmem:[%s6262_s5 + $0x238] sm:$0xff] }
 0x945   : > { %v1720_v54 = vmul.f32 %v1703_v3, %v1692_v61  ;;  %v1721_v16 = vmul.f32 %v1703_v3, %v1693_v1  ;;  %3661 = vmatprep.mubr.msk.bf16.mxu0 %vm1555_vm8, %v3863_v4 }
 0x946   : > { %v3956_v55 = vpop.eup %3955  ;;  %v1722_v19 = vmul.f32 %v1708_v0, %v1694_v6  ;;  %v1723_v50 = vmul.f32 %v1708_v0, %v1695_v21 }
 0x947   : > { %v3958_v9 = vpop.eup %3957  ;;  %v1770_v8 = vadd.f32 1.0, %v3956_v55  ;;  %v1748_v32 = vadd.f32 %v1731_v5, %v1720_v54  ;;  %v1749_v15 = vadd.f32 %v1731_v5, %v1721_v16  ;;  %v3670_v55 = vld [vmem:[%s6262_s5 + $0x228] sm:$0xff] }
 0x948   : > { %v1771_v49 = vadd.f32 1.0, %v3958_v9  ;;  %v1750_v53 = vadd.f32 %v1736_v27, %v1722_v19  ;;  %v1751_v62 = vadd.f32 %v1736_v27, %v1723_v50  ;;  %v3669_v9 = vld [vmem:[%s6262_s5 + $0x220] sm:$0xff] }
 0x949   : > { %3963 = vrcp.f32 %v1770_v8  ;;  %v3671_v8 = vld [vmem:[%s6262_s5 + $0x230] sm:$0xff] }
 0x94a   : > { %3965 = vrcp.f32 %v1771_v49 }
 0x94d   : > { %v3960_v52 = vpop.eup %3959 }
 0x94e   : > { %v3962_v36 = vpop.eup %3961  ;;  %v1780_v33 = vmul.f32 %v3960_v52, %v1748_v32 }
 0x94f   : > { %v1781_v34 = vmul.f32 %v3962_v36, %v1749_v15 }
 0x950   : > { %v1810_v26 = vadd.f32 %v1803_v18, %v1780_v33 }
 0x951   : > { %v1811_v2 = vadd.f32 %v1803_v18, %v1781_v34 }
 0x952   : > { %v5092_v17 = vmul.f32 %v1810_v26, %v4488_v42 }
 0x953   : > { %v3964_v35 = vpop.eup %3963  ;;  %v5097_v48 = vmul.f32 %v1811_v2, %v4266_v7 }
 0x954   : > { %v3966_v37 = vpop.eup %3965  ;;  %v1782_v39 = vmul.f32 %v3964_v35, %v1750_v53  ;;  %1818 = vrot.lane.b32.xlu0 %v5092_v17, %s6329_s0 }
 0x955   : > { %v1783_v40 = vmul.f32 %v3966_v37, %v1751_v62 }
 0x956   : > { %v1812_v41 = vadd.f32 %v1808_v43, %v1782_v39 }
 0x957   : > { %v1813_v38 = vadd.f32 %v1808_v43, %v1783_v40 }
 0x958   : > { %v5100_v51 = vmul.f32 %v1812_v41, %v4488_v42  ;;  %1822 = vrot.lane.b32.xlu0 %v5097_v48, %s6329_s0 }
 0x959   : > { %v5105_v56 = vmul.f32 %v1813_v38, %v4266_v7 }
 0x95a   : > { %1820 = vrot.lane.b32.xlu1 %v5100_v51, %s6329_s0  ;;  %v1954_v3 = vpack.c.bf16 %v5100_v51, %v5092_v17 }
 0x95b   : > { %v1955_v57 = vpack.c.bf16 %v5105_v56, %v5097_v48 }
 0x95c   : > { %1834 = vrot.lane.b32.xlu0 %v5092_v17, %s6324_s29 }
 0x95e   : > { %1824 = vrot.lane.b32.xlu1 %v5105_v56, %s6329_s0 }
 0x960   : > { %1838 = vrot.lane.b32.xlu0 %v5097_v48, %s6324_s29 }
 0x962   : > { %1836 = vrot.lane.b32.xlu1 %v5100_v51, %s6324_s29 }
 0x964   : > { %1850 = vrot.lane.b32.xlu0 %v5092_v17, %s6327_s12 }
 0x966   : > { %1840 = vrot.lane.b32.xlu1 %v5105_v56, %s6324_s29 }
 0x968   : > { %1854 = vrot.lane.b32.xlu0 %v5097_v48, %s6327_s12 }
 0x96a   : > { %1852 = vrot.lane.b32.xlu1 %v5100_v51, %s6327_s12 }
 0x96c   : > { %1866 = vrot.lane.b32.xlu0 %v5092_v17, %s6330_s1 }
 0x96e   : > { %1856 = vrot.lane.b32.xlu1 %v5105_v56, %s6327_s12 }
 0x970   : > { %1870 = vrot.lane.b32.xlu0 %v5097_v48, %s6330_s1 }
 0x972   : > { %1868 = vrot.lane.b32.xlu1 %v5100_v51, %s6330_s1 }
 0x974   : > { %1882 = vrot.lane.b32.xlu0 %v5092_v17, %s6322_s27 }
 0x976   : > { %1872 = vrot.lane.b32.xlu1 %v5105_v56, %s6330_s1 }
 0x978   : > { %1886 = vrot.lane.b32.xlu0 %v5097_v48, %s6322_s27 }
 0x97a   : > { %1884 = vrot.lane.b32.xlu1 %v5100_v51, %s6322_s27 }
 0x97c   : > { %1898 = vrot.lane.b32.xlu0 %v5092_v17, %s6323_s28 }
 0x97e   : > { %1888 = vrot.lane.b32.xlu1 %v5105_v56, %s6322_s27 }
 0x980   : > { %1902 = vrot.lane.b32.xlu0 %v5097_v48, %s6323_s28 }
 0x982   : > { %1900 = vrot.lane.b32.xlu1 %v5100_v51, %s6323_s28 }
 0x984   : > { %1914 = vrot.lane.b32.xlu0 %v5092_v17, %s6325_s30 }
 0x986   : > { %1904 = vrot.lane.b32.xlu1 %v5105_v56, %s6323_s28 }
 0x988   : > { %1918 = vrot.lane.b32.xlu0 %v5097_v48, %s6325_s30 }
 0x98a   : > { %1916 = vrot.lane.b32.xlu1 %v5100_v51, %s6325_s30 }
 0x98c   : > { %1930 = vrot.lane.b32.xlu0 %v5092_v17, %s6326_s11 }
 0x98e   : > { %1920 = vrot.lane.b32.xlu1 %v5105_v56, %s6325_s30 }
 0x990   : > { %1934 = vrot.lane.b32.xlu0 %v5097_v48, %s6326_s11 }
 0x992   : > { %1932 = vrot.lane.b32.xlu1 %v5100_v51, %s6326_s11 }
 0x994   : > { %2290 = vperm.xlu0 %3850, %v3670_v55  }
 0x996   : > { %1936 = vrot.lane.b32.xlu1 %v5105_v56, %s6326_s11 }
 0x998   : > { %2346 = vperm.xlu0 %3850, %v3678_v11  }
 0x99a   : > { %2285 = vperm.xlu1 %3849, %v3669_v9  }
 0x99e   : > { %2341 = vperm.xlu1 %3849, %v3677_v12  }
 0x9a2   : > { %2295 = vperm.xlu1 %3849, %v3671_v8  }
 0x9a6   : > { %2300 = vperm.xlu1 %3849, %v3672_v14  }
 0x9c6   : > { %v1819_v49 = vpop.permute.xlu0 %1818 }
 0x9ca   : > { %v1823_v61 = vpop.permute.xlu0 %1822 }
 0x9cb   : > { %v1826_v1 = vsel %vm427_vm2, %v1819_v49, %v1823_v61  ;;  %v1828_v5 = vsel %vm427_vm2, %v1823_v61, %v1819_v49 }
 0x9cc   : > { %v1821_v58 = vpop.permute.xlu1 %1820  ;;  %v1830_v16 = vmul.f32 %v1828_v5, %v4345_v28  ;;  %v1831_v32 = vmul.f32 %v1826_v1, %v4348_v29 }
 0x9ce   : > { %v1835_v0 = vpop.permute.xlu0 %1834 }
 0x9d0   : > { %v1825_v6 = vpop.permute.xlu1 %1824 }
 0x9d1   : > { %v1827_v54 = vsel %vm427_vm2, %v1821_v58, %v1825_v6  ;;  %v1829_v21 = vsel %vm427_vm2, %v1825_v6, %v1821_v58 }
 0x9d2   : > { %v1832_v52 = vmul.f32 %v1829_v21, %v4345_v28  ;;  %v1833_v15 = vmul.f32 %v1827_v54, %v4348_v29  ;;  %v1839_v36 = vpop.permute.xlu0 %1838 }
 0x9d3   : > { %v1842_v34 = vsel %vm448_vm1, %v1835_v0, %v1839_v36  ;;  %v1844_v18 = vsel %vm448_vm1, %v1839_v36, %v1835_v0 }
 0x9d4   : > { %v1946_v19 = vpack.c.bf16 %v1832_v52, %v1830_v16  ;;  %v1837_v33 = vpop.permute.xlu1 %1836  ;;  %v1947_v50 = vpack.c.bf16 %v1833_v15, %v1831_v32  ;;  %v1846_v35 = vmul.f32 %v1844_v18, %v4330_v23  ;;  %v1847_v62 = vmul.f32 %v1842_v34, %v4333_v24 }
 0x9d6   : > { %2021 = vmatprep.subr.bf16.mxu0 %v1947_v50  ;;  %v1851_v27 = vpop.permute.xlu0 %1850 }
 0x9d7   : > { %2022 = vmatpush1.bf16.msra.mxu0 %v1946_v19 }
 0x9d8   : > { %v1841_v26 = vpop.permute.xlu1 %1840 }
 0x9d9   : > { %v1843_v53 = vsel %vm448_vm1, %v1837_v33, %v1841_v26  ;;  %v1845_v2 = vsel %vm448_vm1, %v1841_v26, %v1837_v33 }
 0x9da   : > { %v1848_v37 = vmul.f32 %v1845_v2, %v4330_v23  ;;  %v1849_v39 = vmul.f32 %v1843_v53, %v4333_v24  ;;  %v1855_v43 = vpop.permute.xlu0 %1854 }
 0x9db   : > { %v1858_v55 = vsel %vm470_vm0, %v1851_v27, %v1855_v43  ;;  %v1860_v11 = vsel %vm470_vm0, %v1855_v43, %v1851_v27 }
 0x9dc   : > { %v1948_v40 = vpack.c.bf16 %v1848_v37, %v1846_v35  ;;  %v1853_v41 = vpop.permute.xlu1 %1852  ;;  %v1949_v38 = vpack.c.bf16 %v1849_v39, %v1847_v62  ;;  %v1862_v14 = vmul.f32 %v1860_v11, %v4327_v22  ;;  %v1863_v49 = vmul.f32 %v1858_v55, %v4337_v25 }
 0x9de   : > { %2023 = vmatprep.subr.bf16.mxu0 %v1949_v38  ;;  %v1867_v4 = vpop.permute.xlu0 %1866 }
 0x9df   : > { %2024 = vmatpush1.bf16.msra.mxu0 %v1948_v40 }
 0x9e0   : > { %v1857_v9 = vpop.permute.xlu1 %1856 }
 0x9e1   : > { %v1859_v12 = vsel %vm470_vm0, %v1853_v41, %v1857_v9  ;;  %v1861_v8 = vsel %vm470_vm0, %v1857_v9, %v1853_v41 }
 0x9e2   : > { %v1864_v61 = vmul.f32 %v1861_v8, %v4327_v22  ;;  %v1865_v58 = vmul.f32 %v1859_v12, %v4337_v25  ;;  %v1871_v0 = vpop.permute.xlu0 %1870 }
 0x9e3   : > { %v1874_v21 = vsel %vm492_vm3, %v1867_v4, %v1871_v0  ;;  %v1876_v16 = vsel %vm492_vm3, %v1871_v0, %v1867_v4 }
 0x9e4   : > { %v1950_v1 = vpack.c.bf16 %v1864_v61, %v1862_v14  ;;  %v1869_v5 = vpop.permute.xlu1 %1868  ;;  %v1951_v6 = vpack.c.bf16 %v1865_v58, %v1863_v49  ;;  %v1878_v36 = vmul.f32 %v1876_v16, %v4351_v30  ;;  %v1879_v19 = vmul.f32 %v1874_v21, %v4354_v31 }
 0x9e6   : > { %2025 = vmatprep.subr.bf16.mxu0 %v1951_v6  ;;  %v1883_v54 = vpop.permute.xlu0 %1882 }
 0x9e7   : > { %2026 = vmatpush1.bf16.msra.mxu0 %v1950_v1 }
 0x9e8   : > { %v1873_v32 = vpop.permute.xlu1 %1872 }
 0x9e9   : > { %v1875_v52 = vsel %vm492_vm3, %v1869_v5, %v1873_v32  ;;  %v1877_v15 = vsel %vm492_vm3, %v1873_v32, %v1869_v5 }
 0x9ea   : > { %v1880_v33 = vmul.f32 %v1877_v15, %v4351_v30  ;;  %v1881_v50 = vmul.f32 %v1875_v52, %v4354_v31  ;;  %v1887_v27 = vpop.permute.xlu0 %1886 }
 0x9eb   : > { %v1890_v2 = vsel %vm514_vm7, %v1883_v54, %v1887_v27  ;;  %v1892_v35 = vsel %vm514_vm7, %v1887_v27, %v1883_v54 }
 0x9ec   : > { %v1952_v34 = vpack.c.bf16 %v1880_v33, %v1878_v36  ;;  %v1885_v18 = vpop.permute.xlu1 %1884  ;;  %v1953_v26 = vpack.c.bf16 %v1881_v50, %v1879_v19  ;;  %v1894_v43 = vmul.f32 %v1890_v2, %v4377_v45  ;;  %v1895_v40 = vmul.f32 %v1892_v35, %v4380_v46 }
 0x9ee   : > { %2027 = vmatprep.subr.bf16.mxu0 %v1953_v26  ;;  %v1899_v53 = vpop.permute.xlu0 %1898 }
 0x9ef   : > { %2028 = vmatpush1.bf16.msra.mxu0 %v1952_v34 }
 0x9f0   : > { %v1889_v62 = vpop.permute.xlu1 %1888  ;;  %2029 = vmatprep.subr.bf16.mxu0 %v1955_v57 }
 0x9f1   : > { %v1891_v37 = vsel %vm514_vm7, %v1885_v18, %v1889_v62  ;;  %v1893_v39 = vsel %vm514_vm7, %v1889_v62, %v1885_v18 }
 0x9f2   : > { %v1896_v41 = vmul.f32 %v1891_v37, %v4377_v45  ;;  %v1897_v38 = vmul.f32 %v1893_v39, %v4380_v46  ;;  %v1903_v4 = vpop.permute.xlu0 %1902 }
 0x9f3   : > { %2030 = vmatpush1.bf16.msra.mxu0 %v1954_v3  ;;  %v1906_v11 = vsel %vm536_vm9, %v1899_v53, %v1903_v4  ;;  %v1908_v9 = vsel %vm536_vm9, %v1903_v4, %v1899_v53  ;;  %v3864_v4 = vld [vmem:[%s6261_s4 + $0x19c] ss:$12 sps:$4 sm:$0xff]  }
 0x9f4   : > { %v1956_v48 = vpack.c.bf16 %v1896_v41, %v1894_v43  ;;  %v1901_v56 = vpop.permute.xlu1 %1900  ;;  %v1957_v57 = vpack.c.bf16 %v1897_v38, %v1895_v40  ;;  %v1910_v51 = vmul.f32 %v1906_v11, %v4398_v59  ;;  %v1911_v3 = vmul.f32 %v1908_v9, %v4401_v60  ;;  %v3861_v38 = vld [vmem:[%s6261_s4 + $0x180] ss:$12 sps:$4 sm:$0xff]   ;;  %v3872_v11 = vld [vmem:[%s6261_s4 + $0x1c8] ss:$12 sps:$4 sm:$0xff]  }
 0x9f6   : > { %v1915_v55 = vpop.permute.xlu0 %1914  ;;  %2031 = vmatprep.subr.bf16.mxu0 %v1957_v57  ;;  %v3869_v57 = vld [vmem:[%s6261_s4 + $0x1b0] ss:$12 sps:$4 sm:$0xff]  }
 0x9f7   : > { %2032 = vmatpush1.bf16.msra.mxu0 %v1956_v48  ;;  %v3866_v48 = vld [vmem:[%s6261_s4 + $0x198] ss:$12 sps:$4 sm:$0xff]  }
 0x9f8   : > { %v1905_v12 = vpop.permute.xlu1 %1904 }
 0x9f9   : > { %v1907_v8 = vsel %vm536_vm9, %v1901_v56, %v1905_v12  ;;  %v1909_v17 = vsel %vm536_vm9, %v1905_v12, %v1901_v56  ;;  %v3867_v56 = vld [vmem:[%s6261_s4 + $0x1b4] ss:$12 sps:$4 sm:$0xff]  }
 0x9fa   : > { %v1912_v14 = vmul.f32 %v1907_v8, %v4398_v59  ;;  %v1913_v49 = vmul.f32 %v1909_v17, %v4401_v60  ;;  %v1919_v61 = vpop.permute.xlu0 %1918 }
 0x9fb   : > { %v1922_v6 = vsel %vm558_vm11, %v1915_v55, %v1919_v61  ;;  %v1924_v54 = vsel %vm558_vm11, %v1919_v61, %v1915_v55  ;;  %v3870_v55 = vld [vmem:[%s6261_s4 + $0x1cc] ss:$12 sps:$4 sm:$0xff]  }
 0x9fc   : > { %v1958_v58 = vpack.c.bf16 %v1912_v14, %v1910_v51  ;;  %v1917_v0 = vpop.permute.xlu1 %1916  ;;  %v1959_v1 = vpack.c.bf16 %v1913_v49, %v1911_v3  ;;  %v1926_v52 = vmul.f32 %v1922_v6, %v4407_v63  ;;  %v1927_v15 = vmul.f32 %v1924_v54, %v4418_v20 }
 0x9fe   : > { %v1931_v5 = vpop.permute.xlu0 %1930  ;;  %2033 = vmatprep.subr.bf16.mxu0 %v1959_v1 }
 0x9ff   : > { %2034 = vmatpush1.bf16.msra.mxu0 %v1958_v58 }
 0xa00   : > { %v1921_v21 = vpop.permute.xlu1 %1920 }
 0xa01   : > { %v1923_v16 = vsel %vm558_vm11, %v1917_v0, %v1921_v21  ;;  %v1925_v32 = vsel %vm558_vm11, %v1921_v21, %v1917_v0 }
 0xa02   : > { %v1928_v36 = vmul.f32 %v1923_v16, %v4407_v63  ;;  %v1929_v19 = vmul.f32 %v1925_v32, %v4418_v20  ;;  %v1935_v50 = vpop.permute.xlu0 %1934 }
 0xa03   : > { %v1938_v18 = vsel %vm580_vm13, %v1931_v5, %v1935_v50  ;;  %v1940_v26 = vsel %vm580_vm13, %v1935_v50, %v1931_v5 }
 0xa04   : > { %v1960_v33 = vpack.c.bf16 %v1928_v36, %v1926_v52  ;;  %v1933_v27 = vpop.permute.xlu1 %1932  ;;  %v1961_v34 = vpack.c.bf16 %v1929_v19, %v1927_v15  ;;  %v1942_v62 = vmul.f32 %v1938_v18, %v4435_v44  ;;  %v1943_v37 = vmul.f32 %v1940_v26, %v4438_v47 }
 0xa06   : > { %2035 = vmatprep.subr.bf16.mxu0 %v1961_v34 }
 0xa07   : > { %2036 = vmatpush1.bf16.msra.mxu0 %v1960_v33 }
 0xa08   : > { %v1937_v53 = vpop.permute.xlu1 %1936 }
 0xa09   : > { %v1939_v2 = vsel %vm580_vm13, %v1933_v27, %v1937_v53  ;;  %v1941_v35 = vsel %vm580_vm13, %v1937_v53, %v1933_v27 }
 0xa0a   : > { %v1944_v39 = vmul.f32 %v1939_v2, %v4435_v44  ;;  %v1945_v43 = vmul.f32 %v1941_v35, %v4438_v47 }
 0xa0c   : > { %v1962_v40 = vpack.c.bf16 %v1944_v39, %v1942_v62  ;;  %v1963_v41 = vpack.c.bf16 %v1945_v43, %v1943_v37 }
 0xa0e   : > { %2037 = vmatprep.subr.bf16.mxu0 %v1963_v41 }
 0xa0f   : > { %2038 = vmatpush1.bf16.msra.mxu0 %v1962_v40 }
 0xa12   : > { %2054 = vmatmul.mubr.bf16.vlgmr.msra.gmra.mrb[20].mxu0 %v3861_v38 }
 0xa13   : > { %3662 = vmatprep.mubr.msk.bf16.mxu0 %vm1555_vm8, %v3864_v4 }
 0xa1a   : > { %2064 = vmatmul.mubr.bf16.gmra.mrb[24].mxu0 %v3866_v48 }
 0xa1b   : > { %3663 = vmatprep.mubr.msk.bf16.mxu0 %vm1555_vm8, %v3867_v56 }
 0xa22   : > { %2074 = vmatmul.mubr.bf16.gmra.mrb[28].mxu0 %v3869_v57 }
 0xa23   : > { %3664 = vmatprep.mubr.msk.bf16.mxu0 %vm1555_vm8, %v3870_v55 }
 0xa2a   : > { %2084 = vmatmul.mubr.bf16.gmra.mrb[32].mxu0 %v3872_v11 }
 0xa2b   : > { %3388 = vmatprep.mubr.f32.mxu0 %v4266_v7 }
 0xae5   : > { %v5320_v9 = vpop.f32.mrb[20].mxu0 }
 0xae6   : > { %v2118_v12 = vmul.f32 %v5320_v9, %v5320_v9  ;;  %v5324_v8 = vpop.f32.mrb[21].mxu0 }
 0xae7   : > { %v2094_v17 = vadd.f32 %v5324_v8, %v5320_v9  ;;  %v2119_v51 = vmul.f32 %v5324_v8, %v5324_v8  ;;  %v5330_v3 = vpop.f32.mrb[22].mxu0 }
 0xae8   : > { %v2120_v14 = vmul.f32 %v5330_v3, %v5330_v3  ;;  %v5334_v49 = vpop.f32.mrb[23].mxu0 }
 0xae9   : > { %v2097_v61 = vadd.f32 %v5334_v49, %v5330_v3  ;;  %v2121_v58 = vmul.f32 %v5334_v49, %v5334_v49  ;;  %2095 = vadd.xlane.f32.xlu1 %v2094_v17  ;;  %v2134_v0 = vadd.f32 %v2119_v51, %v2118_v12 }
 0xaeb   : > { %2098 = vadd.xlane.f32.xlu0 %v2097_v61  ;;  %v2137_v1 = vadd.f32 %v2121_v58, %v2120_v14  ;;  %v3680_v61 = vld [vmem:[%s6262_s5 + $0x278] sm:$0xff]  ;;  %v3666_v58 = vld [vmem:[%s6262_s5 + $0x208] sm:$0xff] }
 0xaed   : > { %2135 = vadd.xlane.f32.xlu1 %v2134_v0  ;;  %v5340_v5 = vpop.f32.mrb[24].mxu0  ;;  %v3674_v0 = vld [vmem:[%s6262_s5 + $0x248] sm:$0xff] }
 0xaee   : > { %v2122_v6 = vmul.f32 %v5340_v5, %v5340_v5  ;;  %v5344_v54 = vpop.f32.mrb[25].mxu0 }
 0xaef   : > { %v2100_v21 = vadd.f32 %v5344_v54, %v5340_v5  ;;  %v2123_v16 = vmul.f32 %v5344_v54, %v5344_v54  ;;  %2138 = vadd.xlane.f32.xlu0 %v2137_v1  ;;  %v5350_v32 = vpop.f32.mrb[26].mxu0  ;;  %v3679_v1 = vld [vmem:[%s6262_s5 + $0x270] sm:$0xff] }
 0xaf0   : > { %v2124_v52 = vmul.f32 %v5350_v32, %v5350_v32  ;;  %v5354_v15 = vpop.f32.mrb[27].mxu0 }
 0xaf1   : > { %v2103_v36 = vadd.f32 %v5354_v15, %v5350_v32  ;;  %v2125_v19 = vmul.f32 %v5354_v15, %v5354_v15  ;;  %2101 = vadd.xlane.f32.xlu1 %v2100_v21  ;;  %v2140_v33 = vadd.f32 %v2123_v16, %v2122_v6  ;;  %v3668_v6 = vld [vmem:[%s6262_s5 + $0x218] sm:$0xff]  ;;  %v3665_v21 = vld [vmem:[%s6262_s5 + $0x200] sm:$0xff] }
 0xaf2   : > { %v3676_v16 = vld [vmem:[%s6262_s5 + $0x258] sm:$0xff] }
 0xaf3   : > { %2104 = vadd.xlane.f32.xlu0 %v2103_v36  ;;  %v2143_v50 = vadd.f32 %v2125_v19, %v2124_v52  ;;  %v3673_v52 = vld [vmem:[%s6262_s5 + $0x240] sm:$0xff]  ;;  %v3667_v36 = vld [vmem:[%s6262_s5 + $0x210] sm:$0xff] }
 0xaf4   : > { %v3675_v19 = vld [vmem:[%s6262_s5 + $0x250] sm:$0xff] }
 0xaf5   : > { %2141 = vadd.xlane.f32.xlu1 %v2140_v33  ;;  %v5360_v27 = vpop.f32.mrb[28].mxu0  ;;  %v5430_v33 = vpop.permute.xlu1 %2285 }
 0xaf6   : > { %v2126_v34 = vmul.f32 %v5360_v27, %v5360_v27  ;;  %v5364_v18 = vpop.f32.mrb[29].mxu0 }
 0xaf7   : > { %v2106_v26 = vadd.f32 %v5364_v18, %v5360_v27  ;;  %v2127_v53 = vmul.f32 %v5364_v18, %v5364_v18  ;;  %2144 = vadd.xlane.f32.xlu0 %v2143_v50  ;;  %v5370_v2 = vpop.f32.mrb[30].mxu0 }
 0xaf8   : > { %v2128_v35 = vmul.f32 %v5370_v2, %v5370_v2  ;;  %v5374_v62 = vpop.f32.mrb[31].mxu0 }
 0xaf9   : > { %v2109_v37 = vadd.f32 %v5374_v62, %v5370_v2  ;;  %v2129_v39 = vmul.f32 %v5374_v62, %v5374_v62  ;;  %v2146_v43 = vadd.f32 %v2127_v53, %v2126_v34  ;;  %v5432_v50 = vpop.permute.xlu1 %2341 }
 0xafb   : > { %2107 = vadd.xlane.f32.xlu0 %v2106_v26  ;;  %2110 = vadd.xlane.f32.xlu1 %v2109_v37  ;;  %v2149_v40 = vadd.f32 %v2129_v39, %v2128_v35  ;;  %v5436_v26 = vpop.permute.xlu0 %2290 }
 0xafd   : > { %v5380_v41 = vpop.f32.mrb[32].mxu0  ;;  %v5434_v34 = vpop.permute.xlu1 %2295 }
 0xafe   : > { %v2130_v38 = vmul.f32 %v5380_v41, %v5380_v41  ;;  %v5384_v4 = vpop.f32.mrb[33].mxu0 }
 0xaff   : > { %v2112_v48 = vadd.f32 %v5384_v4, %v5380_v41  ;;  %v2131_v56 = vmul.f32 %v5384_v4, %v5384_v4  ;;  %2147 = vadd.xlane.f32.xlu0 %v2146_v43  ;;  %v5390_v57 = vpop.f32.mrb[34].mxu0  ;;  %v5440_v35 = vpop.permute.xlu0 %2346 }
 0xb00   : > { %v2132_v55 = vmul.f32 %v5390_v57, %v5390_v57  ;;  %v5394_v11 = vpop.f32.mrb[35].mxu0 }
 0xb01   : > { %2113 = vadd.xlane.f32.xlu1 %v2112_v48  ;;  %v2115_v12 = vadd.f32 %v5394_v11, %v5390_v57  ;;  %v2133_v17 = vmul.f32 %v5394_v11, %v5394_v11  ;;  %v2152_v51 = vadd.f32 %v2131_v56, %v2130_v38  ;;  %v5438_v53 = vpop.permute.xlu1 %2300 }
 0xb03   : > { %2150 = vadd.xlane.f32.xlu0 %v2149_v40  ;;  %v2155_v14 = vadd.f32 %v2133_v17, %v2132_v55 }
 0xb05   : > { %2153 = vadd.xlane.f32.xlu1 %v2152_v51 }
 0xb07   : > { %2116 = vadd.xlane.f32.xlu0 %v2115_v12 }
 0xb0b   : > { %2156 = vadd.xlane.f32.xlu0 %v2155_v14 }
 0xb16   : > { %2356 = vperm.xlu1 %3849, %v3680_v61  }
 0xb1a   : > { %2270 = vperm.xlu1 %3849, %v3666_v58  }
 0xb1e   : > { %2326 = vperm.xlu1 %3849, %v3674_v0  }
 0xb21   : > { %2351 = vperm.xlu0 %3850, %v3679_v1  }
 0xb22   : > { %2280 = vperm.xlu1 %3849, %v3668_v6  }
 0xb25   : > { %2265 = vperm.xlu0 %3850, %v3665_v21  }
 0xb26   : > { %2336 = vperm.xlu1 %3849, %v3676_v16  }
 0xb29   : > { %2321 = vperm.xlu0 %3850, %v3673_v52  }
 0xb2d   : > { %2275 = vperm.xlu0 %3850, %v3667_v36  }
 0xb31   : > { %2331 = vperm.xlu0 %3850, %v3675_v19  }
 0xb76   : > { %v2096_v37 = vpop.xlane.xlu1 %2095 }
 0xb77   : > { %v5450_v44 = vmul.f32 0.00390625, %v2096_v37 }
 0xb78   : > { %v2099_v39 = vpop.xlane.xlu0 %2098 }
 0xb7a   : > { %v2136_v43 = vpop.xlane.xlu1 %2135 }
 0xb7b   : > { %v2166_v59 = vmul.f32 0.00390625, %v2136_v43 }
 0xb7c   : > { %v2139_v40 = vpop.xlane.xlu0 %2138 }
 0xb7e   : > { %v2102_v38 = vpop.xlane.xlu1 %2101 }
 0xb80   : > { %v5442_v48 = vpop.xlane.xlu0 %2104 }
 0xb82   : > { %v2142_v55 = vpop.xlane.xlu1 %2141 }
 0xb84   : > { %v5444_v56 = vpop.xlane.xlu0 %2144 }
 0xb88   : > { %v2108_v12 = vpop.xlane.xlu0 %2107  ;;  %v2111_v51 = vpop.xlane.xlu1 %2110 }
 0xb89   : > { %v2162_v17 = vmul.f32 0.00390625, %v2108_v12  ;;  %v2163_v61 = vmul.f32 0.00390625, %v2111_v51 }
 0xb8b   : > { %v2178_v58 = vmul.f32 %v2162_v17, %v2162_v17  ;;  %v2179_v19 = vmul.f32 %v2163_v61, %v2163_v61 }
 0xb8c   : > { %v2148_v14 = vpop.xlane.xlu0 %2147 }
 0xb8d   : > { %v2170_v0 = vmul.f32 0.00390625, %v2148_v14 }
 0xb8e   : > { %v2114_v1 = vpop.xlane.xlu1 %2113 }
 0xb8f   : > { %v2186_v6 = vsub.f32 %v2170_v0, %v2178_v58  ;;  %v5446_v21 = vmul.f32 0.00390625, %v2114_v1  ;;  %v2174_v1 = vmul.f32 %v5450_v44, %v5450_v44 }
 0xb90   : > { %v2151_v16 = vpop.xlane.xlu0 %2150 }
 0xb91   : > { %v2194_v52 = vmax.f32 %v2186_v6, 0.0  ;;  %v2171_v36 = vmul.f32 0.00390625, %v2151_v16  ;;  %v2180_v10 = vmul.f32 %v5446_v21, %v5446_v21  ;;  %v2182_v45 = vsub.f32 %v2166_v59, %v2174_v1 }
 0xb92   : > { %v2154_v47 = vpop.xlane.xlu1 %2153 }
 0xb93   : > { %v2235_v12 = vadd.f32 1e-05, %v2194_v52  ;;  %v2187_v63 = vsub.f32 %v2171_v36, %v2179_v19  ;;  %v2172_v20 = vmul.f32 0.00390625, %v2154_v47  ;;  %v5458_v36 = vmul.f32 0.00390625, %v2099_v39 }
 0xb94   : > { %v2117_v51 = vpop.xlane.xlu0 %2116  ;;  %v2223_v19 = vsub.f32 %v5360_v27, %v2162_v17  ;;  %v5464_v39 = vmul.f32 0.00390625, %v2102_v38 }
 0xb95   : > { %3967 = vrsqrt.f32 %v2235_v12  ;;  %v2195_v14 = vmax.f32 %v2187_v63, 0.0  ;;  %v2188_v58 = vsub.f32 %v2172_v20, %v2180_v10  ;;  %v5452_v0 = vmul.f32 0.00390625, %v2117_v51 }
 0xb96   : > { %v2190_v10 = vmax.f32 %v2182_v45, 0.0  ;;  %v2167_v20 = vmul.f32 0.00390625, %v2139_v40  ;;  %v2224_v12 = vsub.f32 %v5364_v18, %v2162_v17  ;;  %v2225_v45 = vsub.f32 %v5370_v2, %v2163_v61 }
 0xb97   : > { %v2236_v6 = vadd.f32 1e-05, %v2195_v14  ;;  %v2196_v16 = vmax.f32 %v2188_v58, 0.0  ;;  %v2181_v60 = vmul.f32 %v5452_v0, %v5452_v0  ;;  %v2175_v14 = vmul.f32 %v5458_v36, %v5458_v36 }
 0xb98   : > { %v2157_v37 = vpop.xlane.xlu0 %2156  ;;  %v2168_v17 = vmul.f32 0.00390625, %v2142_v55 }
 0xb99   : > { %3969 = vrsqrt.f32 %v2236_v6  ;;  %v2237_v52 = vadd.f32 1e-05, %v2196_v16  ;;  %v2173_v47 = vmul.f32 0.00390625, %v2157_v37  ;;  %v2231_v6 = vadd.f32 1e-05, %v2190_v10 }
 0xb9a   : > { %v2183_v16 = vsub.f32 %v2167_v20, %v2175_v14  ;;  %v2227_v37 = vsub.f32 %v5380_v41, %v5446_v21 }
 0xb9b   : > { %3971 = vrsqrt.f32 %v2237_v52  ;;  %v2189_v63 = vsub.f32 %v2173_v47, %v2181_v60  ;;  %v2226_v60 = vsub.f32 %v5374_v62, %v2163_v61  ;;  %v2228_v52 = vsub.f32 %v5384_v4, %v5446_v21 }
 0xb9c   : > { %v2191_v62 = vmax.f32 %v2183_v16, 0.0  ;;  %v5477_v61 = vmul.f32 0.00390625, %v5442_v48 }
 0xb9d   : > { %v2197_v43 = vmax.f32 %v2189_v63, 0.0 }
 0xb9f   : > { %v3968_v51 = vpop.eup %3967  ;;  %v2238_v58 = vadd.f32 1e-05, %v2197_v43 }
 0xba0   : > { %v2255_v59 = vmul.f32 %v3968_v51, %v2223_v19  ;;  %v2256_v1 = vmul.f32 %v3968_v51, %v2224_v12 }
 0xba1   : > { %3973 = vrsqrt.f32 %v2238_v58  ;;  %v2177_v58 = vmul.f32 %v5477_v61, %v5477_v61 }
 0xba2   : > { %v2311_v27 = vmul.f32 %v5430_v33, %v2255_v59  ;;  %v2312_v18 = vmul.f32 %v5430_v33, %v2256_v1  ;;  %3975 = vrsqrt.f32 %v2231_v6  ;;  %v2176_v33 = vmul.f32 %v5464_v39, %v5464_v39 }
 0xba3   : > { %v3970_v40 = vpop.eup %3969  ;;  %v2230_v59 = vsub.f32 %v5394_v11, %v5452_v0 }
 0xba4   : > { %v2367_v38 = vadd.f32 %v5432_v50, %v2311_v27  ;;  %v2368_v47 = vadd.f32 %v5432_v50, %v2312_v18  ;;  %v2257_v63 = vmul.f32 %v3970_v40, %v2225_v45  ;;  %v2258_v2 = vmul.f32 %v3970_v40, %v2226_v60 }
 0xba5   : > { %v3972_v10 = vpop.eup %3971  ;;  %v2184_v20 = vsub.f32 %v2168_v17, %v2176_v33  ;;  %v2169_v50 = vmul.f32 0.00390625, %v5444_v56  ;;  %v2352_v56 = vpop.permute.xlu0 %2351  ;;  %v2232_v17 = vadd.f32 1e-05, %v2191_v62 }
 0xba6   : > { %v2313_v41 = vmul.f32 %v5436_v26, %v2257_v63  ;;  %v2314_v55 = vmul.f32 %v5436_v26, %v2258_v2  ;;  %v2259_v4 = vmul.f32 %v3972_v10, %v2227_v37  ;;  %v2260_v21 = vmul.f32 %v3972_v10, %v2228_v52 }
 0xba7   : > { %v3681_v43 = vmul.f32 -1.442695, %v2367_v38  ;;  %v3682_v19 = vmul.f32 -1.442695, %v2368_v47  ;;  %v2229_v26 = vsub.f32 %v5390_v57, %v5452_v0  ;;  %v2192_v60 = vmax.f32 %v2184_v20, 0.0  ;;  %v2357_v47 = vpop.permute.xlu1 %2356 }
 0xba8   : > { %v2369_v12 = vadd.f32 %v5440_v35, %v2313_v41  ;;  %v2370_v51 = vadd.f32 %v5440_v35, %v2314_v55  ;;  %v2315_v48 = vmul.f32 %v5434_v34, %v2259_v4  ;;  %v2316_v14 = vmul.f32 %v5434_v34, %v2260_v21 }
 0xba9   : > { %3977 = vpow2.f32 %v3681_v43  ;;  %v2185_v27 = vsub.f32 %v2169_v50, %v2177_v58  ;;  %v2233_v52 = vadd.f32 1e-05, %v2192_v60  ;;  %v2266_v63 = vpop.permute.xlu0 %2265  ;;  %v2215_v58 = vsub.f32 %v5320_v9, %v5450_v44 }
 0xbaa   : > { %v3683_v1 = vmul.f32 -1.442695, %v2369_v12  ;;  %v3684_v6 = vmul.f32 -1.442695, %v2370_v51  ;;  %v2371_v16 = vadd.f32 %v2352_v56, %v2315_v48  ;;  %v2372_v45 = vadd.f32 %v2352_v56, %v2316_v14 }
 0xbab   : > { %v3974_v35 = vpop.eup %3973  ;;  %3979 = vpow2.f32 %v3682_v19  ;;  %v2193_v38 = vmax.f32 %v2185_v27, 0.0  ;;  %v2271_v20 = vpop.permute.xlu1 %2270  ;;  %v2218_v9 = vsub.f32 %v5334_v49, %v5458_v36 }
 0xbac   : > { %v2261_v34 = vmul.f32 %v3974_v35, %v2229_v26  ;;  %v2262_v18 = vmul.f32 %v3974_v35, %v2230_v59  ;;  %3981 = vpow2.f32 %v3683_v1  ;;  %v3685_v40 = vmul.f32 -1.442695, %v2371_v16  ;;  %v3976_v0 = vpop.eup %3975 }
 0xbad   : > { %3983 = vpow2.f32 %v3684_v6  ;;  %v3686_v57 = vmul.f32 -1.442695, %v2372_v45  ;;  %v2234_v62 = vadd.f32 1e-05, %v2193_v38  ;;  %v2216_v1 = vsub.f32 %v5324_v8, %v5450_v44 }
 0xbae   : > { %v2317_v37 = vmul.f32 %v5438_v53, %v2261_v34  ;;  %v2318_v11 = vmul.f32 %v5438_v53, %v2262_v18  ;;  %3985 = vpow2.f32 %v3685_v40  ;;  %v2322_v53 = vpop.permute.xlu0 %2321  ;;  %v2247_v16 = vmul.f32 %v3976_v0, %v2215_v58 }
 0xbaf   : > { %3987 = vpow2.f32 %v3686_v57  ;;  %v2327_v6 = vpop.permute.xlu1 %2326  ;;  %v2217_v35 = vsub.f32 %v5330_v3, %v5458_v36  ;;  %v2248_v27 = vmul.f32 %v3976_v0, %v2216_v1  ;;  %v2219_v40 = vsub.f32 %v5340_v5, %v5464_v39 }
 0xbb0   : > { %v2373_v2 = vadd.f32 %v2357_v47, %v2317_v37  ;;  %v2374_v10 = vadd.f32 %v2357_v47, %v2318_v11  ;;  %3989 = vrsqrt.f32 %v2232_v17  ;;  %v2303_v34 = vmul.f32 %v2266_v63, %v2247_v16 }
 0xbb1   : > { %3991 = vrsqrt.f32 %v2233_v52  ;;  %v2220_v44 = vsub.f32 %v5344_v54, %v5464_v39  ;;  %v2304_v37 = vmul.f32 %v2266_v63, %v2248_v27 }
 0xbb2   : > { %v3687_v33 = vmul.f32 -1.442695, %v2373_v2  ;;  %v3688_v41 = vmul.f32 -1.442695, %v2374_v10  ;;  %v2276_v45 = vpop.permute.xlu0 %2275  ;;  %v2359_v3 = vadd.f32 %v2322_v53, %v2303_v34 }
 0xbb3   : > { %v3978_v55 = vpop.eup %3977  ;;  %v2281_v10 = vpop.permute.xlu1 %2280 }
 0xbb4   : > { %3993 = vpow2.f32 %v3687_v33  ;;  %v2399_v4 = vadd.f32 1.0, %v3978_v55  ;;  %v2360_v33 = vadd.f32 %v2322_v53, %v2304_v37 }
 0xbb5   : > { %v3980_v21 = vpop.eup %3979  ;;  %3995 = vpow2.f32 %v3688_v41 }
 0xbb6   : > { %v3982_v50 = vpop.eup %3981  ;;  %v2400_v43 = vadd.f32 1.0, %v3980_v21  ;;  %3997 = vrcp.f32 %v2399_v4  ;;  %v2332_v41 = vpop.permute.xlu0 %2331 }
 0xbb7   : > { %v3984_v19 = vpop.eup %3983  ;;  %3999 = vrsqrt.f32 %v2234_v62  ;;  %v2401_v12 = vadd.f32 1.0, %v3982_v50 }
 0xbb8   : > { %v3986_v51 = vpop.eup %3985  ;;  %v2402_v48 = vadd.f32 1.0, %v3984_v19  ;;  %4001 = vrcp.f32 %v2400_v43 }
 0xbb9   : > { %v3988_v14 = vpop.eup %3987  ;;  %4003 = vrcp.f32 %v2401_v12  ;;  %v2403_v26 = vadd.f32 1.0, %v3986_v51  ;;  %v2222_v51 = vsub.f32 %v5354_v15, %v5477_v61 }
 0xbba   : > { %4005 = vrcp.f32 %v2402_v48  ;;  %v2404_v59 = vadd.f32 1.0, %v3988_v14  ;;  %v3990_v56 = vpop.eup %3989 }
 0xbbb   : > { %4007 = vrcp.f32 %v2403_v26  ;;  %v3992_v60 = vpop.eup %3991  ;;  %v2249_v8 = vmul.f32 %v3990_v56, %v2217_v35  ;;  %v2250_v57 = vmul.f32 %v3990_v56, %v2218_v9 }
 0xbbc   : > { %4009 = vrcp.f32 %v2404_v59  ;;  %v2251_v2 = vmul.f32 %v3992_v60, %v2219_v40  ;;  %v2252_v49 = vmul.f32 %v3992_v60, %v2220_v44 }
 0xbbd   : > { %v2305_v38 = vmul.f32 %v2271_v20, %v2249_v8  ;;  %v2306_v0 = vmul.f32 %v2271_v20, %v2250_v57  ;;  %v2221_v20 = vsub.f32 %v5350_v32, %v5477_v61  ;;  %v3875_v57 = vld [vmem:[%s6261_s4 + $0x1e4] ss:$12 sps:$4 sm:$0xff]  }
 0xbbe   : > { %v3994_v18 = vpop.eup %3993  ;;  %v2307_v39 = vmul.f32 %v2276_v45, %v2251_v2  ;;  %v2308_v50 = vmul.f32 %v2276_v45, %v2252_v49  ;;  %2853 = vmatprep.mubr.bf16.mxu1 %v3875_v57 }
 0xbbf   : > { %v3996_v17 = vpop.eup %3995  ;;  %v2405_v11 = vadd.f32 1.0, %v3994_v18  ;;  %v2361_v54 = vadd.f32 %v2327_v6, %v2305_v38  ;;  %v2362_v63 = vadd.f32 %v2327_v6, %v2306_v0  ;;  %v2337_v6 = vpop.permute.xlu1 %2336 }
 0xbc0   : > { %v3998_v52 = vpop.eup %3997  ;;  %v2406_v47 = vadd.f32 1.0, %v3996_v17  ;;  %v2363_v12 = vadd.f32 %v2332_v41, %v2307_v39  ;;  %v2364_v14 = vadd.f32 %v2332_v41, %v2308_v50 }
 0xbc1   : > { %v4000_v36 = vpop.eup %3999  ;;  %4011 = vrcp.f32 %v2405_v11  ;;  %v2423_v5 = vmul.f32 %v3998_v52, %v2359_v3 }
 0xbc2   : > { %v4002_v55 = vpop.eup %4001  ;;  %4013 = vrcp.f32 %v2406_v47  ;;  %v2253_v59 = vmul.f32 %v4000_v36, %v2221_v20  ;;  %v2254_v1 = vmul.f32 %v4000_v36, %v2222_v51 }
 0xbc3   : > { %v4004_v62 = vpop.eup %4003  ;;  %v2424_v4 = vmul.f32 %v4002_v55, %v2360_v33  ;;  %v5509_v21 = vmul.f32 %v2423_v5, %v4488_v42 }
 0xbc4   : > { %v4006_v43 = vpop.eup %4005  ;;  %v2425_v19 = vmul.f32 %v4004_v62, %v2361_v54  ;;  %v2309_v45 = vmul.f32 %v2281_v10, %v2253_v59  ;;  %v2310_v15 = vmul.f32 %v2281_v10, %v2254_v1  ;;  %v3726_v54 = vld [vmem:[%s6262_s5 + $0x2a8] sm:$0xff] }
 0xbc5   : > { %v4008_v53 = vpop.eup %4007  ;;  %v2426_v48 = vmul.f32 %v4006_v43, %v2362_v63  ;;  %2439 = vrot.lane.b32.xlu0 %v5509_v21, %s6329_s0  ;;  %v5521_v32 = vmul.f32 %v2424_v4, %v4266_v7  ;;  %v3725_v63 = vld [vmem:[%s6262_s5 + $0x2a0] sm:$0xff] }
 0xbc6   : > { %v4010_v58 = vpop.eup %4009  ;;  %v5518_v26 = vmul.f32 %v2425_v19, %v4488_v42  ;;  %v2427_v56 = vmul.f32 %v4008_v53, %v2363_v12  ;;  %v2365_v35 = vadd.f32 %v2337_v6, %v2309_v45  ;;  %v2366_v9 = vadd.f32 %v2337_v6, %v2310_v15  ;;  %v3733_v43 = vld [vmem:[%s6262_s5 + $0x2e0] sm:$0xff]  ;;  %v3734_v12 = vld [vmem:[%s6262_s5 + $0x2e8] sm:$0xff] }
 0xbc7   : > { %v2428_v16 = vmul.f32 %v4010_v58, %v2364_v14  ;;  %v5528_v61 = vmul.f32 %v2426_v48, %v4266_v7  ;;  %v3727_v48 = vld [vmem:[%s6262_s5 + $0x2b0] sm:$0xff] }
 0xbc8   : > { %2441 = vrot.lane.b32.xlu1 %v5518_v26, %s6329_s0  ;;  %v5571_v40 = vmul.f32 %v2427_v56, %v4488_v42 }
 0xbc9   : > { %2447 = vrot.lane.b32.xlu0 %v5521_v32, %s6329_s0  ;;  %v5581_v8 = vmul.f32 %v2428_v16, %v4266_v7 }
 0xbcb   : > { %v4012_v60 = vpop.eup %4011 }
 0xbcc   : > { %v4014_v27 = vpop.eup %4013  ;;  %v2429_v34 = vmul.f32 %v4012_v60, %v2365_v35  ;;  %2449 = vrot.lane.b32.xlu1 %v5528_v61, %s6329_s0 }
 0xbcd   : > { %v2430_v18 = vmul.f32 %v4014_v27, %v2366_v9  ;;  %2471 = vrot.lane.b32.xlu0 %v5509_v21, %s6324_s29 }
 0xbce   : > { %v5578_v44 = vmul.f32 %v2429_v34, %v4488_v42 }
 0xbcf   : > { %v5588_v17 = vmul.f32 %v2430_v18, %v4266_v7 }
 0xbd0   : > { %2473 = vrot.lane.b32.xlu1 %v5518_v26, %s6324_s29 }
 0xbd1   : > { %2479 = vrot.lane.b32.xlu0 %v5521_v32, %s6324_s29 }
 0xbd4   : > { %2481 = vrot.lane.b32.xlu1 %v5528_v61, %s6324_s29 }
 0xbd5   : > { %2503 = vrot.lane.b32.xlu0 %v5509_v21, %s6327_s12 }
 0xbd8   : > { %2505 = vrot.lane.b32.xlu1 %v5518_v26, %s6327_s12 }
 0xbd9   : > { %2511 = vrot.lane.b32.xlu0 %v5521_v32, %s6327_s12 }
 0xbdc   : > { %2513 = vrot.lane.b32.xlu1 %v5528_v61, %s6327_s12 }
 0xbdd   : > { %2535 = vrot.lane.b32.xlu0 %v5509_v21, %s6330_s1 }
 0xbe0   : > { %2537 = vrot.lane.b32.xlu1 %v5518_v26, %s6330_s1 }
 0xbe1   : > { %2543 = vrot.lane.b32.xlu0 %v5521_v32, %s6330_s1 }
 0xbe4   : > { %2545 = vrot.lane.b32.xlu1 %v5528_v61, %s6330_s1 }
 0xbe5   : > { %2567 = vrot.lane.b32.xlu0 %v5509_v21, %s6322_s27 }
 0xbe8   : > { %2569 = vrot.lane.b32.xlu1 %v5518_v26, %s6322_s27 }
 0xbe9   : > { %2575 = vrot.lane.b32.xlu0 %v5521_v32, %s6322_s27 }
 0xbec   : > { %2577 = vrot.lane.b32.xlu1 %v5528_v61, %s6322_s27 }
 0xbed   : > { %2599 = vrot.lane.b32.xlu0 %v5509_v21, %s6323_s28 }
 0xbf0   : > { %2601 = vrot.lane.b32.xlu1 %v5518_v26, %s6323_s28 }
 0xbf1   : > { %2607 = vrot.lane.b32.xlu0 %v5521_v32, %s6323_s28 }
 0xbf4   : > { %2609 = vrot.lane.b32.xlu1 %v5528_v61, %s6323_s28 }
 0xbf5   : > { %2443 = vrot.lane.b32.xlu0 %v5571_v40, %s6329_s0 }
 0xbf8   : > { %2445 = vrot.lane.b32.xlu1 %v5578_v44, %s6329_s0 }
 0xbf9   : > { %2451 = vrot.lane.b32.xlu0 %v5581_v8, %s6329_s0 }
 0xbfc   : > { %2453 = vrot.lane.b32.xlu1 %v5588_v17, %s6329_s0 }
 0xbfd   : > { %2475 = vrot.lane.b32.xlu0 %v5571_v40, %s6324_s29 }
 0xc00   : > { %2477 = vrot.lane.b32.xlu1 %v5578_v44, %s6324_s29 }
 0xc01   : > { %2483 = vrot.lane.b32.xlu0 %v5581_v8, %s6324_s29 }
 0xc04   : > { %2485 = vrot.lane.b32.xlu1 %v5588_v17, %s6324_s29 }
 0xc05   : > { %2507 = vrot.lane.b32.xlu0 %v5571_v40, %s6327_s12 }
 0xc08   : > { %2509 = vrot.lane.b32.xlu1 %v5578_v44, %s6327_s12 }
 0xc09   : > { %2515 = vrot.lane.b32.xlu0 %v5581_v8, %s6327_s12 }
 0xc0c   : > { %2517 = vrot.lane.b32.xlu1 %v5588_v17, %s6327_s12  ;;  %s4142_s12 = smov [#allocation2]  }
 0xc0d   : > { %2539 = vrot.lane.b32.xlu0 %v5571_v40, %s6330_s1  ;;  %s4069_s0 = sshll.u32 %s4142_s12, 4  ;;  %s4070_s0 = int_to_ptr.vmem [resolvable:$false] %s4069_s0 }
 0xc0e   : > { %p4072_p0 = scmp.lt.s32.totalorder %s6217_s26, %s4070_s0 }
 0xc10   : > { %2541 = vrot.lane.b32.xlu1 %v5578_v44, %s6330_s1 }
 0xc11   : > { %2547 = vrot.lane.b32.xlu0 %v5581_v8, %s6330_s1 }
 0xc14   : > { %2549 = vrot.lane.b32.xlu1 %v5588_v17, %s6330_s1  ;;  %s4071_s1 = scalar_lea.vmem %s4070_s0, 32 }
 0xc15   : > { %2631 = vrot.lane.b32.xlu0 %v5509_v21, %s6325_s30  ;;  %p4073_p1 = scmp.lt.s32.totalorder %s4071_s1, %s4065_s17 }
 0xc17   : > { %p4074_p2 = por %p4073_p1, %p4072_p0 }
 0xc18   : > { %2633 = vrot.lane.b32.xlu1 %v5518_v26, %s6325_s30 }
 0xc19   : > { %2571 = vrot.lane.b32.xlu0 %v5571_v40, %s6322_s27  ;;  %p4075_p3 = pnand %p4074_p2, %p4068_p13 }
 0xc1c   : > { %2641 = vrot.lane.b32.xlu1 %v5528_v61, %s6325_s30 }
 0xc1d   : > { %2579 = vrot.lane.b32.xlu0 %v5581_v8, %s6322_s27 }
 0xc20   : > { %2573 = vrot.lane.b32.xlu1 %v5578_v44, %s6322_s27 }
 0xc21   : > { %2603 = vrot.lane.b32.xlu0 %v5571_v40, %s6323_s28 }
 0xc24   : > { %2581 = vrot.lane.b32.xlu1 %v5588_v17, %s6322_s27 }
 0xc25   : > { %2611 = vrot.lane.b32.xlu0 %v5581_v8, %s6323_s28 }
 0xc28   : > { %2605 = vrot.lane.b32.xlu1 %v5578_v44, %s6323_s28 }
 0xc29   : > { %2639 = vrot.lane.b32.xlu0 %v5521_v32, %s6325_s30 }
 0xc2c   : > { %2613 = vrot.lane.b32.xlu1 %v5588_v17, %s6323_s28  ;;  %s6215_s28 = scalar_lea.hbm %s6267_s10, %s3746_s2 }
 0xc2d   : > { %2635 = vrot.lane.b32.xlu0 %v5571_v40, %s6325_s30 }
 0xc30   : > { %2637 = vrot.lane.b32.xlu1 %v5578_v44, %s6325_s30 }
 0xc31   : > { %2643 = vrot.lane.b32.xlu0 %v5581_v8, %s6325_s30 }
 0xc34   : > { %2645 = vrot.lane.b32.xlu1 %v5588_v17, %s6325_s30  ;;  %s3482_s30 = scalar_lea.sflag [#allocation3], %s372_s18 }
 0xc35   : > { %2663 = vrot.lane.b32.xlu0 %v5509_v21, %s6326_s11 }
 0xc37   : > { %v2440_v37 = vpop.permute.xlu0 %2439 }
 0xc38   : > { %2665 = vrot.lane.b32.xlu1 %v5518_v26, %s6326_s11 }
 0xc39   : > { %2671 = vrot.lane.b32.xlu0 %v5521_v32, %s6326_s11 }
 0xc3a   : > { %v2442_v11 = vpop.permute.xlu1 %2441 }
 0xc3b   : > { %v2448_v3 = vpop.permute.xlu0 %2447 }
 0xc3c   : > { %2673 = vrot.lane.b32.xlu1 %v5528_v61, %s6326_s11  ;;  %v2455_v52 = vsel %vm427_vm2, %v2440_v37, %v2448_v3  ;;  %v2459_v38 = vsel %vm427_vm2, %v2448_v3, %v2440_v37 }
 0xc3d   : > { %2667 = vrot.lane.b32.xlu0 %v5571_v40, %s6326_s11  ;;  %v2463_v0 = vmul.f32 %v2459_v38, %v4345_v28  ;;  %v2464_v10 = vmul.f32 %v2455_v52, %v4348_v29 }
 0xc3e   : > { %v2450_v47 = vpop.permute.xlu1 %2449 }
 0xc3f   : > { %v2456_v2 = vsel %vm427_vm2, %v2442_v11, %v2450_v47  ;;  %v2460_v49 = vsel %vm427_vm2, %v2450_v47, %v2442_v11  ;;  %v2472_v36 = vpop.permute.xlu0 %2471 }
 0xc40   : > { %v2465_v33 = vmul.f32 %v2460_v49, %v4345_v28  ;;  %v2466_v5 = vmul.f32 %v2456_v2, %v4348_v29  ;;  %2669 = vrot.lane.b32.xlu1 %v5578_v44, %s6326_s11 }
 0xc41   : > { %2675 = vrot.lane.b32.xlu0 %v5581_v8, %s6326_s11 }
 0xc42   : > { %v2695_v41 = vpack.c.bf16 %v2465_v33, %v2463_v0  ;;  %v2474_v55 = vpop.permute.xlu1 %2473  ;;  %v2696_v39 = vpack.c.bf16 %v2466_v5, %v2464_v10 }
 0xc43   : > { %v2480_v62 = vpop.permute.xlu0 %2479 }
 0xc44   : > { %2677 = vrot.lane.b32.xlu1 %v5588_v17, %s6326_s11  ;;  %2821 = vmatprep.subr.bf16.mxu1 %v2696_v39  ;;  %v2487_v11 = vsel %vm448_vm1, %v2472_v36, %v2480_v62 }
 0xc45   : > { %3163 = vperm.xlu0 %3850, %v3726_v54   ;;  %2822 = vmatpush1.bf16.msra.mxu1 %v2695_v41  ;;  %v2491_v41 = vsel %vm448_vm1, %v2480_v62, %v2472_v36 }
 0xc46   : > { %v2482_v4 = vpop.permute.xlu1 %2481 }
 0xc47   : > { %v5685_v50 = vpop.permute.xlu0 %2503  ;;  %v2488_v18 = vsel %vm448_vm1, %v2474_v55, %v2482_v4  ;;  %v2492_v52 = vsel %vm448_vm1, %v2482_v4, %v2474_v55  ;;  %v2496_v55 = vmul.f32 %v2487_v11, %v4333_v24 }
 0xc48   : > { %3158 = vperm.xlu1 %3849, %v3725_v63   ;;  %v2498_v38 = vmul.f32 %v2488_v18, %v4333_v24  ;;  %v2497_v54 = vmul.f32 %v2492_v52, %v4330_v23 }
 0xc4a   : > { %v2506_v20 = vpop.permute.xlu1 %2505 }
 0xc4b   : > { %v5690_v19 = vpop.permute.xlu0 %2511 }
 0xc4c   : > { %3214 = vperm.xlu1 %3849, %v3733_v43  }
 0xc4e   : > { %v2514_v53 = vpop.permute.xlu1 %2513 }
 0xc4f   : > { %v5695_v51 = vpop.permute.xlu0 %2535 }
 0xc50   : > { %3219 = vperm.xlu1 %3849, %v3734_v12   ;;  %v2495_v12 = vmul.f32 %v2491_v41, %v4330_v23 }
 0xc52   : > { %v5700_v14 = vpop.permute.xlu1 %2537  ;;  %v2699_v62 = vpack.c.bf16 %v2497_v54, %v2495_v12 }
 0xc53   : > { %v5702_v58 = vpop.permute.xlu0 %2543 }
 0xc54   : > { %3168 = vperm.xlu1 %3849, %v3727_v48   ;;  %v2520_v48 = vsel %vm470_vm0, %v2506_v20, %v2514_v53 }
 0xc55   : > { %v2530_v18 = vmul.f32 %v2520_v48, %v4337_v25 }
 0xc56   : > { %v5704_v59 = vpop.permute.xlu1 %2545 }
 0xc57   : > { %v5706_v56 = vpop.permute.xlu0 %2567 }
 0xc5a   : > { %v5708_v1 = vpop.permute.xlu1 %2569 }
 0xc5b   : > { %v5710_v6 = vpop.permute.xlu0 %2575 }
 0xc5e   : > { %v5712_v16 = vpop.permute.xlu1 %2577 }
 0xc5f   : > { %v5714_v45 = vpop.permute.xlu0 %2599 }
 0xc62   : > { %v5716_v15 = vpop.permute.xlu1 %2601 }
 0xc63   : > { %v5718_v35 = vpop.permute.xlu0 %2607 }
 0xc66   : > { %v5720_v60 = vpop.permute.xlu1 %2609 }
 0xc67   : > { %v2444_v9 = vpop.permute.xlu0 %2443 }
 0xc6a   : > { %v2446_v27 = vpop.permute.xlu1 %2445 }
 0xc6b   : > { %v2452_v34 = vpop.permute.xlu0 %2451 }
 0xc6c   : > { %v2457_v57 = vsel %vm427_vm2, %v2444_v9, %v2452_v34  ;;  %v2461_v37 = vsel %vm427_vm2, %v2452_v34, %v2444_v9  ;;  %v2519_v9 = vsel %vm470_vm0, %v5685_v50, %v5690_v19  ;;  %v2524_v34 = vsel %vm470_vm0, %v2514_v53, %v2506_v20 }
 0xc6d   : > { %v2467_v0 = vmul.f32 %v2461_v37, %v4345_v28  ;;  %v2468_v10 = vmul.f32 %v2457_v57, %v4348_v29  ;;  %v2523_v20 = vsel %vm470_vm0, %v5690_v19, %v5685_v50  ;;  %v2528_v53 = vmul.f32 %v2519_v9, %v4337_v25 }
 0xc6e   : > { %v2454_v3 = vpop.permute.xlu1 %2453 }
 0xc6f   : > { %v2458_v47 = vsel %vm427_vm2, %v2446_v27, %v2454_v3  ;;  %v2462_v2 = vsel %vm427_vm2, %v2454_v3, %v2446_v27  ;;  %v2476_v49 = vpop.permute.xlu0 %2475  ;;  %vm3479_vm2 = vcmask 253952  }
 0xc70   : > { %v2469_v33 = vmul.f32 %v2462_v2, %v4345_v28  ;;  %v2470_v5 = vmul.f32 %v2458_v47, %v4348_v29  ;;  %v2700_v28 = vpack.c.bf16 %v2498_v38, %v2496_v55  ;;  %v2529_v2 = vmul.f32 %v2524_v34, %v4327_v22 }
 0xc71   : > { %v2551_v55 = vsel %vm492_vm3, %v5695_v51, %v5702_v58 }
 0xc72   : > { %v2697_v39 = vpack.c.bf16 %v2469_v33, %v2467_v0  ;;  %v2478_v63 = vpop.permute.xlu1 %2477  ;;  %v2698_v4 = vpack.c.bf16 %v2470_v5, %v2468_v10  ;;  %v2527_v5 = vmul.f32 %v2523_v20, %v4327_v22 }
 0xc73   : > { %v2484_v43 = vpop.permute.xlu0 %2483 }
 0xc74   : > { %2823 = vmatprep.subr.bf16.mxu1 %v2698_v4  ;;  %v2489_v29 = vsel %vm448_vm1, %v2476_v49, %v2484_v43  ;;  %v2493_v36 = vsel %vm448_vm1, %v2484_v43, %v2476_v49  ;;  %v2703_v41 = vpack.c.bf16 %v2529_v2, %v2527_v5  ;;  %v2588_v5 = vsel %vm514_vm7, %v5712_v16, %v5708_v1 }
 0xc75   : > { %2824 = vmatpush1.bf16.msra.mxu1 %v2697_v39  ;;  %v2499_v3 = vmul.f32 %v2493_v36, %v4330_v23  ;;  %v2500_v52 = vmul.f32 %v2489_v29, %v4333_v24  ;;  %v2556_v39 = vsel %vm492_vm3, %v5704_v59, %v5700_v14 }
 0xc76   : > { %v2486_v27 = vpop.permute.xlu1 %2485  ;;  %2825 = vmatprep.subr.bf16.mxu1 %v2700_v28  ;;  %v2561_v34 = vmul.f32 %v2556_v39, %v4351_v30 }
 0xc77   : > { %v2490_v57 = vsel %vm448_vm1, %v2478_v63, %v2486_v27  ;;  %v2494_v37 = vsel %vm448_vm1, %v2486_v27, %v2478_v63  ;;  %v2508_v11 = vpop.permute.xlu0 %2507  ;;  %vm4140_vm1 = vmmov 0  }
 0xc78   : > { %v2501_v38 = vmul.f32 %v2494_v37, %v4330_v23  ;;  %v2502_v47 = vmul.f32 %v2490_v57, %v4333_v24  ;;  %v2552_v23 = vsel %vm492_vm3, %v5700_v14, %v5704_v59  ;;  %v2704_v24 = vpack.c.bf16 %v2530_v18, %v2528_v53 }
 0xc79   : > { %2826 = vmatpush1.bf16.msra.mxu1 %v2699_v62  ;;  %v2562_v63 = vmul.f32 %v2552_v23, %v4354_v31  ;;  %v2555_v14 = vsel %vm492_vm3, %v5702_v58, %v5695_v51  ;;  %v2560_v59 = vmul.f32 %v2551_v55, %v4354_v31  ;;  %v6331_v55 = vld [vmem:[#allocation8_spill] sm:$0xff] }
 0xc7a   : > { %v2701_v49 = vpack.c.bf16 %v2501_v38, %v2499_v3  ;;  %v2510_v0 = vpop.permute.xlu1 %2509  ;;  %v2702_v10 = vpack.c.bf16 %v2502_v47, %v2500_v52 }
 0xc7b   : > { %v2516_v33 = vpop.permute.xlu0 %2515  ;;  %v2708_v57 = vpack.c.bf16 %v2562_v63, %v2560_v59  ;;  %v2616_v63 = vsel %vm536_vm9, %v5716_v15, %v5720_v60 }
 0xc7c   : > { %2827 = vmatprep.subr.bf16.mxu1 %v2702_v10  ;;  %v2521_v50 = vsel %vm470_vm0, %v2508_v11, %v2516_v33  ;;  %v2525_v19 = vsel %vm470_vm0, %v2516_v33, %v2508_v11  ;;  %v2712_v33 = vpack.c.bf16 %v5528_v61, %v5521_v32  ;;  %v2711_v61 = vpack.c.bf16 %v5518_v26, %v5509_v21 }
 0xc7d   : > { %2828 = vmatpush1.bf16.msra.mxu1 %v2701_v49  ;;  %v2531_v48 = vmul.f32 %v2525_v19, %v4327_v22  ;;  %v2532_v28 = vmul.f32 %v2521_v50, %v4337_v25  ;;  %v2714_v50 = vpack.c.bf16 %v5588_v17, %v5581_v8  ;;  %v2583_v19 = vsel %vm514_vm7, %v5706_v56, %v5710_v6 }
 0xc7e   : > { %v2518_v54 = vpop.permute.xlu1 %2517  ;;  %2829 = vmatprep.subr.bf16.mxu1 %v2704_v24  ;;  %v2594_v24 = vmul.f32 %v2588_v5, %v4380_v46  ;;  %v2713_v21 = vpack.c.bf16 %v5578_v44, %v5571_v40  ;;  %v2591_v26 = vmul.f32 %v2583_v19, %v6331_v55  ;;  %v2620_v8 = vsel %vm536_vm9, %v5720_v60, %v5716_v15 }
 0xc7f   : > { %v2522_v4 = vsel %vm470_vm0, %v2510_v0, %v2518_v54  ;;  %v2526_v43 = vsel %vm470_vm0, %v2518_v54, %v2510_v0  ;;  %v2540_v12 = vpop.permute.xlu0 %2539  ;;  %v2619_v40 = vsel %vm536_vm9, %v5718_v35, %v5714_v45  ;;  %v2615_v15 = vsel %vm536_vm9, %v5714_v45, %v5718_v35 }
 0xc80   : > { %v2533_v29 = vmul.f32 %v2526_v43, %v4327_v22  ;;  %v2534_v36 = vmul.f32 %v2522_v4, %v4337_v25  ;;  %v2559_v22 = vmul.f32 %v2555_v14, %v4351_v30  ;;  %v6332_v4 = vld [vmem:[#allocation10_spill] sm:$0xff]  ;;  %vm2808_vm0 = vcmask 261120  }
 0xc81   : > { %2830 = vmatpush1.bf16.msra.mxu1 %v2703_v41  ;;  %v2626_v43 = vmul.f32 %v2620_v8, %v6332_v4  ;;  %v2624_v60 = vmul.f32 %v2619_v40, %v6332_v4 }
 0xc82   : > { %v2705_v62 = vpack.c.bf16 %v2533_v29, %v2531_v48  ;;  %v2542_v9 = vpop.permute.xlu1 %2541  ;;  %v2706_v27 = vpack.c.bf16 %v2534_v36, %v2532_v28  ;;  %v2707_v58 = vpack.c.bf16 %v2561_v34, %v2559_v22 }
 0xc83   : > { %v2548_v18 = vpop.permute.xlu0 %2547 }
 0xc84   : > { %2831 = vmatprep.subr.bf16.mxu1 %v2706_v27  ;;  %v2553_v25 = vsel %vm492_vm3, %v2540_v12, %v2548_v18  ;;  %v2557_v37 = vsel %vm492_vm3, %v2548_v18, %v2540_v12 }
 0xc85   : > { %2832 = vmatpush1.bf16.msra.mxu1 %v2705_v62  ;;  %v2563_v38 = vmul.f32 %v2557_v37, %v4351_v30  ;;  %v2564_v47 = vmul.f32 %v2553_v25, %v4354_v31  ;;  %v6333_v62 = vld [vmem:[#allocation9_spill] sm:$0xff]  ;;  %v2720_v37 = vpack.c.bf16 %v2626_v43, %v2624_v60 }
 0xc86   : > { %v2550_v51 = vpop.permute.xlu1 %2549  ;;  %2833 = vmatprep.subr.bf16.mxu1 %v2708_v57  ;;  %v2623_v22 = vmul.f32 %v2615_v15, %v6333_v62  ;;  %v6337_v15 = vld [vmem:[#allocation14_spill] sm:$0xff] }
 0xc87   : > { %v2554_v11 = vsel %vm492_vm3, %v2542_v9, %v2550_v51  ;;  %v2558_v3 = vsel %vm492_vm3, %v2550_v51, %v2542_v9  ;;  %v5814_v52 = vpop.permute.xlu0 %2631  ;;  %v2625_v9 = vmul.f32 %v2616_v63, %v6333_v62  ;;  %v3873_v63 = vld [vmem:[%s6261_s4 + $0x1e0] ss:$12 sps:$4 sm:$0xff]  }
 0xc88   : > { %v2565_v20 = vmul.f32 %v2558_v3, %v4351_v30  ;;  %v2566_v53 = vmul.f32 %v2554_v11, %v4354_v31  ;;  %v2587_v30 = vsel %vm514_vm7, %v5710_v6, %v5706_v56  ;;  %v2584_v31 = vsel %vm514_vm7, %v5708_v1, %v5712_v16 }
 0xc89   : > { %2834 = vmatpush1.bf16.msra.mxu1 %v2707_v58  ;;  %v2592_v41 = vmul.f32 %v2587_v30, %v4380_v46  ;;  %v2593_v54 = vmul.f32 %v2584_v31, %v6331_v55  ;;  %v2719_v35 = vpack.c.bf16 %v2625_v9, %v2623_v22  ;;  %v3878_v22 = vld [vmem:[%s6261_s4 + $0x1f8] ss:$12 sps:$4 sm:$0xff]  }
 0xc8a   : > { %v2709_v2 = vpack.c.bf16 %v2565_v20, %v2563_v38  ;;  %v5820_v49 = vpop.permute.xlu1 %2633  ;;  %v2710_v0 = vpack.c.bf16 %v2566_v53, %v2564_v47 }
 0xc8b   : > { %v2572_v10 = vpop.permute.xlu0 %2571  ;;  %v2716_v17 = vpack.c.bf16 %v2594_v24, %v2592_v41  ;;  %v2715_v39 = vpack.c.bf16 %v2593_v54, %v2591_v26  ;;  %v6335_v24 = vld [vmem:[#allocation11_spill] sm:$0xff] }
 0xc8c   : > { %2835 = vmatprep.subr.bf16.mxu1 %v2710_v0 }
 0xc8d   : > { %2836 = vmatpush1.bf16.msra.mxu1 %v2709_v2  ;;  %v6334_v2 = vld [vmem:[#allocation12_spill] sm:$0xff] }
 0xc8e   : > { %v5828_v23 = vpop.permute.xlu1 %2641  ;;  %2837 = vmatprep.subr.bf16.mxu1 %v2712_v33 }
 0xc8f   : > { %v2580_v32 = vpop.permute.xlu0 %2579  ;;  %v2652_v51 = vsel %vm558_vm11, %v5828_v23, %v5820_v49  ;;  %v2648_v5 = vsel %vm558_vm11, %v5820_v49, %v5828_v23 }
 0xc90   : > { %v2585_v56 = vsel %vm514_vm7, %v2572_v10, %v2580_v32  ;;  %v2589_v6 = vsel %vm514_vm7, %v2580_v32, %v2572_v10  ;;  %v2658_v30 = vmul.f32 %v2652_v51, %v6334_v2  ;;  %v2657_v41 = vmul.f32 %v2648_v5, %v6335_v24  ;;  %v3887_v5 = vld [vmem:[%s6261_s4 + $0x218] ss:$12 sps:$4 sm:$0xff]  }
 0xc91   : > { %2838 = vmatpush1.bf16.msra.mxu1 %v2711_v61  ;;  %v2595_v29 = vmul.f32 %v2585_v56, %v6331_v55  ;;  %v2596_v36 = vmul.f32 %v2589_v6, %v4380_v46 }
 0xc92   : > { %v2574_v1 = vpop.permute.xlu1 %2573  ;;  %2839 = vmatprep.subr.bf16.mxu1 %v2714_v50 }
 0xc93   : > { %v2604_v16 = vpop.permute.xlu0 %2603 }
 0xc95   : > { %2840 = vmatpush1.bf16.msra.mxu1 %v2713_v21 }
 0xc96   : > { %v2582_v44 = vpop.permute.xlu1 %2581  ;;  %2841 = vmatprep.subr.bf16.mxu1 %v2716_v17 }
 0xc97   : > { %v2586_v12 = vsel %vm514_vm7, %v2574_v1, %v2582_v44  ;;  %v2590_v48 = vsel %vm514_vm7, %v2582_v44, %v2574_v1  ;;  %v2612_v28 = vpop.permute.xlu0 %2611 }
 0xc98   : > { %v2597_v14 = vmul.f32 %v2586_v12, %v6331_v55  ;;  %v2598_v59 = vmul.f32 %v2590_v48, %v4380_v46  ;;  %v2617_v25 = vsel %vm536_vm9, %v2604_v16, %v2612_v28  ;;  %v2621_v46 = vsel %vm536_vm9, %v2612_v28, %v2604_v16  ;;  %v3876_v12 = vld [vmem:[%s6261_s4 + $0x1fc] ss:$12 sps:$4 sm:$0xff]  }
 0xc99   : > { %2842 = vmatpush1.bf16.msra.mxu1 %v2715_v39  ;;  %v2627_v11 = vmul.f32 %v2617_v25, %v6333_v62  ;;  %v2628_v3 = vmul.f32 %v2621_v46, %v6332_v4 }
 0xc9a   : > { %v2717_v27 = vpack.c.bf16 %v2597_v14, %v2595_v29  ;;  %v2606_v34 = vpop.permute.xlu1 %2605  ;;  %v2718_v18 = vpack.c.bf16 %v2598_v59, %v2596_v36  ;;  %v6336_v14 = vld [vmem:[#allocation13_spill] sm:$0xff] }
 0xc9b   : > { %v2640_v57 = vpop.permute.xlu0 %2639 }
 0xc9c   : > { %2843 = vmatprep.subr.bf16.mxu1 %v2718_v18  ;;  %v2651_v45 = vsel %vm558_vm11, %v2640_v57, %v5814_v52  ;;  %v2647_v53 = vsel %vm558_vm11, %v5814_v52, %v2640_v57 }
 0xc9d   : > { %2844 = vmatpush1.bf16.msra.mxu1 %v2717_v27  ;;  %v2656_v0 = vmul.f32 %v2651_v45, %v6334_v2  ;;  %v2655_v50 = vmul.f32 %v2647_v53, %v6335_v24  ;;  %v3881_v53 = vld [vmem:[%s6261_s4 + $0x210] ss:$12 sps:$4 sm:$0xff]  }
 0xc9e   : > { %v2614_v58 = vpop.permute.xlu1 %2613  ;;  %2845 = vmatprep.subr.bf16.mxu1 %v2720_v37  ;;  %v3879_v37 = vld [vmem:[%s6261_s4 + $0x214] ss:$12 sps:$4 sm:$0xff]  }
 0xc9f   : > { %v2618_v38 = vsel %vm536_vm9, %v2606_v34, %v2614_v58  ;;  %v2622_v47 = vsel %vm536_vm9, %v2614_v58, %v2606_v34  ;;  %v2636_v20 = vpop.permute.xlu0 %2635  ;;  %v2724_v19 = vpack.c.bf16 %v2658_v30, %v2656_v0  ;;  %v2723_v23 = vpack.c.bf16 %v2657_v41, %v2655_v50  ;;  %v3888_v30 = vld [vmem:[%s6261_s4 + $0x230] ss:$12 sps:$4 sm:$0xff]  }
 0xca0   : > { %v2629_v10 = vmul.f32 %v2618_v38, %v6333_v62  ;;  %v2630_v33 = vmul.f32 %v2622_v47, %v6332_v4  ;;  %v6338_v0 = vmov 0  }
 0xca1   : > { %2846 = vmatpush1.bf16.msra.mxu1 %v2719_v35 }
 0xca2   : > { %v2721_v31 = vpack.c.bf16 %v2629_v10, %v2627_v11  ;;  %v2638_v32 = vpop.permute.xlu1 %2637  ;;  %v2722_v61 = vpack.c.bf16 %v2630_v33, %v2628_v3  ;;  %v3885_v10 = vld [vmem:[%s6261_s4 + $0x1e8] ss:$12 sps:$4 sm:$0xff]   ;;  %v3886_v33 = vld [vmem:[%s6261_s4 + $0x200] ss:$12 sps:$4 sm:$0xff]  }
 0xca3   : > { %v2644_v52 = vpop.permute.xlu0 %2643 }
 0xca4   : > { %2847 = vmatprep.subr.bf16.mxu1 %v2722_v61  ;;  %v2649_v55 = vsel %vm558_vm11, %v2636_v20, %v2644_v52  ;;  %v2653_v54 = vsel %vm558_vm11, %v2644_v52, %v2636_v20 }
 0xca5   : > { %2848 = vmatpush1.bf16.msra.mxu1 %v2721_v31  ;;  %v2659_v26 = vmul.f32 %v2649_v55, %v6335_v24  ;;  %v2660_v8 = vmul.f32 %v2653_v54, %v6334_v2 }
 0xca6   : > { %v2646_v49 = vpop.permute.xlu1 %2645  ;;  %2849 = vmatprep.subr.bf16.mxu1 %v2724_v19 }
 0xca7   : > { %v2650_v1 = vsel %vm558_vm11, %v2638_v32, %v2646_v49  ;;  %v2654_v16 = vsel %vm558_vm11, %v2646_v49, %v2638_v32  ;;  %v2664_v21 = vpop.permute.xlu0 %2663 }
 0xca8   : > { %v2661_v17 = vmul.f32 %v2650_v1, %v6335_v24  ;;  %v2662_v56 = vmul.f32 %v2654_v16, %v6334_v2  ;;  %v3884_v2 = vld [vmem:[%s6261_s4 + $0x228] ss:$12 sps:$4 sm:$0xff]  }
 0xca9   : > { %2850 = vmatpush1.bf16.msra.mxu1 %v2723_v23 }
 0xcaa   : > { %v2725_v6 = vpack.c.bf16 %v2661_v17, %v2659_v26  ;;  %v2666_v39 = vpop.permute.xlu1 %2665  ;;  %v2726_v40 = vpack.c.bf16 %v2662_v56, %v2660_v8 }
 0xcab   : > { %v2672_v44 = vpop.permute.xlu0 %2671 }
 0xcac   : > { %2851 = vmatprep.subr.bf16.mxu1 %v2726_v40  ;;  %v2679_v4 = vsel %vm580_vm13, %v2664_v21, %v2672_v44  ;;  %v2683_v43 = vsel %vm580_vm13, %v2672_v44, %v2664_v21 }
 0xcad   : > { %2852 = vmatpush1.bf16.msra.mxu1 %v2725_v6  ;;  %v2687_v59 = vmul.f32 %v2679_v4, %v6336_v14  ;;  %v2688_v60 = vmul.f32 %v2683_v43, %v6337_v15 }
 0xcae   : > { %v2674_v48 = vpop.permute.xlu1 %2673 }
 0xcaf   : > { %v2680_v28 = vsel %vm580_vm13, %v2666_v39, %v2674_v48  ;;  %v2684_v29 = vsel %vm580_vm13, %v2674_v48, %v2666_v39  ;;  %v2668_v36 = vpop.permute.xlu0 %2667 }
 0xcb0   : > { %v2689_v62 = vmul.f32 %v2680_v28, %v6336_v14  ;;  %v2690_v9 = vmul.f32 %v2684_v29, %v6337_v15  ;;  %2854 = vmatmul.mubr.bf16.vlgmr.msra.gmra.mrb[4].mxu1 %v3873_v63 }
 0xcb1   : > { %2863 = vmatprep.mubr.bf16.mxu1 %v3876_v12 }
 0xcb2   : > { %v2727_v27 = vpack.c.bf16 %v2689_v62, %v2687_v59  ;;  %v2670_v34 = vpop.permute.xlu1 %2669  ;;  %v2728_v18 = vpack.c.bf16 %v2690_v9, %v2688_v60 }
 0xcb3   : > { %v2676_v57 = vpop.permute.xlu0 %2675 }
 0xcb4   : > { %2894 = vmatprep.subr.bf16.mxu1 %v2728_v18  ;;  %v2681_v25 = vsel %vm580_vm13, %v2668_v36, %v2676_v57  ;;  %v2685_v46 = vsel %vm580_vm13, %v2676_v57, %v2668_v36 }
 0xcb5   : > { %2895 = vmatpush1.bf16.msra.mxu1 %v2727_v27  ;;  %v2691_v58 = vmul.f32 %v2681_v25, %v6336_v14  ;;  %v2692_v11 = vmul.f32 %v2685_v46, %v6337_v15 }
 0xcb6   : > { %v2678_v45 = vpop.permute.xlu1 %2677 }
 0xcb7   : > { %v2682_v35 = vsel %vm580_vm13, %v2670_v34, %v2678_v45  ;;  %v2686_v51 = vsel %vm580_vm13, %v2678_v45, %v2670_v34 }
 0xcb8   : > { %v2693_v3 = vmul.f32 %v2682_v35, %v6336_v14  ;;  %v2694_v38 = vmul.f32 %v2686_v51, %v6337_v15  ;;  %2864 = vmatmul.mubr.bf16.gmra.mrb[8].mxu1 %v3878_v22 }
 0xcb9   : > { %2873 = vmatprep.mubr.bf16.mxu1 %v3879_v37 }
 0xcba   : > { %v2729_v47 = vpack.c.bf16 %v2693_v3, %v2691_v58  ;;  %v2730_v20 = vpack.c.bf16 %v2694_v38, %v2692_v11  ;;  %v3735_v58 = vld [vmem:[%s6262_s5 + $0x2f0] sm:$0xff]  ;;  %v3736_v11 = vld [vmem:[%s6262_s5 + $0x2f8] sm:$0xff]  ;;  %v3722_v3 = vld [vmem:[%s6262_s5 + $0x288] sm:$0xff] }
 0xcbb   : > { %v3730_v38 = vld [vmem:[%s6262_s5 + $0x2c8] sm:$0xff] }
 0xcbc   : > { %2896 = vmatprep.subr.bf16.mxu1 %v2730_v20  ;;  %v3724_v20 = vld [vmem:[%s6262_s5 + $0x298] sm:$0xff] }
 0xcbd   : > { %2897 = vmatpush1.bf16.msra.mxu1 %v2729_v47  ;;  %v3728_v47 = vld [vmem:[%s6262_s5 + $0x2b8] sm:$0xff] }
 0xcc0   : > { %2874 = vmatmul.mubr.bf16.gmra.mrb[12].mxu1 %v3881_v53  ;;  %v3721_v53 = vld [vmem:[%s6262_s5 + $0x280] sm:$0xff] }
 0xcc1   : > { %2883 = vmatprep.mubr.bf16.mxu1 %v3882_v13  ;;  %v3732_v13 = vld [vmem:[%s6262_s5 + $0x2d8] sm:$0xff] }
 0xcc8   : > { %2884 = vmatmul.mubr.bf16.gmra.mrb[16].mxu1 %v3884_v2  ;;  %v3729_v2 = vld [vmem:[%s6262_s5 + $0x2c0] sm:$0xff] }
 0xcc9   : > { %2926 = vmatprep.mubr.bf16.mxu1 %v6338_v0 }
 0xcd0   : > { %3717 = vmatmul.mubr.msk.bf16.vlgmr.msra.gmra.mrb[4].mxu1 %vm2808_vm0, %v3885_v10  ;;  %v3731_v10 = vld [vmem:[%s6262_s5 + $0x2d0] sm:$0xff] }
 0xcd1   : > { %2936 = vmatprep.mubr.bf16.mxu1 %v6338_v0 }
 0xcd8   : > { %3718 = vmatmul.mubr.msk.bf16.gmra.mrb[8].mxu1 %vm2808_vm0, %v3886_v33  ;;  %v3304_v33 = vsel %vm634_vm4, %v4488_v42, 0.0 }
 0xcd9   : > { %2946 = vmatprep.mubr.bf16.mxu1 %v6338_v0 }
 0xce0   : > { %3719 = vmatmul.mubr.msk.bf16.gmra.mrb[12].mxu1 %vm2808_vm0, %v3887_v5  ;;  %v3305_v5 = vsel %vm634_vm4, %v4266_v7, 0.0 }
 0xce1   : > { %2956 = vmatprep.mubr.bf16.mxu1 %v6338_v0  ;;  %v3723_v0 = vld [vmem:[%s6262_s5 + $0x290] sm:$0xff] }
 0xce8   : > { %3720 = vmatmul.mubr.msk.bf16.gmra.mrb[16].mxu1 %vm2808_vm0, %v3888_v30  ;;  %v3306_v30 = vadd.f32 %v3305_v5, %v3304_v33 }
 0xda3   : > { %v5991_v31 = vpop.f32.mrb[4].mxu1 }
 0xda4   : > { %v2991_v32 = vmul.f32 %v5991_v31, %v5991_v31  ;;  %v5995_v61 = vpop.f32.mrb[5].mxu1 }
 0xda5   : > { %v2967_v24 = vadd.f32 %v5995_v61, %v5991_v31  ;;  %v2992_v50 = vmul.f32 %v5995_v61, %v5995_v61  ;;  %v6001_v52 = vpop.f32.mrb[6].mxu1 }
 0xda6   : > { %v2993_v19 = vmul.f32 %v6001_v52, %v6001_v52  ;;  %v6005_v41 = vpop.f32.mrb[7].mxu1 }
 0xda7   : > { %v2970_v55 = vadd.f32 %v6005_v41, %v6001_v52  ;;  %v2994_v54 = vmul.f32 %v6005_v41, %v6005_v41  ;;  %2968 = vadd.xlane.f32.xlu1 %v2967_v24  ;;  %v3007_v49 = vadd.f32 %v2992_v50, %v2991_v32  ;;  %v6108_v32 = vpop.permute.xlu1 %3158 }
 0xda9   : > { %2971 = vadd.xlane.f32.xlu0 %v2970_v55  ;;  %v3010_v23 = vadd.f32 %v2994_v54, %v2993_v19  ;;  %v6114_v19 = vpop.permute.xlu0 %3163 }
 0xdab   : > { %3008 = vadd.xlane.f32.xlu1 %v3007_v49  ;;  %v6011_v1 = vpop.f32.mrb[8].mxu1  ;;  %v6110_v24 = vpop.permute.xlu1 %3214 }
 0xdac   : > { %v2995_v16 = vmul.f32 %v6011_v1, %v6011_v1  ;;  %v6015_v21 = vpop.f32.mrb[9].mxu1 }
 0xdad   : > { %v2973_v26 = vadd.f32 %v6015_v21, %v6011_v1  ;;  %v2996_v8 = vmul.f32 %v6015_v21, %v6015_v21  ;;  %3011 = vadd.xlane.f32.xlu0 %v3010_v23  ;;  %v6021_v17 = vpop.f32.mrb[10].mxu1 }
 0xdae   : > { %v2997_v56 = vmul.f32 %v6021_v17, %v6021_v17  ;;  %v6025_v6 = vpop.f32.mrb[11].mxu1 }
 0xdaf   : > { %v2976_v39 = vadd.f32 %v6025_v6, %v6021_v17  ;;  %v2998_v40 = vmul.f32 %v6025_v6, %v6025_v6  ;;  %v3013_v44 = vadd.f32 %v2996_v8, %v2995_v16  ;;  %v6112_v50 = vpop.permute.xlu1 %3219 }
 0xdb1   : > { %2974 = vadd.xlane.f32.xlu0 %v2973_v26  ;;  %2977 = vadd.xlane.f32.xlu1 %v2976_v39  ;;  %v3016_v63 = vadd.f32 %v2998_v40, %v2997_v56 }
 0xdb3   : > { %v6031_v4 = vpop.f32.mrb[12].mxu1  ;;  %v6116_v55 = vpop.permute.xlu1 %3168 }
 0xdb4   : > { %v2999_v43 = vmul.f32 %v6031_v4, %v6031_v4  ;;  %v6035_v12 = vpop.f32.mrb[13].mxu1 }
 0xdb5   : > { %v2979_v48 = vadd.f32 %v6035_v12, %v6031_v4  ;;  %v3000_v28 = vmul.f32 %v6035_v12, %v6035_v12  ;;  %3014 = vadd.xlane.f32.xlu0 %v3013_v44  ;;  %v6041_v29 = vpop.f32.mrb[14].mxu1 }
 0xdb6   : > { %v3001_v36 = vmul.f32 %v6041_v29, %v6041_v29  ;;  %v6045_v14 = vpop.f32.mrb[15].mxu1 }
 0xdb7   : > { %v2982_v59 = vadd.f32 %v6045_v14, %v6041_v29  ;;  %v3002_v15 = vmul.f32 %v6045_v14, %v6045_v14  ;;  %v3019_v60 = vadd.f32 %v3000_v28, %v2999_v43 }
 0xdb9   : > { %3017 = vadd.xlane.f32.xlu0 %v3016_v63  ;;  %2983 = vadd.xlane.f32.xlu1 %v2982_v59  ;;  %v3022_v62 = vadd.f32 %v3002_v15, %v3001_v36 }
 0xdbb   : > { %v6051_v9 = vpop.f32.mrb[16].mxu1 }
 0xdbc   : > { %v3003_v27 = vmul.f32 %v6051_v9, %v6051_v9  ;;  %v6055_v34 = vpop.f32.mrb[17].mxu1 }
 0xdbd   : > { %v2985_v18 = vadd.f32 %v6055_v34, %v6051_v9  ;;  %v3004_v57 = vmul.f32 %v6055_v34, %v6055_v34  ;;  %2980 = vadd.xlane.f32.xlu0 %v2979_v48  ;;  %v6061_v22 = vpop.f32.mrb[18].mxu1 }
 0xdbe   : > { %v3005_v25 = vmul.f32 %v6061_v22, %v6061_v22  ;;  %v6065_v46 = vpop.f32.mrb[19].mxu1 }
 0xdbf   : > { %v2988_v37 = vadd.f32 %v6065_v46, %v6061_v22  ;;  %v3006_v45 = vmul.f32 %v6065_v46, %v6065_v46  ;;  %2986 = vadd.xlane.f32.xlu1 %v2985_v18  ;;  %v3025_v35 = vadd.f32 %v3004_v57, %v3003_v27 }
 0xdc1   : > { %v3028_v51 = vadd.f32 %v3006_v45, %v3005_v25  ;;  %3020 = vadd.xlane.f32.xlu0 %v3019_v60 }
 0xdc3   : > { %3026 = vadd.xlane.f32.xlu1 %v3025_v35 }
 0xdc5   : > { %3023 = vadd.xlane.f32.xlu0 %v3022_v62 }
 0xdc9   : > { %2989 = vadd.xlane.f32.xlu0 %v2988_v37 }
 0xdcd   : > { %3029 = vadd.xlane.f32.xlu0 %v3028_v51 }
 0xdd4   : > { %3224 = vperm.xlu1 %3849, %v3735_v58  }
 0xdd8   : > { %3229 = vperm.xlu1 %3849, %v3736_v11  }
 0xddc   : > { %3143 = vperm.xlu1 %3849, %v3722_v3  }
 0xde0   : > { %3199 = vperm.xlu1 %3849, %v3730_v38  }
 0xde3   : > { %3173 = vperm.xlu0 %3850, %v3728_v47  }
 0xde4   : > { %3153 = vperm.xlu1 %3849, %v3724_v20  }
 0xde7   : > { %3138 = vperm.xlu0 %3850, %v3721_v53  }
 0xde8   : > { %3209 = vperm.xlu1 %3849, %v3732_v13  }
 0xdeb   : > { %3194 = vperm.xlu0 %3850, %v3729_v2  }
 0xdef   : > { %3148 = vperm.xlu0 %3850, %v3723_v0  }
 0xdf3   : > { %3204 = vperm.xlu0 %3850, %v3731_v10  }
 0xe12   : > { %3307 = vadd.xlane.f32.xlu0 %v3306_v30 }
 0xe34   : > { %v2969_v49 = vpop.xlane.xlu1 %2968 }
 0xe35   : > { %v6120_v3 = vmul.f32 0.00390625, %v2969_v49 }
 0xe36   : > { %v2972_v54 = vpop.xlane.xlu0 %2971 }
 0xe37   : > { %v3047_v10 = vmul.f32 %v6120_v3, %v6120_v3 }
 0xe38   : > { %v3009_v26 = vpop.xlane.xlu1 %3008 }
 0xe39   : > { %v3039_v13 = vmul.f32 0.00390625, %v3009_v26 }
 0xe3a   : > { %v3012_v23 = vpop.xlane.xlu0 %3011 }
 0xe3b   : > { %v3055_v30 = vsub.f32 %v3039_v13, %v3047_v10 }
 0xe3e   : > { %v2975_v16 = vpop.xlane.xlu0 %2974  ;;  %v2978_v56 = vpop.xlane.xlu1 %2977 }
 0xe42   : > { %v3015_v8 = vpop.xlane.xlu0 %3014 }
 0xe46   : > { %v6118_v39 = vpop.xlane.xlu0 %3017  ;;  %v2984_v40 = vpop.xlane.xlu1 %2983 }
 0xe47   : > { %v3036_v36 = vmul.f32 0.00390625, %v2984_v40  ;;  %v6128_v40 = vmul.f32 0.00390625, %v2975_v16 }
 0xe49   : > { %v3052_v45 = vmul.f32 %v3036_v36, %v3036_v36 }
 0xe4a   : > { %v2981_v44 = vpop.xlane.xlu0 %2980 }
 0xe4b   : > { %v3035_v63 = vmul.f32 0.00390625, %v2981_v44 }
 0xe4c   : > { %v2987_v43 = vpop.xlane.xlu1 %2986 }
 0xe4d   : > { %v3037_v48 = vmul.f32 0.00390625, %v2987_v43  ;;  %v3051_v59 = vmul.f32 %v3035_v63, %v3035_v63  ;;  %v6130_v43 = vmul.f32 0.00390625, %v2972_v54  ;;  %v3096_v26 = vsub.f32 %v6031_v4, %v3035_v63 }
 0xe4e   : > { %v3021_v28 = vpop.xlane.xlu0 %3020  ;;  %v3049_v54 = vmul.f32 %v6128_v40, %v6128_v40  ;;  %v3098_v4 = vsub.f32 %v6041_v29, %v3036_v36 }
 0xe4f   : > { %v3043_v15 = vmul.f32 0.00390625, %v3021_v28  ;;  %v3053_v27 = vmul.f32 %v3037_v48, %v3037_v48  ;;  %v3040_v28 = vmul.f32 0.00390625, %v3012_v23 }
 0xe50   : > { %v3027_v60 = vpop.xlane.xlu1 %3026 }
 0xe51   : > { %v3059_v62 = vsub.f32 %v3043_v15, %v3051_v59  ;;  %v3045_v18 = vmul.f32 0.00390625, %v3027_v60  ;;  %v3097_v59 = vsub.f32 %v6035_v12, %v3035_v63  ;;  %v3063_v60 = vmax.f32 %v3055_v30, 0.0 }
 0xe52   : > { %v3024_v57 = vpop.xlane.xlu0 %3023  ;;  %v3099_v12 = vsub.f32 %v6045_v14, %v3036_v36 }
 0xe53   : > { %v3067_v25 = vmax.f32 %v3059_v62, 0.0  ;;  %v3061_v37 = vsub.f32 %v3045_v18, %v3053_v27  ;;  %v3044_v35 = vmul.f32 0.00390625, %v3024_v57  ;;  %v6134_v62 = vmul.f32 0.00390625, %v2978_v56 }
 0xe54   : > { %v3041_v27 = vmul.f32 0.00390625, %v3015_v8  ;;  %v3100_v57 = vsub.f32 %v6051_v9, %v3037_v48 }
 0xe55   : > { %v3108_v51 = vadd.f32 1e-05, %v3067_v25  ;;  %v3069_v58 = vmax.f32 %v3061_v37, 0.0  ;;  %v3060_v11 = vsub.f32 %v3044_v35, %v3052_v45  ;;  %v3101_v25 = vsub.f32 %v6055_v34, %v3037_v48 }
 0xe56   : > { %v2990_v38 = vpop.xlane.xlu0 %2989  ;;  %v3104_v35 = vadd.f32 1e-05, %v3063_v60  ;;  %v3048_v34 = vmul.f32 %v6130_v43, %v6130_v43  ;;  %v3057_v48 = vsub.f32 %v3041_v27, %v3049_v54 }
 0xe57   : > { %4015 = vrsqrt.f32 %v3108_v51  ;;  %v3110_v47 = vadd.f32 1e-05, %v3069_v58  ;;  %v3068_v20 = vmax.f32 %v3060_v11, 0.0  ;;  %v6122_v53 = vmul.f32 0.00390625, %v2990_v38  ;;  %v3225_v38 = vpop.permute.xlu1 %3224 }
 0xe58   : > { %v3042_v51 = vmul.f32 0.00390625, %v6118_v39  ;;  %v3056_v36 = vsub.f32 %v3040_v28, %v3048_v34 }
 0xe59   : > { %4017 = vrsqrt.f32 %v3110_v47  ;;  %v3109_v2 = vadd.f32 1e-05, %v3068_v20  ;;  %v3054_v33 = vmul.f32 %v6122_v53, %v6122_v53 }
 0xe5a   : > { %v3030_v0 = vpop.xlane.xlu0 %3029 }
 0xe5b   : > { %4019 = vrsqrt.f32 %v3109_v2  ;;  %v3046_v5 = vmul.f32 0.00390625, %v3030_v0 }
 0xe5d   : > { %v3062_v49 = vsub.f32 %v3046_v5, %v3054_v33  ;;  %v3065_v33 = vmax.f32 %v3057_v48, 0.0 }
 0xe5f   : > { %v3070_v44 = vmax.f32 %v3062_v49, 0.0 }
 0xe61   : > { %v4016_v15 = vpop.eup %4015  ;;  %v3111_v18 = vadd.f32 1e-05, %v3070_v44 }
 0xe62   : > { %v3128_v16 = vmul.f32 %v4016_v15, %v3096_v26  ;;  %v3129_v37 = vmul.f32 %v4016_v15, %v3097_v59  ;;  %v3174_v47 = vpop.permute.xlu0 %3173  ;;  %v3064_v26 = vmax.f32 %v3056_v36, 0.0  ;;  %v3103_v59 = vsub.f32 %v6065_v46, %v6122_v53 }
 0xe63   : > { %v4018_v45 = vpop.eup %4017  ;;  %4021 = vrsqrt.f32 %v3111_v18  ;;  %v3106_v18 = vadd.f32 1e-05, %v3065_v33 }
 0xe64   : > { %v3184_v23 = vmul.f32 %v6108_v32, %v3128_v16  ;;  %v3185_v8 = vmul.f32 %v6108_v32, %v3129_v37  ;;  %v3132_v56 = vmul.f32 %v4018_v45, %v3100_v57  ;;  %v3133_v63 = vmul.f32 %v4018_v45, %v3101_v25 }
 0xe65   : > { %v4020_v9 = vpop.eup %4019  ;;  %v3050_v32 = vmul.f32 %v6134_v62, %v6134_v62  ;;  %4023 = vrsqrt.f32 %v3104_v35  ;;  %v3105_v37 = vadd.f32 1e-05, %v3064_v26  ;;  %v3089_v26 = vsub.f32 %v5995_v61, %v6120_v3 }
 0xe66   : > { %v3130_v58 = vmul.f32 %v4020_v9, %v3098_v4  ;;  %v3131_v11 = vmul.f32 %v4020_v9, %v3099_v12  ;;  %v3188_v29 = vmul.f32 %v6116_v55, %v3132_v56  ;;  %v3189_v14 = vmul.f32 %v6116_v55, %v3133_v63  ;;  %v6161_v25 = vpop.permute.xlu0 %3138 }
 0xe67   : > { %v3240_v20 = vadd.f32 %v6110_v24, %v3184_v23  ;;  %v3241_v13 = vadd.f32 %v6110_v24, %v3185_v8  ;;  %v3058_v5 = vsub.f32 %v3042_v51, %v3050_v32  ;;  %v3102_v24 = vsub.f32 %v6061_v22, %v6122_v53  ;;  %v3230_v53 = vpop.permute.xlu1 %3229 }
 0xe68   : > { %v3186_v2 = vmul.f32 %v6114_v19, %v3130_v58  ;;  %v3187_v39 = vmul.f32 %v6114_v19, %v3131_v11  ;;  %v3244_v0 = vadd.f32 %v3225_v38, %v3188_v29  ;;  %v3245_v10 = vadd.f32 %v3225_v38, %v3189_v14 }
 0xe69   : > { %v3737_v55 = vmul.f32 -1.442695, %v3240_v20  ;;  %v3738_v60 = vmul.f32 -1.442695, %v3241_v13  ;;  %v3066_v57 = vmax.f32 %v3058_v5, 0.0  ;;  %v3088_v20 = vsub.f32 %v5991_v31, %v6120_v3 }
 0xe6a   : > { %v3741_v30 = vmul.f32 -1.442695, %v3244_v0  ;;  %v3742_v49 = vmul.f32 -1.442695, %v3245_v10  ;;  %v3242_v44 = vadd.f32 %v6112_v50, %v3186_v2  ;;  %v3243_v28 = vadd.f32 %v6112_v50, %v3187_v39  ;;  %v6163_v23 = vpop.permute.xlu0 %3194 }
 0xe6b   : > { %4025 = vpow2.f32 %v3737_v55  ;;  %v3107_v46 = vadd.f32 1e-05, %v3066_v57  ;;  %v3144_v51 = vpop.permute.xlu1 %3143  ;;  %v3092_v2 = vsub.f32 %v6011_v1, %v6128_v40  ;;  %v3093_v0 = vsub.f32 %v6015_v21, %v6128_v40 }
 0xe6c   : > { %4027 = vpow2.f32 %v3741_v30  ;;  %v3739_v19 = vmul.f32 -1.442695, %v3242_v44  ;;  %v3740_v15 = vmul.f32 -1.442695, %v3243_v28  ;;  %v3090_v5 = vsub.f32 %v6001_v52, %v6130_v43 }
 0xe6d   : > { %v4022_v27 = vpop.eup %4021  ;;  %4029 = vpow2.f32 %v3742_v49  ;;  %v3091_v31 = vsub.f32 %v6005_v41, %v6130_v43 }
 0xe6e   : > { %4031 = vpow2.f32 %v3739_v19  ;;  %v3134_v50 = vmul.f32 %v4022_v27, %v3102_v24  ;;  %v3135_v16 = vmul.f32 %v4022_v27, %v3103_v59  ;;  %v3149_v36 = vpop.permute.xlu0 %3148 }
 0xe6f   : > { %4033 = vpow2.f32 %v3740_v15  ;;  %v4024_v12 = vpop.eup %4023  ;;  %v3200_v10 = vpop.permute.xlu1 %3199 }
 0xe70   : > { %v3190_v22 = vmul.f32 %v3174_v47, %v3134_v50  ;;  %v3191_v45 = vmul.f32 %v3174_v47, %v3135_v16  ;;  %4035 = vpow2.f32 %v3738_v60  ;;  %v3120_v33 = vmul.f32 %v4024_v12, %v3088_v20 }
 0xe71   : > { %4037 = vrsqrt.f32 %v3106_v18  ;;  %v3121_v41 = vmul.f32 %v4024_v12, %v3089_v26  ;;  %v3094_v12 = vsub.f32 %v6021_v17, %v6134_v62  ;;  %v4141_v26 = vmov 0.0  }
 0xe72   : > { %v3246_v54 = vadd.f32 %v3230_v53, %v3190_v22  ;;  %v3247_v4 = vadd.f32 %v3230_v53, %v3191_v45  ;;  %4039 = vrsqrt.f32 %v3105_v37  ;;  %v3176_v49 = vmul.f32 %v6161_v25, %v3120_v33  ;;  %v3205_v1 = vpop.permute.xlu0 %3204 }
 0xe73   : > { %4041 = vrsqrt.f32 %v3107_v46  ;;  %v3154_v16 = vpop.permute.xlu1 %3153  ;;  %v3177_v45 = vmul.f32 %v6161_v25, %v3121_v41 }
 0xe74   : > { %v3743_v8 = vmul.f32 -1.442695, %v3246_v54  ;;  %v3744_v56 = vmul.f32 -1.442695, %v3247_v4  ;;  %v3232_v52 = vadd.f32 %v6163_v23, %v3176_v49  ;;  %v3395_v49 = vld [vmem:[%s6265_s8 + $0x8] sm:$0xff] }
 0xe75   : > { %v4026_v63 = vpop.eup %4025 }
 0xe76   : > { %v4028_v9 = vpop.eup %4027  ;;  %4043 = vpow2.f32 %v3743_v8  ;;  %v3272_v35 = vadd.f32 1.0, %v4026_v63  ;;  %v3233_v63 = vadd.f32 %v6163_v23, %v3177_v45 }
 0xe77   : > { %v4030_v34 = vpop.eup %4029  ;;  %v3276_v48 = vadd.f32 1.0, %v4028_v9  ;;  %4045 = vpow2.f32 %v3744_v56 }
 0xe78   : > { %v4032_v58 = vpop.eup %4031  ;;  %v3277_v11 = vadd.f32 1.0, %v4030_v34  ;;  %4047 = vrcp.f32 %v3272_v35  ;;  %v3095_v35 = vsub.f32 %v6025_v6, %v6134_v62 }
 0xe79   : > { %v4034_v29 = vpop.eup %4033  ;;  %4049 = vrcp.f32 %v3276_v48  ;;  %v3274_v14 = vadd.f32 1.0, %v4032_v58 }
 0xe7a   : > { %v4036_v32 = vpop.eup %4035  ;;  %4051 = vrcp.f32 %v3277_v11  ;;  %v3275_v38 = vadd.f32 1.0, %v4034_v29 }
 0xe7b   : > { %v4038_v47 = vpop.eup %4037  ;;  %4053 = vrcp.f32 %v3274_v14  ;;  %v3273_v13 = vadd.f32 1.0, %v4036_v32  ;;  %v3210_v14 = vpop.permute.xlu1 %3209 }
 0xe7c   : > { %4055 = vrcp.f32 %v3275_v38  ;;  %v4040_v39 = vpop.eup %4039  ;;  %v3124_v55 = vmul.f32 %v4038_v47, %v3092_v2  ;;  %v3125_v44 = vmul.f32 %v4038_v47, %v3093_v0 }
 0xe7d   : > { %4057 = vrcp.f32 %v3273_v13  ;;  %v4042_v30 = vpop.eup %4041  ;;  %v3122_v21 = vmul.f32 %v4040_v39, %v3090_v5  ;;  %v3123_v59 = vmul.f32 %v4040_v39, %v3091_v31  ;;  %v3394_v31 = vld [vmem:[%s6265_s8] sm:$0xff] }
 0xe7e   : > { %v3180_v40 = vmul.f32 %v3149_v36, %v3124_v55  ;;  %v3181_v15 = vmul.f32 %v3149_v36, %v3125_v44  ;;  %v3127_v29 = vmul.f32 %v4042_v30, %v3095_v35  ;;  %v3774_v44 = vpack.c.bf16 %v3395_v49, %v3394_v31 }
 0xe7f   : > { %v3178_v27 = vmul.f32 %v3144_v51, %v3122_v21  ;;  %v3179_v50 = vmul.f32 %v3144_v51, %v3123_v59  ;;  %v3126_v51 = vmul.f32 %v4042_v30, %v3094_v12  ;;  %v4139_v30 = vmov 0.0|0.0  }
 0xe80   : > { %v4044_v28 = vpop.eup %4043  ;;  %v3236_v43 = vadd.f32 %v3205_v1, %v3180_v40  ;;  %v3237_v22 = vadd.f32 %v3205_v1, %v3181_v15  ;;  %v3183_v23 = vmul.f32 %v3154_v16, %v3127_v29  ;;  %v3396_v1 = vld [vmem:[%s6265_s8 + $0x10] sm:$0xff] }
 0xe81   : > { %v4046_v24 = vpop.eup %4045  ;;  %v3278_v19 = vadd.f32 1.0, %v4044_v28  ;;  %v3234_v3 = vadd.f32 %v3200_v10, %v3178_v27  ;;  %v3235_v54 = vadd.f32 %v3200_v10, %v3179_v50  ;;  %v3182_v36 = vmul.f32 %v3154_v16, %v3126_v51 }
 0xe82   : > { %v4048_v60 = vpop.eup %4047  ;;  %v3279_v18 = vadd.f32 1.0, %v4046_v24  ;;  %v3239_v6 = vadd.f32 %v3210_v14, %v3183_v23 }
 0xe83   : > { %v4050_v57 = vpop.eup %4049  ;;  %4059 = vrcp.f32 %v3278_v19  ;;  %v3296_v37 = vmul.f32 %v4048_v60, %v3232_v52  ;;  %v3238_v38 = vadd.f32 %v3210_v14, %v3182_v36 }
 0xe84   : > { %v4052_v61 = vpop.eup %4051  ;;  %4061 = vrcp.f32 %v3279_v18  ;;  %v3300_v46 = vmul.f32 %v4050_v57, %v3236_v43  ;;  %v3471_v18 = vld [vmem:[%s6266_s9] sm:$0x1] }
 0xe85   : > { %v4054_v53 = vpop.eup %4053  ;;  %v3301_v4 = vmul.f32 %v4052_v61, %v3237_v22  ;;  %v3316_v58 = vmul.f32 %v3296_v37, %v4488_v42 }
 0xe86   : > { %v4056_v8 = vpop.eup %4055  ;;  %v3298_v56 = vmul.f32 %v4054_v53, %v3234_v3  ;;  %v3320_v0 = vmul.f32 %v3300_v46, %v4488_v42 }
 0xe87   : > { %v4058_v9 = vpop.eup %4057  ;;  %v3299_v34 = vmul.f32 %v4056_v8, %v3235_v54  ;;  %v3321_v33 = vmul.f32 %v3301_v4, %v4266_v7 }
 0xe88   : > { %v3318_v48 = vmul.f32 %v3298_v56, %v4488_v42  ;;  %v3297_v25 = vmul.f32 %v4058_v9, %v3233_v63 }
 0xe89   : > { %v3319_v11 = vmul.f32 %v3299_v34, %v4266_v7 }
 0xe8a   : > { %v3317_v17 = vmul.f32 %v3297_v25, %v4266_v7  ;;  %v3767_v32 = vpack.c.bf16 %v3318_v48, %v3316_v58 }
 0xe8c   : > { %v3765_v47 = vpack.c.bf16 %v3319_v11, %v3317_v17 }
 0xe8d   : > { %v4060_v20 = vpop.eup %4059 }
 0xe8e   : > { %v4062_v62 = vpop.eup %4061  ;;  %v3302_v13 = vmul.f32 %v4060_v20, %v3238_v38  ;;  %3766 = vmatprep.subr.bf16.mxu0 %v3765_v47 }
 0xe8f   : > { %v3303_v2 = vmul.f32 %v4062_v62, %v3239_v6  ;;  %3768 = vmatpush1.bf16.xpose.msra.mxu0 %v3767_v32 }
 0xe90   : > { %v3322_v39 = vmul.f32 %v3302_v13, %v4488_v42 }
 0xe91   : > { %v3323_v10 = vmul.f32 %v3303_v2, %v4266_v7  ;;  %v3397_v7 = vld [vmem:[%s6265_s8 + $0x18] sm:$0xff] }
 0xe92   : > { %v3771_v5 = vpack.c.bf16 %v3322_v39, %v3320_v0  ;;  %v3777_v28 = vpack.c.bf16 %v3397_v7, %v3396_v1 }
 0xe93   : > { %v3769_v55 = vpack.c.bf16 %v3323_v10, %v3321_v33 }
 0xe95   : > { %3770 = vmatprep.subr.bf16.mxu0 %v3769_v55 }
 0xe97   : > { %3772 = vmatpush1.bf16.xpose.msra.mxu0 %v3771_v5 }
 0xe98   : > { %3773 = vmatprep.subr.bf16.mxu0 %v4139_v30 }
 0xe9e   : > { %3389 = vmatmul.mubr.f32.vlgmr.msra.gmra.mrb[36].mxu0 %v4488_v42 }
 0xe9f   : > { %3775 = vmatpush3.bf16.msra.mxu0 %v3774_v44  ;;  %3762 = vmatprep.mubr.msk.f32.mxu0 %vm4140_vm1, %v4141_v26  ;;  %v3308_v21 = vpop.xlane.xlu0 %3307 }
 0xea0   : > { %3776 = vmatprep.subr.bf16.mxu0 %v4139_v30  ;;  %v3309_v40 = vrot.slane %v3308_v21, 4 }
 0xea2   : > { %v3310_v24 = vadd.f32 %v3309_v40, %v3308_v21 }
 0xea3   : > { %3778 = vmatpush3.bf16.msra.mxu0 %v3777_v28 }
 0xea4   : > { %v3311_v59 = vrot.slane %v3310_v24, 2 }
 0xea6   : > { %v3312_v19 = vadd.f32 %v3311_v59, %v3310_v24 }
 0xea8   : > { %v3313_v52 = vrot.slane %v3312_v19, 1 }
 0xeaa   : > { %v3314_v15 = vadd.f32 %v3313_v52, %v3312_v19 }
 0xeac   : > { %3795 = vpush %v3314_v15 }
 0xedd   : > { %s3796_s22 = spop %3795 }
 0xede   : > { %s3475_s21 = smul.f32 16.0, %s3796_s22  ;;  %v3472_v41 = vstv %s3796_s22 }
 0xedf   : > { %v3473_v43 = vmul.f32 %v3472_v41, %v3471_v18 }
 0xee0   : > { %v3476_v27 = vstv %s3475_s21 }
 0xee1   : > { %4063 = vrcp.f32 %v3476_v27 }
 0xeeb   : > { %v4064_v37 = vpop.eup %4063 }
 0xf71   : > { %v3390_v60 = vpop.f32.mrb[36].mxu0 }
 0xf72   : > { %3763 = vmatmul.mubr.msk.f32.vlgmr.msra.gmra.mrb[38].mxu0 %vm2808_vm0, %v3390_v60  ;;  %v3392_v42 = vpop.f32.mrb[37].mxu0 }
0x1045   : > { %v3467_v57 = vpop.f32.mrb[38].mxu0 }
0x1046   : > { %v3474_v50 = vadd.f32 %v3473_v43, %v3467_v57  ;;  %v3764_v16 = vpop.f32.mrb[39].mxu0 }
0x1048   : > { %v3478_v22 = vmul.f32 %v4064_v37, %v3474_v50 }
0x104a   : > { %3480 = vst.msk [vmem:[%s373_s3] sm:$0x1] %vm3479_vm2, %v3478_v22 }
0x104b   : > { %4078 = shalt.err (!%p4075_p3)
}
0x104c   : > { %s4079_s15 = scalar_lea.hbm %s6215_s28, 16  ;;  %s4083_s22 = scalar_lea.hbm %s6267_s10, 32 }
0x104d   : > { %p4080_p4 = scmp.ne.s32.totalorder %s6215_s28, %s4079_s15  ;;  %p4084_p9 = scmp.lt.u32.totalorder %s6215_s28, %s6267_s10 }
0x104e   : > { %p4085_p10 = scmp.lt.u32.totalorder %s4083_s22, %s4079_s15  ;;  %p4087_p12 = scmp.lt.u32.totalorder %s4079_s15, %s6215_s28 }
0x104f   : > { %p4081_p7 = pnand %p4080_p4, %p4236_p5 }
0x1050   : > { %p4086_p11 = por %p4085_p10, %p4084_p9 }
0x1051   : > { %p4082_p8 = pneg %p4081_p7 }
0x1052   : > { %p4088_p13 = por %p4087_p12, %p4086_p11 }
0x1054   : > { %p4089_p0 = pnand %p4088_p13, %p4082_p8 }
0x1056   : > { %4092 = shalt.err (!%p4089_p0)
}
0x1057   : > { %3797 = dma.vmem_to_hbm [thread:$0]  (%p4236_p5), %s6217_s26, 16, %s6215_s28, %s3482_s30  }
0x1058 PF: > { %p3803_p1 = scmp.ge.s32.totalorder %s4127_s16, 2  ;;  %s3506_s20 = sand.u32 1, %s4115_s13  }
0x1059   : > { %s3507_s25 = scalar_lea.sflag [#allocation3], %s3506_s20 }
0x105a   : > { %p3800_p2 = pnand %p3803_p1, %p4240_p6 }
0x105c   : > { %4110 = dma.done.wait (!%p3800_p2), %s3507_s25, 16  }
0x105d   : > { %4112 = vsyncadd (!%p3800_p2), %s3507_s25, 4294967280  ;;  %s6339_s16 = sld [smem:[#allocation6_spill]]  ;;  %s6340_s2 = sld [smem:[#allocation5_spill]] }
0x105e   : > { %s6341_s15 = sld [smem:[#allocation7_spill]]  ;;  %s6342_s13 = smov %s4119_s14 }
0x1063   : > { %p20_p3 = scmp.ge.s32.totalorder %s6339_s16, 4   ;;  %s6343_s14 = smov %s6340_s2 }
0x1065   :  { %22 = sbr.rel (!%p20_p3) target bundleno = 8 (0x8), region = 120 }
0x106c   :  { %3511 = vsyncpa [#allocation3], 1 }
0x106d   :  { %3513 = vsyncpa [#allocation3 + $0x1], 1 }

</bundles_post_ra>
